<compile_context>
chip_gen: v6e
topology: v6e:2x2x1
jax: 0.10.0
libtpu: 0.0.40
codegen_flags: <defaults>
</compile_context>

<pallas_src>
import functools

import jax
import jax.numpy as jnp
from jax import lax
from jax.experimental import pallas as pl
from jax.experimental.pallas import tpu as pltpu


def _basic_block_kernel(H, W, C, use_im2col,
                        x_ref, w1_ref, b1_ref, w2_ref, b2_ref, out_ref,
                        xpad_ref, *maybe_pcols):
    """Fused BasicBlock forward for one image.

    x_ref   : (1, H*W, C)  flattened NHWC activations (input dtype)
    w1_ref  : (9*C, C)     conv1 weight, BN1 scale folded in, im2col row order
    b1_ref  : (1, C)       BN1 shift (f32)
    w2_ref  : (9*C, C)     conv2 weight, BN2 scale folded in
    b2_ref  : (1, C)       BN2 shift (f32)
    out_ref : (1, H*W, C)
    xpad_ref: (H*W + 2*(W+1), C) compute-dtype scratch: activation + zero halo rows
    maybe_pcols: optional (H*W, 9*C) compute-dtype im2col scratch (small-C path)
    """
    M = H * W
    P = W + 1                      # zero halo rows above / below the image
    cdtype = xpad_ref.dtype

    # ---- hoisted constants (shared by both convs) ----
    w_idx = lax.broadcasted_iota(jnp.int32, (M, C), 0) % W
    mask_l = w_idx >= 1            # tap dw = -1 is valid (not at w == 0)
    mask_r = w_idx <= W - 2        # tap dw = +1 is valid (not at w == W-1)
    b1 = b1_ref[...]               # (1, C) f32, broadcasts over rows
    b2 = b2_ref[...]

    x_in = x_ref[0]                               # (M, C) input dtype
    x_f32 = x_in.astype(jnp.float32)              # residual kept in f32

    # Zero the halo rows every step (scratch persists across grid steps and,
    # under megacore sharding, a program_id==0 guard would only run on one core).
    xpad_ref[0:P, :] = jnp.zeros((P, C), cdtype)
    xpad_ref[P + M:P + M + P, :] = jnp.zeros((P, C), cdtype)

    taps = [(dh, dw) for dh in (-1, 0, 1) for dw in (-1, 0, 1)]

    def tap_slice(dh, dw):
        """(M, C) tap values of a 3x3/SAME conv of the activation in xpad."""
        start = P + dh * W + dw                   # static, >= 0
        v = xpad_ref[start:start + M, :]          # h border -> zero halo rows
        if dw == -1:
            v = jnp.where(mask_l, v, 0)           # w border -> lane mask
        elif dw == 1:
            v = jnp.where(mask_r, v, 0)
        return v

    def conv3x3(w_ref_):
        """3x3 SAME conv of xpad_ref[P:P+M]; returns f32 (M, C)."""
        if use_im2col:
            # Small C: one MXU matmul with contraction 9*C. Taps are written
            # straight into the preallocated im2col scratch (no concatenates,
            # no zero buffers). Column order (kh, kw, cin) matches the
            # wrapper's weight reshape.
            pcols_ref = maybe_pcols[0]
            for t, (dh, dw) in enumerate(taps):
                pcols_ref[:, t * C:(t + 1) * C] = tap_slice(dh, dw)
            return jnp.dot(pcols_ref[...], w_ref_[...],
                           preferred_element_type=jnp.float32)
        # Large C (>=128): skip the im2col buffer entirely and accumulate 9
        # shifted matmuls (K = C per tap already fills the MXU rows).
        acc = jnp.zeros((M, C), jnp.float32)
        for t, (dh, dw) in enumerate(taps):
            wt = w_ref_[t * C:(t + 1) * C, :]     # (C, C)
            acc = acc + jnp.dot(tap_slice(dh, dw), wt,
                                preferred_element_type=jnp.float32)
        return acc

    # conv1 (+ folded BN1) + ReLU
    xpad_ref[P:P + M, :] = x_in.astype(cdtype)
    mid = jnp.maximum(conv3x3(w1_ref) + b1, 0.0)          # (M, C) f32

    # conv2 (+ folded BN2) + residual add
    xpad_ref[P:P + M, :] = mid.astype(cdtype)
    out = conv3x3(w2_ref) + b2 + x_f32

    out_ref[0] = out.astype(out_ref.dtype)


def basic_block_forward(x_nhwc,
                        w1_hwio, gamma1, beta1, mean1, var1,
                        w2_hwio, gamma2, beta2, mean2, var2,
                        eps=1e-5,
                        compute_dtype=jnp.bfloat16,
                        matmul_path=None):
    """Eval-mode BasicBlock forward. `matmul_path`: None (auto), 'im2col', 'per_tap'."""
    N, H, W, C = x_nhwc.shape
    assert w1_hwio.shape == (3, 3, C, C) and w2_hwio.shape == (3, 3, C, C)
    M = H * W
    P = W + 1

    if matmul_path is None:
        use_im2col = C < 128
    elif matmul_path == "im2col":
        use_im2col = True
    elif matmul_path == "per_tap":
        use_im2col = False
    else:
        raise ValueError(f"unknown matmul_path: {matmul_path!r}")

    # ---- fold eval-mode BN into the conv weights (scale) and a bias (shift) ----
    s1 = (gamma1 / jnp.sqrt(var1 + eps)).astype(jnp.float32)
    s2 = (gamma2 / jnp.sqrt(var2 + eps)).astype(jnp.float32)
    # Row order (kh, kw, cin) matches the kernel's im2col column / tap order.
    w1f = (w1_hwio.astype(jnp.float32) * s1[None, None, None, :]
           ).reshape(9 * C, C).astype(compute_dtype)
    w2f = (w2_hwio.astype(jnp.float32) * s2[None, None, None, :]
           ).reshape(9 * C, C).astype(compute_dtype)
    b1 = (beta1 - mean1 * s1).reshape(1, C).astype(jnp.float32)
    b2 = (beta2 - mean2 * s2).reshape(1, C).astype(jnp.float32)

    # Activations travel as flat (N, H*W, C) slabs (contiguous reshape, free).
    x_flat = x_nhwc.reshape(N, M, C)

    # ---- per-step VMEM footprint & per-generation budget ----
    it_x = x_nhwc.dtype.itemsize
    it_c = jnp.dtype(compute_dtype).itemsize
    footprint = (
        2 * M * C * it_x                       # double-buffered input block
        + 2 * M * C * it_x                     # double-buffered output block
        + 2 * 2 * 9 * C * C * it_c             # double-buffered weight blocks
        + 2 * 2 * C * 4                        # bias blocks
        + (M + 2 * P) * C * it_c               # halo scratch
        + (M * 9 * C * it_c if use_im2col else 0)   # im2col scratch
        + 4 * M * C * 4)                       # live f32 temporaries (x, mid, acc, out)
    try:
        vmem_cap = int(getattr(pltpu.get_tpu_info(), "vmem_capacity_bytes",
                               64 * 1024 * 1024))
    except Exception:  # pragma: no cover - conservative fallback (v7x size)
        vmem_cap = 64 * 1024 * 1024
    vmem_budget = int(0.75 * vmem_cap)         # headroom: 48 MiB on v7x, 96 MiB on v5e/v6e
    if footprint > vmem_budget:
        raise ValueError(
            f"Per-step VMEM footprint {footprint / 2**20:.1f} MiB exceeds "
            f"{vmem_budget / 2**20:.0f} MiB budget. "
            "TODO(synk): add row-strip tiling (H strips + 2-row halo) for large H*W*C.")
    vmem_limit = min(vmem_budget, max(32 * 1024 * 1024, 2 * footprint))

    scratch_shapes = [pltpu.VMEM((M + 2 * P, C), compute_dtype)]
    if use_im2col:
        scratch_shapes.append(pltpu.VMEM((M, 9 * C), compute_dtype))

    kernel = functools.partial(_basic_block_kernel, H, W, C, use_im2col)

    # Two 3x3 convs: 2 * (2 * M * 9C * C) MACs->flops per image.
    flops = 4 * N * M * 9 * C * C
    bytes_accessed = (2 * N * M * C * it_x          # activations in + out
                      + 2 * 9 * C * C * it_c        # weights
                      + 2 * 2 * C * 4)              # biases

    out_flat = pl.pallas_call(
        kernel,
        out_shape=jax.ShapeDtypeStruct((N, M, C), x_nhwc.dtype),
        grid_spec=pltpu.PrefetchScalarGridSpec(
            num_scalar_prefetch=0,
            grid=(N,),     # one image per step; length N shards across v7x's 2 TCs
            in_specs=[
                pl.BlockSpec((1, M, C), lambda i: (i, 0, 0)),
                pl.BlockSpec((9 * C, C), lambda i: (0, 0)),
                pl.BlockSpec((1, C), lambda i: (0, 0)),
                pl.BlockSpec((9 * C, C), lambda i: (0, 0)),
                pl.BlockSpec((1, C), lambda i: (0, 0)),
            ],
            out_specs=pl.BlockSpec((1, M, C), lambda i: (i, 0, 0)),
            scratch_shapes=scratch_shapes,
        ),
        compiler_params=pltpu.CompilerParams(
            dimension_semantics=("parallel",),
            vmem_limit_bytes=vmem_limit),
        cost_estimate=pl.CostEstimate(flops=flops, transcendentals=0,
                                      bytes_accessed=bytes_accessed),
    )(x_flat, w1f, b1, w2f, b2)

    return out_flat.reshape(N, H, W, C)


def _reference_forward(x_nhwc,
                       w1_hwio, gamma1, beta1, mean1, var1,
                       w2_hwio, gamma2, beta2, mean2, var2,
                       eps=1e-5):
    """Pure-JAX f32 reference (same math as PyTorch BasicBlock in eval mode)."""
    dn = jax.lax.conv_dimension_numbers(x_nhwc.shape, w1_hwio.shape,
                                        ("NHWC", "HWIO", "NHWC"))

    def bn(y, g, b, m, v):
        return (y - m) / jnp.sqrt(v + eps) * g + b

    out = jax.lax.conv_general_dilated(x_nhwc, w1_hwio, (1, 1), "SAME",
                                       dimension_numbers=dn)
    out = bn(out, gamma1, beta1, mean1, var1)
    out = jnp.maximum(out, 0.0)
    out = jax.lax.conv_general_dilated(out, w2_hwio, (1, 1), "SAME",
                                       dimension_numbers=dn)
    out = bn(out, gamma2, beta2, mean2, var2)
    return out + x_nhwc


if __name__ == "__main__":
    key = jax.random.PRNGKey(0)
    N, C, H, W = 2, 4, 16, 16   # inplanes == planes == 4, stride == 1

    k = jax.random.split(key, 10)
    x = jax.random.normal(k[0], (N, H, W, C), jnp.float32)   # NHWC

    fan_in = C * 3 * 3
    w1 = jax.random.normal(k[1], (3, 3, C, C), jnp.float32) * (2.0 / fan_in) ** 0.5
    w2 = jax.random.normal(k[2], (3, 3, C, C), jnp.float32) * (2.0 / fan_in) ** 0.5

    gamma1 = 1.0 + 0.1 * jax.random.normal(k[3], (C,), jnp.float32)
    beta1 = 0.1 * jax.random.normal(k[4], (C,), jnp.float32)
    mean1 = 0.1 * jax.random.normal(k[5], (C,), jnp.float32)
    var1 = jnp.abs(1.0 + 0.1 * jax.random.normal(k[6], (C,), jnp.float32))

    gamma2 = 1.0 + 0.1 * jax.random.normal(k[7], (C,), jnp.float32)
    beta2 = 0.1 * jax.random.normal(k[8], (C,), jnp.float32)
    mean2 = 0.1 * jax.random.normal(k[9], (C,), jnp.float32)
    var2 = jnp.abs(1.0 + 0.05 * jax.random.normal(k[0], (C,), jnp.float32))

    run = functools.partial(basic_block_forward, x,
                            w1, gamma1, beta1, mean1, var1,
                            w2, gamma2, beta2, mean2, var2)
    ref = _reference_forward(x, w1, gamma1, beta1, mean1, var1,
                             w2, gamma2, beta2, mean2, var2)

    # 1) Exact-algorithm check: f32 MXU operands, tight tolerance.
    out_f32 = jax.block_until_ready(run(compute_dtype=jnp.float32))
    assert out_f32.shape == (N, H, W, C)
    assert jnp.allclose(out_f32, ref, rtol=1e-4, atol=1e-4), \
        "f32-path mismatch vs reference"

    # 2) Production path: bf16 MXU operands, f32 accumulation (looser tolerance
    #    reflects bf16 operand rounding only).
    out_bf16 = jax.block_until_ready(run())
    assert out_bf16.shape == (N, H, W, C)
    assert jnp.allclose(out_bf16, ref, rtol=5e-2, atol=5e-2), \
        "bf16 im2col-path mismatch vs reference"

    # 3) Per-tap accumulation path (auto-selected for C >= 128; exercised
    #    explicitly here at small C for coverage).
    out_tap = jax.block_until_ready(run(matmul_path="per_tap"))
    assert jnp.allclose(out_tap, ref, rtol=5e-2, atol=5e-2), \
        "bf16 per-tap-path mismatch vs reference"

    print("KERNEL_OK")
</pallas_src>

<mosaic_0001>
module attributes {stable_mosaic.version = 11 : i64} {
  func.func @_basic_block_kernel(%arg0: i32, %arg1: memref<1x256x4xf32, #tpu.memory_space<vmem>>, %arg2: memref<36x4xf32, #tpu.memory_space<vmem>>, %arg3: memref<1x4xf32, #tpu.memory_space<vmem>>, %arg4: memref<36x4xf32, #tpu.memory_space<vmem>>, %arg5: memref<1x4xf32, #tpu.memory_space<vmem>>, %arg6: memref<1x256x4xf32, #tpu.memory_space<vmem>>, %arg7: memref<290x4xf32, #tpu.memory_space<vmem>>, %arg8: memref<256x36xf32, #tpu.memory_space<vmem>>) attributes {dimension_semantics = [#tpu.dimension_semantics<parallel>], iteration_bounds = array<i64: 2>, scalar_prefetch = 0 : i64, scratch_operands = 2 : i64, tpu.core_type = #tpu.core_type<tc>, window_params = [{transform_indices = @transform_0, window_bounds = array<i64: 1, 256, 4>}, {pipeline_mode = #tpu.pipeline_mode<synchronous>, transform_indices = @transform_1, window_bounds = array<i64: 36, 4>}, {pipeline_mode = #tpu.pipeline_mode<synchronous>, transform_indices = @transform_2, window_bounds = array<i64: 1, 4>}, {pipeline_mode = #tpu.pipeline_mode<synchronous>, transform_indices = @transform_3, window_bounds = array<i64: 36, 4>}, {pipeline_mode = #tpu.pipeline_mode<synchronous>, transform_indices = @transform_4, window_bounds = array<i64: 1, 4>}, {transform_indices = @transform_5, window_bounds = array<i64: 1, 256, 4>}]} {
    %0 = tpu.iota {dimensions = array<i32: 0>} : vector<256x4xi32>
    %c16_i32 = arith.constant 16 : i32
    %c0_i32 = arith.constant 0 : i32
    %1 = arith.cmpi eq, %c16_i32, %c0_i32 : i32
    %c1_i32 = arith.constant 1 : i32
    %2 = arith.select %1, %c1_i32, %c16_i32 : i32
    %3 = vector.broadcast %2 : i32 to vector<256x4xi32>
    %4 = arith.remsi %0, %3 : vector<256x4xi32>
    %c0_i32_0 = arith.constant 0 : i32
    %5 = vector.broadcast %c0_i32_0 : i32 to vector<256x4xi32>
    %6 = arith.cmpi ne, %4, %5 : vector<256x4xi32>
    %c0_i32_1 = arith.constant 0 : i32
    %7 = vector.broadcast %c0_i32_1 : i32 to vector<256x4xi32>
    %8 = arith.cmpi slt, %4, %7 : vector<256x4xi32>
    %c0_i32_2 = arith.constant 0 : i32
    %9 = arith.cmpi slt, %2, %c0_i32_2 : i32
    %10 = vector.broadcast %9 : i1 to vector<256x4xi1>
    %11 = vector.broadcast %10 : vector<256x4xi1> to vector<256x4xi1>
    %12 = arith.xori %8, %11 : vector<256x4xi1>
    %13 = arith.andi %12, %6 : vector<256x4xi1>
    %14 = vector.broadcast %2 : i32 to vector<256x4xi32>
    %15 = arith.addi %4, %14 : vector<256x4xi32>
    %16 = arith.select %13, %15, %4 : vector<256x4xi1>, vector<256x4xi32>
    %c1_i32_3 = arith.constant 1 : i32
    %17 = vector.broadcast %c1_i32_3 : i32 to vector<256x4xi32>
    %18 = arith.cmpi sge, %16, %17 : vector<256x4xi32>
    %c14_i32 = arith.constant 14 : i32
    %19 = vector.broadcast %c14_i32 : i32 to vector<256x4xi32>
    %20 = arith.cmpi sle, %16, %19 : vector<256x4xi32>
    %c0 = arith.constant 0 : index
    %c0_4 = arith.constant 0 : index
    %21 = vector.load %arg3[%c0, %c0_4] : memref<1x4xf32, #tpu.memory_space<vmem>>, vector<1x4xf32>
    %c0_5 = arith.constant 0 : index
    %c0_6 = arith.constant 0 : index
    %22 = vector.load %arg5[%c0_5, %c0_6] : memref<1x4xf32, #tpu.memory_space<vmem>>, vector<1x4xf32>
    %c0_7 = arith.constant 0 : index
    %c0_8 = arith.constant 0 : index
    %c0_9 = arith.constant 0 : index
    %23 = vector.load %arg1[%c0_7, %c0_8, %c0_9] : memref<1x256x4xf32, #tpu.memory_space<vmem>>, vector<1x256x4xf32>
    %24 = vector.shape_cast %23 : vector<1x256x4xf32> to vector<256x4xf32>
    %cst = arith.constant 0.000000e+00 : f32
    %25 = vector.broadcast %cst : f32 to vector<17x4xf32>
    %c0_10 = arith.constant 0 : index
    %c0_11 = arith.constant 0 : index
    %26 = vector.load %arg7[%c0_10, %c0_11] : memref<290x4xf32, #tpu.memory_space<vmem>>, vector<17x4xf32>
    tpu.vector_store %arg7[%c0_10, %c0_11], %25 {strides = array<i32>} : memref<290x4xf32, #tpu.memory_space<vmem>>, vector<17x4xf32>,
    %cst_12 = arith.constant 0.000000e+00 : f32
    %27 = vector.broadcast %cst_12 : f32 to vector<17x4xf32>
    %c273 = arith.constant 273 : index
    %c0_13 = arith.constant 0 : index
    %28 = vector.load %arg7[%c273, %c0_13] : memref<290x4xf32, #tpu.memory_space<vmem>>, vector<17x4xf32>
    tpu.vector_store %arg7[%c273, %c0_13], %27 {strides = array<i32>} : memref<290x4xf32, #tpu.memory_space<vmem>>, vector<17x4xf32>,
    %c17 = arith.constant 17 : index
    %c0_14 = arith.constant 0 : index
    %29 = vector.load %arg7[%c17, %c0_14] : memref<290x4xf32, #tpu.memory_space<vmem>>, vector<256x4xf32>
    tpu.vector_store %arg7[%c17, %c0_14], %24 {strides = array<i32>} : memref<290x4xf32, #tpu.memory_space<vmem>>, vector<256x4xf32>,
    %c0_15 = arith.constant 0 : index
    %c0_16 = arith.constant 0 : index
    %30 = vector.load %arg7[%c0_15, %c0_16] : memref<290x4xf32, #tpu.memory_space<vmem>>, vector<256x4xf32>
    %c0_i32_17 = arith.constant 0 : i32
    %31 = arith.sitofp %c0_i32_17 : i32 to f32
    %32 = vector.broadcast %31 : f32 to vector<256x4xf32>
    %33 = arith.select %18, %30, %32 : vector<256x4xi1>, vector<256x4xf32>
    %c0_18 = arith.constant 0 : index
    %c0_19 = arith.constant 0 : index
    %34 = vector.load %arg8[%c0_18, %c0_19] : memref<256x36xf32, #tpu.memory_space<vmem>>, vector<256x4xf32>
    tpu.vector_store %arg8[%c0_18, %c0_19], %33 {strides = array<i32>} : memref<256x36xf32, #tpu.memory_space<vmem>>, vector<256x4xf32>,
    %c1 = arith.constant 1 : index
    %c0_20 = arith.constant 0 : index
    %35 = vector.load %arg7[%c1, %c0_20] : memref<290x4xf32, #tpu.memory_space<vmem>>, vector<256x4xf32>
    %c0_21 = arith.constant 0 : index
    %c4 = arith.constant 4 : index
    %36 = vector.load %arg8[%c0_21, %c4] : memref<256x36xf32, #tpu.memory_space<vmem>>, vector<256x4xf32>
    tpu.vector_store %arg8[%c0_21, %c4], %35 {strides = array<i32>} : memref<256x36xf32, #tpu.memory_space<vmem>>, vector<256x4xf32>,
    %c2 = arith.constant 2 : index
    %c0_22 = arith.constant 0 : index
    %37 = vector.load %arg7[%c2, %c0_22] : memref<290x4xf32, #tpu.memory_space<vmem>>, vector<256x4xf32>
    %c0_i32_23 = arith.constant 0 : i32
    %38 = arith.sitofp %c0_i32_23 : i32 to f32
    %39 = vector.broadcast %38 : f32 to vector<256x4xf32>
    %40 = arith.select %20, %37, %39 : vector<256x4xi1>, vector<256x4xf32>
    %c0_24 = arith.constant 0 : index
    %c8 = arith.constant 8 : index
    %41 = vector.load %arg8[%c0_24, %c8] : memref<256x36xf32, #tpu.memory_space<vmem>>, vector<256x4xf32>
    tpu.vector_store %arg8[%c0_24, %c8], %40 {strides = array<i32>} : memref<256x36xf32, #tpu.memory_space<vmem>>, vector<256x4xf32>,
    %c16 = arith.constant 16 : index
    %c0_25 = arith.constant 0 : index
    %42 = vector.load %arg7[%c16, %c0_25] : memref<290x4xf32, #tpu.memory_space<vmem>>, vector<256x4xf32>
    %c0_i32_26 = arith.constant 0 : i32
    %43 = arith.sitofp %c0_i32_26 : i32 to f32
    %44 = vector.broadcast %43 : f32 to vector<256x4xf32>
    %45 = arith.select %18, %42, %44 : vector<256x4xi1>, vector<256x4xf32>
    %c0_27 = arith.constant 0 : index
    %c12 = arith.constant 12 : index
    %46 = vector.load %arg8[%c0_27, %c12] : memref<256x36xf32, #tpu.memory_space<vmem>>, vector<256x4xf32>
    tpu.vector_store %arg8[%c0_27, %c12], %45 {strides = array<i32>} : memref<256x36xf32, #tpu.memory_space<vmem>>, vector<256x4xf32>,
    %c17_28 = arith.constant 17 : index
    %c0_29 = arith.constant 0 : index
    %47 = vector.load %arg7[%c17_28, %c0_29] : memref<290x4xf32, #tpu.memory_space<vmem>>, vector<256x4xf32>
    %c0_30 = arith.constant 0 : index
    %c16_31 = arith.constant 16 : index
    %48 = vector.load %arg8[%c0_30, %c16_31] : memref<256x36xf32, #tpu.memory_space<vmem>>, vector<256x4xf32>
    tpu.vector_store %arg8[%c0_30, %c16_31], %47 {strides = array<i32>} : memref<256x36xf32, #tpu.memory_space<vmem>>, vector<256x4xf32>,
    %c18 = arith.constant 18 : index
    %c0_32 = arith.constant 0 : index
    %49 = vector.load %arg7[%c18, %c0_32] : memref<290x4xf32, #tpu.memory_space<vmem>>, vector<256x4xf32>
    %c0_i32_33 = arith.constant 0 : i32
    %50 = arith.sitofp %c0_i32_33 : i32 to f32
    %51 = vector.broadcast %50 : f32 to vector<256x4xf32>
    %52 = arith.select %20, %49, %51 : vector<256x4xi1>, vector<256x4xf32>
    %c0_34 = arith.constant 0 : index
    %c20 = arith.constant 20 : index
    %53 = vector.load %arg8[%c0_34, %c20] : memref<256x36xf32, #tpu.memory_space<vmem>>, vector<256x4xf32>
    tpu.vector_store %arg8[%c0_34, %c20], %52 {strides = array<i32>} : memref<256x36xf32, #tpu.memory_space<vmem>>, vector<256x4xf32>,
    %c32 = arith.constant 32 : index
    %c0_35 = arith.constant 0 : index
    %54 = vector.load %arg7[%c32, %c0_35] : memref<290x4xf32, #tpu.memory_space<vmem>>, vector<256x4xf32>
    %c0_i32_36 = arith.constant 0 : i32
    %55 = arith.sitofp %c0_i32_36 : i32 to f32
    %56 = vector.broadcast %55 : f32 to vector<256x4xf32>
    %57 = arith.select %18, %54, %56 : vector<256x4xi1>, vector<256x4xf32>
    %c0_37 = arith.constant 0 : index
    %c24 = arith.constant 24 : index
    %58 = vector.load %arg8[%c0_37, %c24] : memref<256x36xf32, #tpu.memory_space<vmem>>, vector<256x4xf32>
    tpu.vector_store %arg8[%c0_37, %c24], %57 {strides = array<i32>} : memref<256x36xf32, #tpu.memory_space<vmem>>, vector<256x4xf32>,
    %c33 = arith.constant 33 : index
    %c0_38 = arith.constant 0 : index
    %59 = vector.load %arg7[%c33, %c0_38] : memref<290x4xf32, #tpu.memory_space<vmem>>, vector<256x4xf32>
    %c0_39 = arith.constant 0 : index
    %c28 = arith.constant 28 : index
    %60 = vector.load %arg8[%c0_39, %c28] : memref<256x36xf32, #tpu.memory_space<vmem>>, vector<256x4xf32>
    tpu.vector_store %arg8[%c0_39, %c28], %59 {strides = array<i32>} : memref<256x36xf32, #tpu.memory_space<vmem>>, vector<256x4xf32>,
    %c34 = arith.constant 34 : index
    %c0_40 = arith.constant 0 : index
    %61 = vector.load %arg7[%c34, %c0_40] : memref<290x4xf32, #tpu.memory_space<vmem>>, vector<256x4xf32>
    %c0_i32_41 = arith.constant 0 : i32
    %62 = arith.sitofp %c0_i32_41 : i32 to f32
    %63 = vector.broadcast %62 : f32 to vector<256x4xf32>
    %64 = arith.select %20, %61, %63 : vector<256x4xi1>, vector<256x4xf32>
    %c0_42 = arith.constant 0 : index
    %c32_43 = arith.constant 32 : index
    %65 = vector.load %arg8[%c0_42, %c32_43] : memref<256x36xf32, #tpu.memory_space<vmem>>, vector<256x4xf32>
    tpu.vector_store %arg8[%c0_42, %c32_43], %64 {strides = array<i32>} : memref<256x36xf32, #tpu.memory_space<vmem>>, vector<256x4xf32>,
    %c0_44 = arith.constant 0 : index
    %c0_45 = arith.constant 0 : index
    %66 = vector.load %arg8[%c0_44, %c0_45] : memref<256x36xf32, #tpu.memory_space<vmem>>, vector<256x36xf32>
    %c0_46 = arith.constant 0 : index
    %c0_47 = arith.constant 0 : index
    %67 = vector.load %arg2[%c0_46, %c0_47] : memref<36x4xf32, #tpu.memory_space<vmem>>, vector<36x4xf32>
    %cst_48 = arith.constant dense<0.000000e+00> : vector<256x4xf32>
    %68 = tpu.matmul %66, %67, %cst_48 {dimension_numbers = #tpu.dot_dimension_numbers<[1], [0], [0], [1], [0, 0, 1, 1], [], []>} : vector<256x36xf32>, vector<36x4xf32>, vector<256x4xf32> -> vector<256x4xf32>
    %69 = vector.broadcast %21 : vector<1x4xf32> to vector<256x4xf32>
    %70 = arith.addf %68, %69 : vector<256x4xf32>
    %cst_49 = arith.constant 0.000000e+00 : f32
    %71 = vector.broadcast %cst_49 : f32 to vector<256x4xf32>
    %72 = arith.maximumf %70, %71 : vector<256x4xf32>
    %c17_50 = arith.constant 17 : index
    %c0_51 = arith.constant 0 : index
    %73 = vector.load %arg7[%c17_50, %c0_51] : memref<290x4xf32, #tpu.memory_space<vmem>>, vector<256x4xf32>
    tpu.vector_store %arg7[%c17_50, %c0_51], %72 {strides = array<i32>} : memref<290x4xf32, #tpu.memory_space<vmem>>, vector<256x4xf32>,
    %c0_52 = arith.constant 0 : index
    %c0_53 = arith.constant 0 : index
    %74 = vector.load %arg7[%c0_52, %c0_53] : memref<290x4xf32, #tpu.memory_space<vmem>>, vector<256x4xf32>
    %c0_i32_54 = arith.constant 0 : i32
    %75 = arith.sitofp %c0_i32_54 : i32 to f32
    %76 = vector.broadcast %75 : f32 to vector<256x4xf32>
    %77 = arith.select %18, %74, %76 : vector<256x4xi1>, vector<256x4xf32>
    %c0_55 = arith.constant 0 : index
    %c0_56 = arith.constant 0 : index
    %78 = vector.load %arg8[%c0_55, %c0_56] : memref<256x36xf32, #tpu.memory_space<vmem>>, vector<256x4xf32>
    tpu.vector_store %arg8[%c0_55, %c0_56], %77 {strides = array<i32>} : memref<256x36xf32, #tpu.memory_space<vmem>>, vector<256x4xf32>,
    %c1_57 = arith.constant 1 : index
    %c0_58 = arith.constant 0 : index
    %79 = vector.load %arg7[%c1_57, %c0_58] : memref<290x4xf32, #tpu.memory_space<vmem>>, vector<256x4xf32>
    %c0_59 = arith.constant 0 : index
    %c4_60 = arith.constant 4 : index
    %80 = vector.load %arg8[%c0_59, %c4_60] : memref<256x36xf32, #tpu.memory_space<vmem>>, vector<256x4xf32>
    tpu.vector_store %arg8[%c0_59, %c4_60], %79 {strides = array<i32>} : memref<256x36xf32, #tpu.memory_space<vmem>>, vector<256x4xf32>,
    %c2_61 = arith.constant 2 : index
    %c0_62 = arith.constant 0 : index
    %81 = vector.load %arg7[%c2_61, %c0_62] : memref<290x4xf32, #tpu.memory_space<vmem>>, vector<256x4xf32>
    %c0_i32_63 = arith.constant 0 : i32
    %82 = arith.sitofp %c0_i32_63 : i32 to f32
    %83 = vector.broadcast %82 : f32 to vector<256x4xf32>
    %84 = arith.select %20, %81, %83 : vector<256x4xi1>, vector<256x4xf32>
    %c0_64 = arith.constant 0 : index
    %c8_65 = arith.constant 8 : index
    %85 = vector.load %arg8[%c0_64, %c8_65] : memref<256x36xf32, #tpu.memory_space<vmem>>, vector<256x4xf32>
    tpu.vector_store %arg8[%c0_64, %c8_65], %84 {strides = array<i32>} : memref<256x36xf32, #tpu.memory_space<vmem>>, vector<256x4xf32>,
    %c16_66 = arith.constant 16 : index
    %c0_67 = arith.constant 0 : index
    %86 = vector.load %arg7[%c16_66, %c0_67] : memref<290x4xf32, #tpu.memory_space<vmem>>, vector<256x4xf32>
    %c0_i32_68 = arith.constant 0 : i32
    %87 = arith.sitofp %c0_i32_68 : i32 to f32
    %88 = vector.broadcast %87 : f32 to vector<256x4xf32>
    %89 = arith.select %18, %86, %88 : vector<256x4xi1>, vector<256x4xf32>
    %c0_69 = arith.constant 0 : index
    %c12_70 = arith.constant 12 : index
    %90 = vector.load %arg8[%c0_69, %c12_70] : memref<256x36xf32, #tpu.memory_space<vmem>>, vector<256x4xf32>
    tpu.vector_store %arg8[%c0_69, %c12_70], %89 {strides = array<i32>} : memref<256x36xf32, #tpu.memory_space<vmem>>, vector<256x4xf32>,
    %c17_71 = arith.constant 17 : index
    %c0_72 = arith.constant 0 : index
    %91 = vector.load %arg7[%c17_71, %c0_72] : memref<290x4xf32, #tpu.memory_space<vmem>>, vector<256x4xf32>
    %c0_73 = arith.constant 0 : index
    %c16_74 = arith.constant 16 : index
    %92 = vector.load %arg8[%c0_73, %c16_74] : memref<256x36xf32, #tpu.memory_space<vmem>>, vector<256x4xf32>
    tpu.vector_store %arg8[%c0_73, %c16_74], %91 {strides = array<i32>} : memref<256x36xf32, #tpu.memory_space<vmem>>, vector<256x4xf32>,
    %c18_75 = arith.constant 18 : index
    %c0_76 = arith.constant 0 : index
    %93 = vector.load %arg7[%c18_75, %c0_76] : memref<290x4xf32, #tpu.memory_space<vmem>>, vector<256x4xf32>
    %c0_i32_77 = arith.constant 0 : i32
    %94 = arith.sitofp %c0_i32_77 : i32 to f32
    %95 = vector.broadcast %94 : f32 to vector<256x4xf32>
    %96 = arith.select %20, %93, %95 : vector<256x4xi1>, vector<256x4xf32>
    %c0_78 = arith.constant 0 : index
    %c20_79 = arith.constant 20 : index
    %97 = vector.load %arg8[%c0_78, %c20_79] : memref<256x36xf32, #tpu.memory_space<vmem>>, vector<256x4xf32>
    tpu.vector_store %arg8[%c0_78, %c20_79], %96 {strides = array<i32>} : memref<256x36xf32, #tpu.memory_space<vmem>>, vector<256x4xf32>,
    %c32_80 = arith.constant 32 : index
    %c0_81 = arith.constant 0 : index
    %98 = vector.load %arg7[%c32_80, %c0_81] : memref<290x4xf32, #tpu.memory_space<vmem>>, vector<256x4xf32>
    %c0_i32_82 = arith.constant 0 : i32
    %99 = arith.sitofp %c0_i32_82 : i32 to f32
    %100 = vector.broadcast %99 : f32 to vector<256x4xf32>
    %101 = arith.select %18, %98, %100 : vector<256x4xi1>, vector<256x4xf32>
    %c0_83 = arith.constant 0 : index
    %c24_84 = arith.constant 24 : index
    %102 = vector.load %arg8[%c0_83, %c24_84] : memref<256x36xf32, #tpu.memory_space<vmem>>, vector<256x4xf32>
    tpu.vector_store %arg8[%c0_83, %c24_84], %101 {strides = array<i32>} : memref<256x36xf32, #tpu.memory_space<vmem>>, vector<256x4xf32>,
    %c33_85 = arith.constant 33 : index
    %c0_86 = arith.constant 0 : index
    %103 = vector.load %arg7[%c33_85, %c0_86] : memref<290x4xf32, #tpu.memory_space<vmem>>, vector<256x4xf32>
    %c0_87 = arith.constant 0 : index
    %c28_88 = arith.constant 28 : index
    %104 = vector.load %arg8[%c0_87, %c28_88] : memref<256x36xf32, #tpu.memory_space<vmem>>, vector<256x4xf32>
    tpu.vector_store %arg8[%c0_87, %c28_88], %103 {strides = array<i32>} : memref<256x36xf32, #tpu.memory_space<vmem>>, vector<256x4xf32>,
    %c34_89 = arith.constant 34 : index
    %c0_90 = arith.constant 0 : index
    %105 = vector.load %arg7[%c34_89, %c0_90] : memref<290x4xf32, #tpu.memory_space<vmem>>, vector<256x4xf32>
    %c0_i32_91 = arith.constant 0 : i32
    %106 = arith.sitofp %c0_i32_91 : i32 to f32
    %107 = vector.broadcast %106 : f32 to vector<256x4xf32>
    %108 = arith.select %20, %105, %107 : vector<256x4xi1>, vector<256x4xf32>
    %c0_92 = arith.constant 0 : index
    %c32_93 = arith.constant 32 : index
    %109 = vector.load %arg8[%c0_92, %c32_93] : memref<256x36xf32, #tpu.memory_space<vmem>>, vector<256x4xf32>
    tpu.vector_store %arg8[%c0_92, %c32_93], %108 {strides = array<i32>} : memref<256x36xf32, #tpu.memory_space<vmem>>, vector<256x4xf32>,
    %c0_94 = arith.constant 0 : index
    %c0_95 = arith.constant 0 : index
    %110 = vector.load %arg8[%c0_94, %c0_95] : memref<256x36xf32, #tpu.memory_space<vmem>>, vector<256x36xf32>
    %c0_96 = arith.constant 0 : index
    %c0_97 = arith.constant 0 : index
    %111 = vector.load %arg4[%c0_96, %c0_97] : memref<36x4xf32, #tpu.memory_space<vmem>>, vector<36x4xf32>
    %cst_98 = arith.constant dense<0.000000e+00> : vector<256x4xf32>
    %112 = tpu.matmul %110, %111, %cst_98 {dimension_numbers = #tpu.dot_dimension_numbers<[1], [0], [0], [1], [0, 0, 1, 1], [], []>} : vector<256x36xf32>, vector<36x4xf32>, vector<256x4xf32> -> vector<256x4xf32>
    %113 = vector.broadcast %22 : vector<1x4xf32> to vector<256x4xf32>
    %114 = arith.addf %112, %113 : vector<256x4xf32>
    %115 = arith.addf %114, %24 : vector<256x4xf32>
    %c0_99 = arith.constant 0 : index
    %c0_100 = arith.constant 0 : index
    %c0_101 = arith.constant 0 : index
    %116 = vector.load %arg6[%c0_99, %c0_100, %c0_101] : memref<1x256x4xf32, #tpu.memory_space<vmem>>, vector<1x256x4xf32>
    %117 = vector.shape_cast %116 : vector<1x256x4xf32> to vector<256x4xf32>
    %118 = vector.shape_cast %115 : vector<256x4xf32> to vector<1x256x4xf32>
    tpu.vector_store %arg6[%c0_99, %c0_100, %c0_101], %118 {strides = array<i32>} : memref<1x256x4xf32, #tpu.memory_space<vmem>>, vector<1x256x4xf32>,
    return
  }
  func.func @transform_0(%arg0: i32) -> (i32, i32, i32) {
    %c0_i32 = arith.constant 0 : i32
    %c0_i32_0 = arith.constant 0 : i32
    %c0_i32_1 = arith.constant 0 : i32
    return %arg0, %c0_i32, %c0_i32_0 : i32, i32, i32
  }
  func.func @transform_1(%arg0: i32) -> (i32, i32) {
    %c0_i32 = arith.constant 0 : i32
    %c0_i32_0 = arith.constant 0 : i32
    %c0_i32_1 = arith.constant 0 : i32
    return %c0_i32, %c0_i32_0 : i32, i32
  }
  func.func @transform_2(%arg0: i32) -> (i32, i32) {
    %c0_i32 = arith.constant 0 : i32
    %c0_i32_0 = arith.constant 0 : i32
    %c0_i32_1 = arith.constant 0 : i32
    return %c0_i32, %c0_i32_0 : i32, i32
  }
  func.func @transform_3(%arg0: i32) -> (i32, i32) {
    %c0_i32 = arith.constant 0 : i32
    %c0_i32_0 = arith.constant 0 : i32
    %c0_i32_1 = arith.constant 0 : i32
    return %c0_i32, %c0_i32_0 : i32, i32
  }
  func.func @transform_4(%arg0: i32) -> (i32, i32) {
    %c0_i32 = arith.constant 0 : i32
    %c0_i32_0 = arith.constant 0 : i32
    %c0_i32_1 = arith.constant 0 : i32
    return %c0_i32, %c0_i32_0 : i32, i32
  }
  func.func @transform_5(%arg0: i32) -> (i32, i32, i32) {
    %c0_i32 = arith.constant 0 : i32
    %c0_i32_0 = arith.constant 0 : i32
    %c0_i32_1 = arith.constant 0 : i32
    return %arg0, %c0_i32, %c0_i32_0 : i32, i32, i32
  }
}

</mosaic_0001>

<bundles_post_ra>
// kernel: tpu_custom_call.1
= control target key start
LH: loop header
LB: loop body
LE: loop exit
PB: predicated region body
PF: predicated region fallthrough
CT: control target
= control target key end

     0   :  { %s5639_s18 = smov 0   ;;  %s8326_s0 = inlined_call_operand.vmem [shape: f32[2,256,4], index: 0, kind: input, shape index: {}]   ;;  %s8327_s1 = inlined_call_operand.vmem [shape: f32[36,4], index: 1, kind: input, shape index: {}]   ;;  %s8328_s2 = inlined_call_operand.vmem [shape: f32[1,4], index: 2, kind: input, shape index: {}]   ;;  %s8329_s3 = inlined_call_operand.vmem [shape: f32[36,4], index: 3, kind: input, shape index: {}]   ;;  %s8330_s4 = inlined_call_operand.vmem [shape: f32[1,4], index: 4, kind: input, shape index: {}]   ;;  %s8331_s5 = inlined_call_operand.vmem [shape: f32[2,256,4], index: 5, kind: output, shape index: {}]  }
   0x1 LB: > { %s5291_s19 = sadd.s32 4294967295, %s5598_s18   ;;  %p5295_p0 = scmp.ge.s32.totalorder %s5598_s18, 1  ;;  %s5598_s18 = sphi %s5639_s18, %s15_s18  }
   0x2   : > { %p187_p1 = scmp.lt.s32.totalorder %s5598_s18, 3 }
   0x4   : > { %p188_p2 = pnand %p5295_p0, %p187_p1 }
   0x6   : > { %191 = sbr.rel (%p188_p2) target bundleno = 1630 (0x65e), region = 40 }
   0xb   : > { %vm8363_vm0 = vcmask 31744   ;;  %p215_p3 = scmp.lt.s32.totalorder %s5291_s19, 1  ;;  %vm743_vm1 = vcmask 24576   ;;  %v5600_v0 = vmov 0.0   ;;  %s5601_s24 = smov 4   ;;  %v225_v31 = vlaneseq }
   0xc   : > { %741 = vst.msk [vmem:[#allocation2] sm:$0xff] %vm8363_vm0, %v5600_v0  ;;  %742 = vst.msk [vmem:[#allocation2 + $0x8] sm:$0xff] %vm8363_vm0, %v5600_v0  ;;  %v8551_v57 = vmov 0  ;;  %s5602_s25 = smov 8   ;;  %s5603_s26 = smov 12  }
   0xd   : > { %745 = vst.msk [vmem:[#allocation2 + $0x111] sm:$0xff] %vm8363_vm0, %v5600_v0  ;;  %746 = vst.msk [vmem:[#allocation2 + $0x119] sm:$0xff] %vm8363_vm0, %v5600_v0  ;;  %s9177_s19 = smov (!%p215_p3, %s5291_s19), 1  ;;  %v5812_v40 = vshrl.u32 %v225_v31, 7  ;;  %s5604_s27 = smov 16  }
   0xe   : > { %744 = vst.msk [vmem:[#allocation2 + $0x10] sm:$0x1] %vm743_vm1, %v5600_v0  ;;  %747 = vst.msk [vmem:[#allocation2 + $0x121] sm:$0x1] %vm743_vm1, %v5600_v0  ;;  %s5370_s20 = sshll.u32 %s9177_s19, 8  ;;  %s5605_s28 = smov 20  }
   0xf   : > { %s5659_s23 = scalar_lea.vmem %s8326_s0, %s5370_s20  ;;  %v228_v42 = vadd.s32 16, %v5812_v40  ;;  %v230_v45 = vadd.s32 32, %v5812_v40  ;;  %v262_v46 = vand.u32 15, %v5812_v40  ;;  %v232_v48 = vadd.s32 48, %v5812_v40  ;;  %s5606_s29 = smov 24  }
  0x10   : > { %v5662_v1 = vld [vmem:[%s5659_s23] sm:$0xff]  ;;  %v5665_v2 = vld [vmem:[%s5659_s23 + $0x8] sm:$0xff]  ;;  %v5668_v3 = vld [vmem:[%s5659_s23 + $0x10] sm:$0xff]  ;;  %v234_v50 = vadd.s32 64, %v5812_v40  ;;  %v236_v51 = vadd.s32 80, %v5812_v40  ;;  %v238_v52 = vadd.s32 96, %v5812_v40 }
  0x11   : > { %8521 = vst [vmem:[#allocation4_spill] sm:$0xff] %v5662_v1  ;;  %8522 = vst [vmem:[#allocation5_spill] sm:$0xff] %v5665_v2  ;;  %v5677_v4 = vld [vmem:[%s5659_s23 + $0x18] sm:$0xff]  ;;  %v5680_v5 = vld [vmem:[%s5659_s23 + $0x20] sm:$0xff]  ;;  %v276_v47 = vand.u32 15, %v228_v42  ;;  %v240_v53 = vadd.s32 112, %v5812_v40 }
  0x12   : > { %8523 = vst [vmem:[#allocation6_spill] sm:$0xff] %v5668_v3  ;;  %748 = vst.msk [vmem:[#allocation2 + $0x11] sm:$0xff] %vm8363_vm0, %v5662_v1  ;;  %v5683_v6 = vld [vmem:[%s5659_s23 + $0x28] sm:$0xff]  ;;  %v5692_v9 = vld [vmem:[%s5659_s23 + $0x30] sm:$0xff]  ;;  %v290_v55 = vand.u32 15, %v230_v45  ;;  %v242_v56 = vadd.s32 128, %v5812_v40 }
  0x13   : > { %749 = vst.msk [vmem:[#allocation2 + $0x19] sm:$0xff] %vm8363_vm0, %v5665_v2  ;;  %750 = vst.msk [vmem:[#allocation2 + $0x21] sm:$0xff] %vm8363_vm0, %v5668_v3  ;;  %v876_v7 = vld [vmem:[#allocation2 + $0x1] sm:$0xff]  ;;  %v5698_v10 = vld [vmem:[%s5659_s23 + $0x38] sm:$0xff]  ;;  %vm5834_vm2 = vcmp.ge.s32.totalorder %v262_v46, 1  ;;  %vm5838_vm3 = vcmp.ge.s32.totalorder %v276_v47, 1 }
  0x14   : > { %8524 = vst [vmem:[#allocation7_spill] sm:$0xff] %v5677_v4  ;;  %8525 = vst [vmem:[#allocation8_spill] sm:$0xff] %v5680_v5  ;;  %940 = vrot.lane.b32.xlu0 %v876_v7, %s5601_s24  ;;  %v5701_v11 = vld [vmem:[%s5659_s23 + $0x40] sm:$0xff]  ;;  %v5704_v12 = vld [vmem:[%s5659_s23 + $0x48] sm:$0xff]  ;;  %v8552_v57 = vsel %vm5834_vm2, 4294967295, %v8551_v57  ;;  %v304_v59 = vand.u32 15, %v232_v48 }
  0x15   : > { %8526 = vst [vmem:[#allocation9_spill] sm:$0xff] %v5683_v6  ;;  %v877_v8 = vld [vmem:[#allocation2 + $0x9] sm:$0xff]  ;;  %751 = vst.msk [vmem:[#allocation2 + $0x29] sm:$0xff] %vm8363_vm0, %v5677_v4  ;;  %v5716_v14 = vld [vmem:[%s5659_s23 + $0x58] sm:$0xff]  ;;  %v244_v60 = vadd.s32 144, %v5812_v40  ;;  %v318_v62 = vand.u32 15, %v234_v50 }
  0x16   : > { %752 = vst.msk [vmem:[#allocation2 + $0x31] sm:$0xff] %vm8363_vm0, %v5680_v5  ;;  %753 = vst.msk [vmem:[#allocation2 + $0x39] sm:$0xff] %vm8363_vm0, %v5683_v6  ;;  %v5713_v13 = vld [vmem:[%s5659_s23 + $0x50] sm:$0xff]  ;;  %v5719_v15 = vld [vmem:[%s5659_s23 + $0x60] sm:$0xff]  ;;  %v332_v63 = vand.u32 15, %v236_v51  ;;  %vm5852_vm4 = vcmp.ge.s32.totalorder %v290_v55, 1 }
  0x17   : > { %8527 = vst [vmem:[#allocation10_spill] sm:$0xff] %v5692_v9  ;;  %754 = vst.msk [vmem:[#allocation2 + $0x41] sm:$0xff] %vm8363_vm0, %v5692_v9  ;;  %v5728_v16 = vld [vmem:[%s5659_s23 + $0x68] sm:$0xff]  ;;  %v5731_v17 = vld [vmem:[%s5659_s23 + $0x70] sm:$0xff]  ;;  %vm5862_vm5 = vcmp.ge.s32.totalorder %v304_v59, 1  ;;  %v388_v45 = vand.u32 15, %v244_v60 }
  0x18   : > { %8528 = vst [vmem:[#allocation11_spill] sm:$0xff] %v5698_v10  ;;  %8529 = vst [vmem:[#allocation12_spill] sm:$0xff] %v5701_v11  ;;  %v5734_v18 = vld [vmem:[%s5659_s23 + $0x78] sm:$0xff]  ;;  %v5743_v19 = vld [vmem:[%s5659_s23 + $0x80] sm:$0xff]  ;;  %942 = vrot.lane.b32.xlu0 %v877_v8, %s5601_s24  ;;  %v346_v8 = vand.u32 15, %v238_v52  ;;  %vm5872_vm6 = vcmp.ge.s32.totalorder %v318_v62, 1 }
  0x19   : > { %8530 = vst [vmem:[#allocation13_spill] sm:$0xff] %v5704_v12  ;;  %755 = vst.msk [vmem:[#allocation2 + $0x49] sm:$0xff] %vm8363_vm0, %v5698_v10  ;;  %v5746_v20 = vld [vmem:[%s5659_s23 + $0x88] sm:$0xff]  ;;  %v5749_v21 = vld [vmem:[%s5659_s23 + $0x90] sm:$0xff]  ;;  %vm5876_vm7 = vcmp.ge.s32.totalorder %v332_v63, 1  ;;  %v248_v52 = vadd.s32 176, %v5812_v40 }
  0x1a   : > { %756 = vst.msk [vmem:[#allocation2 + $0x51] sm:$0xff] %vm8363_vm0, %v5701_v11  ;;  %757 = vst.msk [vmem:[#allocation2 + $0x59] sm:$0xff] %vm8363_vm0, %v5704_v12  ;;  %v5759_v22 = vld [vmem:[%s5659_s23 + $0x98] sm:$0xff]  ;;  %v5762_v23 = vld [vmem:[%s5659_s23 + $0xa0] sm:$0xff]  ;;  %vm5894_vm8 = vcmp.ge.s32.totalorder %v346_v8, 1  ;;  %vm5936_vm11 = vcmp.ge.s32.totalorder %v388_v45, 1 }
  0x1b   : > { %8531 = vst [vmem:[#allocation14_spill] sm:$0xff] %v5713_v13  ;;  %8532 = vst [vmem:[#allocation15_spill] sm:$0xff] %v5716_v14  ;;  %v5765_v24 = vld [vmem:[%s5659_s23 + $0xa8] sm:$0xff]  ;;  %v878_v25 = vld [vmem:[#allocation2 + $0x11] sm:$0xff]  ;;  %v229_v12 = vadd.s32 24, %v5812_v40  ;;  %v8592_v9 = vmov 0 }
  0x1c   : > { %8533 = vst [vmem:[#allocation16_spill] sm:$0xff] %v5719_v15  ;;  %758 = vst.msk [vmem:[#allocation2 + $0x61] sm:$0xff] %vm8363_vm0, %v5713_v13  ;;  %v880_v26 = vld [vmem:[#allocation2 + $0x21] sm:$0xff]  ;;  %944 = vrot.lane.b32.xlu1 %v878_v25, %s5601_s24  ;;  %v879_v27 = vld [vmem:[#allocation2 + $0x19] sm:$0xff]  ;;  %v360_v25 = vand.u32 15, %v240_v53  ;;  %s5607_s30 = smov 28  }
  0x1d   : > { %759 = vst.msk [vmem:[#allocation2 + $0x69] sm:$0xff] %vm8363_vm0, %v5716_v14  ;;  %760 = vst.msk [vmem:[#allocation2 + $0x71] sm:$0xff] %vm8363_vm0, %v5719_v15  ;;  %v5775_v28 = vld [vmem:[%s5659_s23 + $0xb0] sm:$0xff]  ;;  %v5778_v29 = vld [vmem:[%s5659_s23 + $0xb8] sm:$0xff]  ;;  %948 = vrot.lane.b32.xlu0 %v880_v26, %s5601_s24  ;;  %v246_v26 = vadd.s32 160, %v5812_v40  ;;  %v283_v10 = vand.u32 15, %v229_v12 }
  0x1e   : > { %8534 = vst [vmem:[#allocation17_spill] sm:$0xff] %v5728_v16  ;;  %8535 = vst [vmem:[#allocation18_spill] sm:$0xff] %v5731_v17  ;;  %v882_v30 = vld [vmem:[#allocation2 + $0x31] sm:$0xff]  ;;  %v881_v32 = vld [vmem:[#allocation2 + $0x29] sm:$0xff]  ;;  %vm5898_vm9 = vcmp.ge.s32.totalorder %v360_v25, 1  ;;  %v8569_v25 = vmov 0 }
  0x1f   : > { %8536 = vst [vmem:[#allocation19_spill] sm:$0xff] %v5734_v18  ;;  %761 = vst.msk [vmem:[#allocation2 + $0x79] sm:$0xff] %vm8363_vm0, %v5728_v16  ;;  %v884_v33 = vld [vmem:[#allocation2 + $0x41] sm:$0xff]  ;;  %v5794_v36 = vld [vmem:[%s5659_s23 + $0xd0] sm:$0xff]  ;;  %v402_v51 = vand.u32 15, %v246_v26  ;;  %v416_v26 = vand.u32 15, %v248_v52 }
  0x20   : > { %762 = vst.msk [vmem:[#allocation2 + $0x81] sm:$0xff] %vm8363_vm0, %v5731_v17  ;;  %763 = vst.msk [vmem:[#allocation2 + $0x89] sm:$0xff] %vm8363_vm0, %v5734_v18  ;;  %946 = vrot.lane.b32.xlu1 %v879_v27, %s5601_s24  ;;  %v5788_v34 = vld [vmem:[%s5659_s23 + $0xc0] sm:$0xff]  ;;  %v5791_v35 = vld [vmem:[%s5659_s23 + $0xc8] sm:$0xff]  ;;  %v256_v18 = vadd.s32 240, %v5812_v40  ;;  %v8588_v16 = vmov 0 }
  0x21   : > { %8537 = vst [vmem:[#allocation20_spill] sm:$0xff] %v5743_v19  ;;  %8538 = vst [vmem:[#allocation21_spill] sm:$0xff] %v5746_v20  ;;  %952 = vrot.lane.b32.xlu0 %v882_v30, %s5601_s24  ;;  %v5804_v37 = vld [vmem:[%s5659_s23 + $0xd8] sm:$0xff]  ;;  %v5807_v38 = vld [vmem:[%s5659_s23 + $0xe0] sm:$0xff]  ;;  %vm5955_vm12 = vcmp.ge.s32.totalorder %v402_v51, 1  ;;  %vm5988_vm13 = vcmp.ge.s32.totalorder %v416_v26, 1 }
  0x22   : > { %8539 = vst [vmem:[#allocation22_spill] sm:$0xff] %v5749_v21  ;;  %764 = vst.msk [vmem:[#allocation2 + $0x91] sm:$0xff] %vm8363_vm0, %v5743_v19  ;;  %v5810_v39 = vld [vmem:[%s5659_s23 + $0xe8] sm:$0xff]  ;;  %v883_v41 = vld [vmem:[#allocation2 + $0x39] sm:$0xff]  ;;  %s5608_s16 = smov 32  }
  0x23   : > { %765 = vst.msk [vmem:[#allocation2 + $0x99] sm:$0xff] %vm8363_vm0, %v5746_v20  ;;  %766 = vst.msk [vmem:[#allocation2 + $0xa1] sm:$0xff] %vm8363_vm0, %v5749_v21  ;;  %v886_v43 = vld [vmem:[#allocation2 + $0x51] sm:$0xff]  ;;  %v885_v44 = vld [vmem:[#allocation2 + $0x49] sm:$0xff]  ;;  %v254_v20 = vadd.s32 224, %v5812_v40 }
  0x24   : > { %8540 = vst [vmem:[#allocation23_spill] sm:$0xff] %v5759_v22  ;;  %8541 = vst [vmem:[#allocation24_spill] sm:$0xff] %v5762_v23  ;;  %950 = vrot.lane.b32.xlu1 %v881_v32, %s5601_s24  ;;  %v888_v49 = vld [vmem:[#allocation2 + $0x61] sm:$0xff]  ;;  %v887_v54 = vld [vmem:[#allocation2 + $0x59] sm:$0xff] }
  0x25   : > { %8542 = vst [vmem:[#allocation25_spill] sm:$0xff] %v5765_v24  ;;  %767 = vst.msk [vmem:[#allocation2 + $0xa9] sm:$0xff] %vm8363_vm0, %v5759_v22  ;;  %956 = vrot.lane.b32.xlu0 %v884_v33, %s5601_s24  ;;  %v890_v61 = vld [vmem:[#allocation2 + $0x71] sm:$0xff]  ;;  %v780_v0 = vld [vmem:[#allocation2] sm:$0xff] }
  0x26   : > { %768 = vst.msk [vmem:[#allocation2 + $0xb1] sm:$0xff] %vm8363_vm0, %v5762_v23  ;;  %769 = vst.msk [vmem:[#allocation2 + $0xb9] sm:$0xff] %vm8363_vm0, %v5765_v24  ;;  %v5844_v7 = vld [vmem:[#allocation2 + $0x10] sm:$0xff]  ;;  %v812_v30 = vsel %vm5834_vm2, %v780_v0, 0.0  ;;  %v781_v32 = vld [vmem:[#allocation2 + $0x8] sm:$0xff] }
  0x27   : > { %8543 = vst [vmem:[#allocation26_spill] sm:$0xff] %v5775_v28  ;;  %8544 = vst [vmem:[#allocation27_spill] sm:$0xff] %v5778_v29  ;;  %v889_v27 = vld [vmem:[#allocation2 + $0x69] sm:$0xff]  ;;  %v814_v31 = vsel %vm5838_vm3, %v5844_v7, 0.0  ;;  %v892_v42 = vld [vmem:[#allocation2 + $0x81] sm:$0xff] }
  0x28   : > { %770 = vst.msk [vmem:[#allocation2 + $0xc1] sm:$0xff] %vm8363_vm0, %v5775_v28  ;;  %771 = vst.msk [vmem:[#allocation2 + $0xc9] sm:$0xff] %vm8363_vm0, %v5778_v29  ;;  %954 = vrot.lane.b32.xlu1 %v883_v41, %s5601_s24  ;;  %v374_v41 = vand.u32 15, %v242_v56  ;;  %v891_v46 = vld [vmem:[#allocation2 + $0x79] sm:$0xff]  ;;  %v5870_v48 = vld [vmem:[#allocation2 + $0x28] sm:$0xff]  ;;  %v250_v28 = vadd.s32 192, %v5812_v40 }
  0x29   : > { %8545 = vst [vmem:[#allocation28_spill] sm:$0xff] %v5788_v34  ;;  %8546 = vst [vmem:[#allocation29_spill] sm:$0xff] %v5791_v35  ;;  %960 = vrot.lane.b32.xlu0 %v886_v43, %s5601_s24  ;;  %v5860_v43 = vld [vmem:[#allocation2 + $0x18] sm:$0xff]  ;;  %v5868_v47 = vld [vmem:[#allocation2 + $0x20] sm:$0xff] }
  0x2a   : > { %8547 = vst [vmem:[#allocation30_spill] sm:$0xff] %v5794_v36  ;;  %772 = vst.msk [vmem:[#allocation2 + $0xd1] sm:$0xff] %vm8363_vm0, %v5788_v34  ;;  %v816_v53 = vsel %vm5852_vm4, %v5868_v47, 0.0  ;;  %v5890_v55 = vld [vmem:[#allocation2 + $0x30] sm:$0xff]  ;;  %v5892_v56 = vld [vmem:[#allocation2 + $0x38] sm:$0xff]  ;;  %vm5916_vm10 = vcmp.ge.s32.totalorder %v374_v41, 1 }
  0x2b   : > { %773 = vst.msk [vmem:[#allocation2 + $0xd9] sm:$0xff] %vm8363_vm0, %v5791_v35  ;;  %774 = vst.msk [vmem:[#allocation2 + $0xe1] sm:$0xff] %vm8363_vm0, %v5794_v36  ;;  %v818_v62 = vsel %vm5862_vm5, %v5890_v55, 0.0  ;;  %v5910_v63 = vld [vmem:[#allocation2 + $0x40] sm:$0xff]  ;;  %v5912_v0 = vld [vmem:[#allocation2 + $0x48] sm:$0xff]  ;;  %v8570_v25 = vsel %vm5916_vm10, 4294967295, %v8569_v25 }
  0x2c   : > { %8548 = vst [vmem:[#allocation31_spill] sm:$0xff] %v5804_v37  ;;  %8549 = vst [vmem:[#allocation32_spill] sm:$0xff] %v5807_v38  ;;  %958 = vrot.lane.b32.xlu1 %v885_v44, %s5601_s24  ;;  %v5914_v8 = vld [vmem:[#allocation2 + $0x50] sm:$0xff]  ;;  %v5934_v41 = vld [vmem:[#allocation2 + $0x68] sm:$0xff]  ;;  %v8576_v34 = vmov 0 }
  0x2d   : > { %8550 = vst [vmem:[#allocation33_spill] sm:$0xff] %v5810_v39  ;;  %775 = vst.msk [vmem:[#allocation2 + $0xe9] sm:$0xff] %vm8363_vm0, %v5804_v37  ;;  %964 = vrot.lane.b32.xlu0 %v888_v49, %s5601_s24  ;;  %v893_v52 = vld [vmem:[#allocation2 + $0x89] sm:$0xff]  ;;  %v5951_v45 = vld [vmem:[#allocation2 + $0x78] sm:$0xff]  ;;  %v8577_v34 = vsel %vm5988_vm13, 4294967295, %v8576_v34 }
  0x2e   : > { %776 = vst.msk [vmem:[#allocation2 + $0xf1] sm:$0xff] %vm8363_vm0, %v5807_v38  ;;  %777 = vst.msk [vmem:[#allocation2 + $0xf9] sm:$0xff] %vm8363_vm0, %v5810_v39  ;;  %v5969_v39 = vld [vmem:[#allocation2 + $0x88] sm:$0xff]  ;;  %v5971_v51 = vld [vmem:[#allocation2 + $0x90] sm:$0xff] }
  0x2f   : > { %8553 = vst [vmem:[#allocation34_spill] sm:$0xff] %v8552_v57  ;;  %844 = vst.msk [vmem:[#allocation3] sm:$0xff] %vm8363_vm0, %v812_v30  ;;  %v822_v30 = vsel %vm5876_vm7, %v5914_v8, 0.0  ;;  %v5973_v36 = vld [vmem:[#allocation2 + $0x98] sm:$0xff]  ;;  %v5986_v37 = vld [vmem:[#allocation2 + $0xa8] sm:$0xff] }
  0x30   : > { %962 = vrot.lane.b32.xlu1 %v887_v54, %s5601_s24  ;;  %846 = vst.msk [vmem:[#allocation3 + $0x10] sm:$0xff] %vm8363_vm0, %v814_v31  ;;  %845 = vst.msk [vmem:[#allocation3 + $0x8] sm:$0xff] %vm8363_vm0, %v781_v32  ;;  %v5888_v54 = vld [vmem:[%s5659_s23 + $0xf0] sm:$0xff]  ;;  %v5930_v31 = vld [vmem:[#allocation2 + $0x58] sm:$0xff] }
  0x31   : > { %968 = vrot.lane.b32.xlu0 %v890_v61, %s5601_s24  ;;  %847 = vst.msk [vmem:[#allocation3 + $0x18] sm:$0xff] %vm8363_vm0, %v5860_v43  ;;  %849 = vst.msk [vmem:[#allocation3 + $0x28] sm:$0xff] %vm8363_vm0, %v5870_v48  ;;  %v894_v61 = vld [vmem:[#allocation2 + $0x91] sm:$0xff]  ;;  %v5932_v32 = vld [vmem:[#allocation2 + $0x60] sm:$0xff] }
  0x32   : > { %8564 = vst [vmem:[#allocation35_spill] sm:$0xff] %v5888_v54  ;;  %848 = vst.msk [vmem:[#allocation3 + $0x20] sm:$0xff] %vm8363_vm0, %v816_v53  ;;  %v824_v53 = vsel %vm5894_vm8, %v5932_v32, 0.0  ;;  %v6004_v35 = vld [vmem:[#allocation2 + $0xb8] sm:$0xff]  ;;  %v896_v29 = vld [vmem:[#allocation2 + $0xa1] sm:$0xff] }
  0x33   : > { %778 = vst.msk [vmem:[#allocation2 + $0x101] sm:$0xff] %vm8363_vm0, %v5888_v54  ;;  %851 = vst.msk [vmem:[#allocation3 + $0x38] sm:$0xff] %vm8363_vm0, %v5892_v56  ;;  %v5953_v54 = vld [vmem:[#allocation2 + $0x80] sm:$0xff]  ;;  %v6015_v24 = vld [vmem:[#allocation2 + $0xc8] sm:$0xff] }
  0x34   : > { %966 = vrot.lane.b32.xlu1 %v889_v27, %s5601_s24  ;;  %850 = vst.msk [vmem:[#allocation3 + $0x30] sm:$0xff] %vm8363_vm0, %v818_v62  ;;  %v820_v27 = vsel %vm5872_vm6, %v5910_v63, 0.0  ;;  %853 = vst.msk [vmem:[#allocation3 + $0x48] sm:$0xff] %vm8363_vm0, %v5912_v0  ;;  %v5949_v62 = vld [vmem:[#allocation2 + $0x70] sm:$0xff]  ;;  %v828_v38 = vsel %vm5916_vm10, %v5953_v54, 0.0  ;;  %v6013_v23 = vld [vmem:[#allocation2 + $0xc0] sm:$0xff] }
  0x35   : > { %972 = vrot.lane.b32.xlu0 %v892_v42, %s5601_s24  ;;  %v8571_v42 = vmov 0  ;;  %852 = vst.msk [vmem:[#allocation3 + $0x40] sm:$0xff] %vm8363_vm0, %v820_v27  ;;  %854 = vst.msk [vmem:[#allocation3 + $0x50] sm:$0xff] %vm8363_vm0, %v822_v30  ;;  %v8573_v27 = vmov 0  ;;  %v826_v30 = vsel %vm5898_vm9, %v5949_v62, 0.0  ;;  %v895_v21 = vld [vmem:[#allocation2 + $0x99] sm:$0xff] }
  0x36   : > { %v8572_v42 = vsel %vm5936_vm11, 4294967295, %v8571_v42  ;;  %855 = vst.msk [vmem:[#allocation3 + $0x58] sm:$0xff] %vm8363_vm0, %v5930_v31  ;;  %857 = vst.msk [vmem:[#allocation3 + $0x68] sm:$0xff] %vm8363_vm0, %v5934_v41  ;;  %v8574_v27 = vsel %vm5955_vm12, 4294967295, %v8573_v27  ;;  %v6031_v19 = vld [vmem:[#allocation2 + $0xd0] sm:$0xff]  ;;  %v900_v17 = vld [vmem:[#allocation2 + $0xc1] sm:$0xff] }
  0x37   : > { %8575 = vst [vmem:[#allocation36_spill] sm:$0xff] %v8574_v27  ;;  %856 = vst.msk [vmem:[#allocation3 + $0x60] sm:$0xff] %vm8363_vm0, %v824_v53  ;;  %v5984_v53 = vld [vmem:[#allocation2 + $0xa0] sm:$0xff]  ;;  %v6056_v15 = vld [vmem:[#allocation2 + $0xe8] sm:$0xff] }
  0x38   : > { %970 = vrot.lane.b32.xlu1 %v891_v46, %s5601_s24  ;;  %859 = vst.msk [vmem:[#allocation3 + $0x78] sm:$0xff] %vm8363_vm0, %v5951_v45  ;;  %858 = vst.msk [vmem:[#allocation3 + $0x70] sm:$0xff] %vm8363_vm0, %v826_v30  ;;  %v830_v46 = vsel %vm5936_vm11, %v5971_v51, 0.0  ;;  %v5992_v30 = vld [vmem:[#allocation2 + $0xb0] sm:$0xff]  ;;  %v6072_v13 = vld [vmem:[#allocation2 + $0xf8] sm:$0xff] }
  0x39   : > { %860 = vst.msk [vmem:[#allocation3 + $0x80] sm:$0xff] %vm8363_vm0, %v828_v38  ;;  %861 = vst.msk [vmem:[#allocation3 + $0x88] sm:$0xff] %vm8363_vm0, %v5969_v39  ;;  %976 = vrot.lane.b32.xlu0 %v894_v61, %s5601_s24  ;;  %v832_v38 = vsel %vm5955_vm12, %v5984_v53, 0.0  ;;  %v834_v26 = vsel %vm5988_vm13, %v5992_v30, 0.0  ;;  %v252_v61 = vadd.s32 208, %v5812_v40  ;;  %v901_v14 = vld [vmem:[#allocation2 + $0xc9] sm:$0xff] }
  0x3a   : > { %863 = vst.msk [vmem:[#allocation3 + $0x98] sm:$0xff] %vm8363_vm0, %v5973_v36  ;;  %8578 = vst [vmem:[#allocation37_spill] sm:$0xff] %v8577_v34  ;;  %v6082_v11 = vld [vmem:[%s5659_s23 + $0xf8] sm:$0xff]  ;;  %v1073_v6 = vld [vmem:[#allocation2 + $0x22] sm:$0xff] }
  0x3b   : > { %862 = vst.msk [vmem:[#allocation3 + $0x90] sm:$0xff] %vm8363_vm0, %v830_v46  ;;  %865 = vst.msk [vmem:[#allocation3 + $0xa8] sm:$0xff] %vm8363_vm0, %v5986_v37  ;;  %v430_v46 = vand.u32 15, %v250_v28  ;;  %v444_v22 = vand.u32 15, %v252_v61  ;;  %v6039_v61 = vld [vmem:[#allocation2 + $0xd8] sm:$0xff]  ;;  %v1077_v4 = vld [vmem:[#allocation2 + $0x42] sm:$0xff] }
  0x3c   : > { %864 = vst.msk [vmem:[#allocation3 + $0xa0] sm:$0xff] %vm8363_vm0, %v832_v38  ;;  %866 = vst.msk [vmem:[#allocation3 + $0xb0] sm:$0xff] %vm8363_vm0, %v834_v26  ;;  %974 = vrot.lane.b32.xlu1 %v893_v52, %s5601_s24  ;;  %v8579_v38 = vmov 0  ;;  %v898_v26 = vld [vmem:[#allocation2 + $0xb1] sm:$0xff]  ;;  %v8582_v52 = vmov 0  ;;  %v1081_v2 = vld [vmem:[#allocation2 + $0x62] sm:$0xff] }
  0x3d   : > { %867 = vst.msk [vmem:[#allocation3 + $0xb8] sm:$0xff] %vm8363_vm0, %v6004_v35  ;;  %869 = vst.msk [vmem:[#allocation3 + $0xc8] sm:$0xff] %vm8363_vm0, %v6015_v24  ;;  %980 = vrot.lane.b32.xlu0 %v896_v29, %s5601_s24  ;;  %vm6020_vm14 = vcmp.ge.s32.totalorder %v430_v46, 1  ;;  %vm6027_vm15 = vcmp.ge.s32.totalorder %v444_v22, 1  ;;  %v897_v46 = vld [vmem:[#allocation2 + $0xa9] sm:$0xff]  ;;  %v458_v22 = vand.u32 15, %v254_v20 }
  0x3e   : > { %v8580_v38 = vsel %vm6020_vm14, 4294967295, %v8579_v38  ;;  %v836_v28 = vsel %vm6020_vm14, %v6013_v23, 0.0  ;;  %v8583_v52 = vsel %vm6027_vm15, 4294967295, %v8582_v52  ;;  %v838_v29 = vsel %vm6027_vm15, %v6031_v19, 0.0  ;;  %871 = vst.msk [vmem:[#allocation3 + $0xd8] sm:$0xff] %vm8363_vm0, %v6039_v61  ;;  %v899_v20 = vld [vmem:[#allocation2 + $0xb9] sm:$0xff] }
  0x3f   : > { %8581 = vst [vmem:[#allocation38_spill] sm:$0xff] %v8580_v38  ;;  %8584 = vst [vmem:[#allocation39_spill] sm:$0xff] %v8583_v52  ;;  %vm6045_vm1 = vcmp.ge.s32.totalorder %v458_v22, 1  ;;  %v902_v22 = vld [vmem:[#allocation2 + $0xd1] sm:$0xff]  ;;  %v1938_v57 = vld [vmem:[#allocation2 + $0x28] sm:$0xff] }
  0x40   : > { %978 = vrot.lane.b32.xlu1 %v895_v21, %s5601_s24  ;;  %868 = vst.msk [vmem:[#allocation3 + $0xc0] sm:$0xff] %vm8363_vm0, %v836_v28  ;;  %870 = vst.msk [vmem:[#allocation3 + $0xd0] sm:$0xff] %vm8363_vm0, %v838_v29  ;;  %v8585_v21 = vmov 0  ;;  %v6049_v28 = vld [vmem:[#allocation2 + $0xe0] sm:$0xff]  ;;  %v1071_v5 = vld [vmem:[#allocation2 + $0x12] sm:$0xff] }
  0x41   : > { %984 = vrot.lane.b32.xlu0 %v898_v26, %s5601_s24  ;;  %v8586_v21 = vsel %vm6045_vm1, 4294967295, %v8585_v21  ;;  %v840_v29 = vsel %vm6045_vm1, %v6049_v28, 0.0  ;;  %873 = vst.msk [vmem:[#allocation3 + $0xe8] sm:$0xff] %vm8363_vm0, %v6056_v15  ;;  %v472_v26 = vand.u32 15, %v256_v18  ;;  %875 = vst.msk [vmem:[#allocation3 + $0xf8] sm:$0xff] %vm8363_vm0, %v6072_v13  ;;  %v903_v18 = vld [vmem:[#allocation2 + $0xd9] sm:$0xff] }
  0x42   : > { %8587 = vst [vmem:[#allocation40_spill] sm:$0xff] %v8586_v21  ;;  %872 = vst.msk [vmem:[#allocation3 + $0xe0] sm:$0xff] %vm8363_vm0, %v840_v29  ;;  %v1075_v3 = vld [vmem:[#allocation2 + $0x32] sm:$0xff] }
  0x43   : > { %vm6062_vm15 = vcmp.ge.s32.totalorder %v472_v26, 1  ;;  %v906_v26 = vld [vmem:[#allocation2 + $0xf1] sm:$0xff]  ;;  %8591 = vst [vmem:[#allocation42_spill] sm:$0xff] %v6082_v11  ;;  %779 = vst.msk [vmem:[#allocation2 + $0x109] sm:$0xff] %vm8363_vm0, %v6082_v11  ;;  %v231_v11 = vadd.s32 40, %v5812_v40 }
  0x44   : > { %982 = vrot.lane.b32.xlu1 %v897_v46, %s5601_s24  ;;  %v8589_v16 = vsel %vm6062_vm15, 4294967295, %v8588_v16  ;;  %v6066_v46 = vld [vmem:[#allocation2 + $0xf0] sm:$0xff] }
  0x45   : > { %988 = vrot.lane.b32.xlu0 %v900_v17, %s5601_s24  ;;  %8590 = vst [vmem:[#allocation41_spill] sm:$0xff] %v8589_v16  ;;  %v842_v29 = vsel %vm6062_vm15, %v6066_v46, 0.0  ;;  %v904_v17 = vld [vmem:[#allocation2 + $0xe1] sm:$0xff]  ;;  %v1079_v1 = vld [vmem:[#allocation2 + $0x52] sm:$0xff] }
  0x46   : > { %874 = vst.msk [vmem:[#allocation3 + $0xf0] sm:$0xff] %vm8363_vm0, %v842_v29  ;;  %v905_v29 = vld [vmem:[#allocation2 + $0xe9] sm:$0xff]  ;;  %vm6100_vm0 = vcmp.le.s32.totalorder %v283_v10, 14 }
  0x48   : > { %986 = vrot.lane.b32.xlu1 %v899_v20, %s5601_s24  ;;  %v227_v20 = vadd.s32 8, %v5812_v40 }
  0x49   : > { %992 = vrot.lane.b32.xlu0 %v902_v22, %s5601_s24 }
  0x4a   : > { %v269_v22 = vand.u32 15, %v227_v20 }
  0x4c   : > { %990 = vrot.lane.b32.xlu1 %v901_v14, %s5601_s24  ;;  %v1069_v14 = vld [vmem:[#allocation2 + $0x2] sm:$0xff]  ;;  %vm6091_vm15 = vcmp.le.s32.totalorder %v269_v22, 14  ;;  %v297_v22 = vand.u32 15, %v231_v11 }
  0x4d   : > { %996 = vrot.lane.b32.xlu0 %v904_v17, %s5601_s24  ;;  %v907_v17 = vld [vmem:[#allocation2 + $0xf9] sm:$0xff]  ;;  %v8593_v9 = vsel %vm6091_vm15, 4294967295, %v8592_v9 }
  0x4e   : > { %vm6109_vm1 = vcmp.le.s32.totalorder %v297_v22, 14  ;;  %v237_v22 = vadd.s32 88, %v5812_v40 }
  0x50   : > { %994 = vrot.lane.b32.xlu1 %v903_v18, %s5601_s24  ;;  %v1070_v18 = vld [vmem:[#allocation2 + $0xa] sm:$0xff] }
  0x51   : > { %1000 = vrot.lane.b32.xlu0 %v906_v26, %s5601_s24  ;;  %v1102_v20 = vsel %vm6091_vm15, %v1070_v18, 0.0  ;;  %v8594_v26 = vmov 0  ;;  %v235_v18 = vadd.s32 72, %v5812_v40 }
  0x52   : > { %v8595_v26 = vsel %vm6100_vm0, 4294967295, %v8594_v26 }
  0x54   : > { %998 = vrot.lane.b32.xlu1 %v905_v29, %s5601_s24  ;;  %v1072_v29 = vld [vmem:[#allocation2 + $0x1a] sm:$0xff] }
  0x55   : > { %1165 = vrot.lane.b32.xlu0 %v1069_v14, %s5602_s25  ;;  %v233_v14 = vadd.s32 56, %v5812_v40  ;;  %v1104_v12 = vsel %vm6100_vm0, %v1072_v29, 0.0  ;;  %v325_v29 = vand.u32 15, %v235_v18 }
  0x57   : > { %v311_v10 = vand.u32 15, %v233_v14  ;;  %vm6127_vm0 = vcmp.le.s32.totalorder %v325_v29, 14  ;;  %v241_v29 = vadd.s32 120, %v5812_v40 }
  0x58   : > { %1002 = vrot.lane.b32.xlu1 %v907_v17, %s5601_s24  ;;  %v8596_v17 = vmov 0 }
  0x59   : > { %1169 = vrot.lane.b32.xlu0 %v1071_v5, %s5602_s25  ;;  %v8597_v17 = vsel %vm6109_vm1, 4294967295, %v8596_v17  ;;  %v1074_v5 = vld [vmem:[#allocation2 + $0x2a] sm:$0xff]  ;;  %vm6118_vm15 = vcmp.le.s32.totalorder %v311_v10, 14  ;;  %v239_v10 = vadd.s32 104, %v5812_v40 }
  0x5a   : > { %8598 = vst [vmem:[#allocation43_spill] sm:$0xff] %v8597_v17  ;;  %v1106_v11 = vsel %vm6109_vm1, %v1074_v5, 0.0  ;;  %v339_v5 = vand.u32 15, %v237_v22 }
  0x5c   : > { %1167 = vrot.lane.b32.xlu1 %v1102_v20, %s5602_s25  ;;  %v8599_v20 = vmov 0  ;;  %vm6136_vm1 = vcmp.le.s32.totalorder %v339_v5, 14  ;;  %v243_v5 = vadd.s32 136, %v5812_v40 }
  0x5d   : > { %1173 = vrot.lane.b32.xlu0 %v1073_v6, %s5602_s25  ;;  %v8600_v20 = vsel %vm6118_vm15, 4294967295, %v8599_v20  ;;  %v1076_v6 = vld [vmem:[#allocation2 + $0x3a] sm:$0xff] }
  0x5e   : > { %8601 = vst [vmem:[#allocation44_spill] sm:$0xff] %v8600_v20  ;;  %v1108_v14 = vsel %vm6118_vm15, %v1076_v6, 0.0  ;;  %v353_v6 = vand.u32 15, %v239_v10 }
  0x60   : > { %1171 = vrot.lane.b32.xlu1 %v1104_v12, %s5602_s25  ;;  %v8602_v12 = vmov 0  ;;  %vm6145_vm15 = vcmp.le.s32.totalorder %v353_v6, 14  ;;  %v245_v6 = vadd.s32 152, %v5812_v40 }
  0x61   : > { %1177 = vrot.lane.b32.xlu0 %v1075_v3, %s5602_s25  ;;  %v8603_v12 = vsel %vm6127_vm0, 4294967295, %v8602_v12  ;;  %v1078_v3 = vld [vmem:[#allocation2 + $0x4a] sm:$0xff] }
  0x62   : > { %8604 = vst [vmem:[#allocation45_spill] sm:$0xff] %v8603_v12  ;;  %v1110_v18 = vsel %vm6127_vm0, %v1078_v3, 0.0  ;;  %v367_v3 = vand.u32 15, %v241_v29  ;;  %v1083_v12 = vld [vmem:[#allocation2 + $0x72] sm:$0xff] }
  0x64   : > { %1175 = vrot.lane.b32.xlu1 %v1106_v11, %s5602_s25  ;;  %v8605_v11 = vmov 0  ;;  %vm6154_vm0 = vcmp.le.s32.totalorder %v367_v3, 14  ;;  %v247_v3 = vadd.s32 168, %v5812_v40 }
  0x65   : > { %1181 = vrot.lane.b32.xlu0 %v1077_v4, %s5602_s25  ;;  %v8606_v11 = vsel %vm6136_vm1, 4294967295, %v8605_v11  ;;  %v1080_v4 = vld [vmem:[#allocation2 + $0x5a] sm:$0xff] }
  0x66   : > { %8607 = vst [vmem:[#allocation46_spill] sm:$0xff] %v8606_v11  ;;  %v1112_v22 = vsel %vm6136_vm1, %v1080_v4, 0.0  ;;  %v381_v4 = vand.u32 15, %v243_v5  ;;  %v1085_v11 = vld [vmem:[#allocation2 + $0x82] sm:$0xff] }
  0x68   : > { %1179 = vrot.lane.b32.xlu1 %v1108_v14, %s5602_s25  ;;  %v8608_v14 = vmov 0  ;;  %vm6163_vm1 = vcmp.le.s32.totalorder %v381_v4, 14  ;;  %v249_v4 = vadd.s32 184, %v5812_v40 }
  0x69   : > { %1185 = vrot.lane.b32.xlu0 %v1079_v1, %s5602_s25  ;;  %v8609_v14 = vsel %vm6145_vm15, 4294967295, %v8608_v14  ;;  %v1082_v1 = vld [vmem:[#allocation2 + $0x6a] sm:$0xff] }
  0x6a   : > { %8610 = vst [vmem:[#allocation47_spill] sm:$0xff] %v8609_v14  ;;  %v1114_v10 = vsel %vm6145_vm15, %v1082_v1, 0.0  ;;  %v395_v1 = vand.u32 15, %v245_v6  ;;  %v1087_v14 = vld [vmem:[#allocation2 + $0x92] sm:$0xff] }
  0x6c   : > { %1183 = vrot.lane.b32.xlu1 %v1110_v18, %s5602_s25  ;;  %v8611_v18 = vmov 0  ;;  %vm6172_vm15 = vcmp.le.s32.totalorder %v395_v1, 14  ;;  %v251_v1 = vadd.s32 200, %v5812_v40 }
  0x6d   : > { %1189 = vrot.lane.b32.xlu0 %v1081_v2, %s5602_s25  ;;  %v8612_v18 = vsel %vm6154_vm0, 4294967295, %v8611_v18  ;;  %v1084_v2 = vld [vmem:[#allocation2 + $0x7a] sm:$0xff] }
  0x6e   : > { %8613 = vst [vmem:[#allocation48_spill] sm:$0xff] %v8612_v18  ;;  %v1116_v29 = vsel %vm6154_vm0, %v1084_v2, 0.0  ;;  %v409_v2 = vand.u32 15, %v247_v3  ;;  %v1089_v18 = vld [vmem:[#allocation2 + $0xa2] sm:$0xff] }
  0x70   : > { %1187 = vrot.lane.b32.xlu1 %v1112_v22, %s5602_s25  ;;  %v8614_v22 = vmov 0  ;;  %vm6181_vm0 = vcmp.le.s32.totalorder %v409_v2, 14  ;;  %v253_v2 = vadd.s32 216, %v5812_v40 }
  0x71   : > { %1193 = vrot.lane.b32.xlu0 %v1083_v12, %s5602_s25  ;;  %v8615_v22 = vsel %vm6163_vm1, 4294967295, %v8614_v22  ;;  %v1086_v12 = vld [vmem:[#allocation2 + $0x8a] sm:$0xff] }
  0x72   : > { %8616 = vst [vmem:[#allocation49_spill] sm:$0xff] %v8615_v22  ;;  %v1118_v5 = vsel %vm6163_vm1, %v1086_v12, 0.0  ;;  %v423_v12 = vand.u32 15, %v249_v4  ;;  %v1091_v22 = vld [vmem:[#allocation2 + $0xb2] sm:$0xff] }
  0x74   : > { %1191 = vrot.lane.b32.xlu1 %v1114_v10, %s5602_s25  ;;  %v8617_v10 = vmov 0  ;;  %vm6190_vm1 = vcmp.le.s32.totalorder %v423_v12, 14  ;;  %v255_v12 = vadd.s32 232, %v5812_v40 }
  0x75   : > { %1197 = vrot.lane.b32.xlu0 %v1085_v11, %s5602_s25  ;;  %v8618_v10 = vsel %vm6172_vm15, 4294967295, %v8617_v10  ;;  %v1088_v11 = vld [vmem:[#allocation2 + $0x9a] sm:$0xff] }
  0x76   : > { %8619 = vst [vmem:[#allocation50_spill] sm:$0xff] %v8618_v10  ;;  %v1120_v6 = vsel %vm6172_vm15, %v1088_v11, 0.0  ;;  %v437_v11 = vand.u32 15, %v251_v1  ;;  %v1093_v10 = vld [vmem:[#allocation2 + $0xc2] sm:$0xff]  ;;  %v1095_v1 = vld [vmem:[#allocation2 + $0xd2] sm:$0xff] }
  0x78   : > { %1195 = vrot.lane.b32.xlu1 %v1116_v29, %s5602_s25  ;;  %v8620_v29 = vmov 0  ;;  %vm6199_vm15 = vcmp.le.s32.totalorder %v437_v11, 14  ;;  %v465_v11 = vand.u32 15, %v255_v12 }
  0x79   : > { %1201 = vrot.lane.b32.xlu0 %v1087_v14, %s5602_s25  ;;  %v8621_v29 = vsel %vm6181_vm0, 4294967295, %v8620_v29  ;;  %v1090_v14 = vld [vmem:[#allocation2 + $0xaa] sm:$0xff] }
  0x7a   : > { %8622 = vst [vmem:[#allocation51_spill] sm:$0xff] %v8621_v29  ;;  %v1122_v3 = vsel %vm6181_vm0, %v1090_v14, 0.0  ;;  %vm8423_vm0 = vcmask 64544   ;;  %v451_v14 = vand.u32 15, %v253_v2  ;;  %v257_v2 = vadd.s32 248, %v5812_v40  ;;  %v1099_v40 = vld [vmem:[#allocation2 + $0xf2] sm:$0xff] }
  0x7c   : > { %1199 = vrot.lane.b32.xlu1 %v1118_v5, %s5602_s25  ;;  %v8623_v5 = vmov 0  ;;  %v479_v12 = vand.u32 15, %v257_v2 }
  0x7d   : > { %1205 = vrot.lane.b32.xlu0 %v1089_v18, %s5602_s25  ;;  %v8624_v5 = vsel %vm6190_vm1, 4294967295, %v8623_v5  ;;  %v1092_v18 = vld [vmem:[#allocation2 + $0xba] sm:$0xff] }
  0x7e   : > { %8625 = vst [vmem:[#allocation52_spill] sm:$0xff] %v8624_v5  ;;  %v1124_v4 = vsel %vm6190_vm1, %v1092_v18, 0.0  ;;  %vm6209_vm1 = vcmp.le.s32.totalorder %v451_v14, 14  ;;  %v1096_v18 = vld [vmem:[#allocation2 + $0xda] sm:$0xff]  ;;  %v1097_v5 = vld [vmem:[#allocation2 + $0xe2] sm:$0xff]  ;;  %v1098_v14 = vld [vmem:[#allocation2 + $0xea] sm:$0xff] }
  0x80   : > { %1203 = vrot.lane.b32.xlu1 %v1120_v6, %s5602_s25  ;;  %v8626_v6 = vmov 0 }
  0x81   : > { %1209 = vrot.lane.b32.xlu0 %v1091_v22, %s5602_s25  ;;  %v8627_v6 = vsel %vm6199_vm15, 4294967295, %v8626_v6  ;;  %v1094_v22 = vld [vmem:[#allocation2 + $0xca] sm:$0xff] }
  0x82   : > { %8628 = vst [vmem:[#allocation53_spill] sm:$0xff] %v8627_v6  ;;  %v1128_v6 = vsel %vm6209_vm1, %v1096_v18, 0.0 }
  0x84   : > { %1207 = vrot.lane.b32.xlu1 %v1122_v3, %s5602_s25  ;;  %v1126_v3 = vsel %vm6199_vm15, %v1094_v22, 0.0  ;;  %vm6219_vm15 = vcmp.le.s32.totalorder %v465_v11, 14  ;;  %v8632_v22 = vmov 0  ;;  %v1100_v11 = vld [vmem:[#allocation2 + $0xfa] sm:$0xff] }
  0x85   : > { %1213 = vrot.lane.b32.xlu0 %v1093_v10, %s5602_s25  ;;  %v8629_v10 = vmov 0  ;;  %v8633_v22 = vsel %vm6219_vm15, 4294967295, %v8632_v22 }
  0x86   : > { %v941_v29 = vpop.permute.xlu0 %940  ;;  %v8630_v10 = vsel %vm6209_vm1, 4294967295, %v8629_v10  ;;  %8634 = vst [vmem:[#allocation55_spill] sm:$0xff] %v8633_v22  ;;  %vm6229_vm1 = vcmp.le.s32.totalorder %v479_v12, 14 }
  0x87   : > { %1037 = vst.msk [vmem:[#allocation3] sm:$0xff] %vm8423_vm0, %v941_v29  ;;  %8631 = vst [vmem:[#allocation54_spill] sm:$0xff] %v8630_v10 }
  0x88   : > { %1211 = vrot.lane.b32.xlu1 %v1124_v4, %s5602_s25 }
  0x89   : > { %1217 = vrot.lane.b32.xlu0 %v1095_v1, %s5602_s25 }
  0x8a   : > { %v943_v4 = vpop.permute.xlu0 %942 }
  0x8b   : > { %1038 = vst.msk [vmem:[#allocation3 + $0x8] sm:$0xff] %vm8423_vm0, %v943_v4  ;;  %v1132_v4 = vsel %vm6229_vm1, %v1100_v11, 0.0 }
  0x8c   : > { %1215 = vrot.lane.b32.xlu1 %v1126_v3, %s5602_s25  ;;  %v1130_v3 = vsel %vm6219_vm15, %v1098_v14, 0.0  ;;  %v1328_v14 = vsel %vm5838_vm3, %v5868_v47, 0.0 }
  0x8d   : > { %1221 = vrot.lane.b32.xlu0 %v1097_v5, %s5602_s25  ;;  %v8635_v5 = vmov 0 }
  0x8e   : > { %v945_v29 = vpop.permute.xlu1 %944  ;;  %v8636_v5 = vsel %vm6229_vm1, 4294967295, %v8635_v5 }
  0x8f   : > { %1039 = vst.msk [vmem:[#allocation3 + $0x10] sm:$0xff] %vm8423_vm0, %v945_v29  ;;  %v949_v1 = vpop.permute.xlu0 %948  ;;  %8637 = vst [vmem:[#allocation56_spill] sm:$0xff] %v8636_v5 }
  0x90   : > { %1219 = vrot.lane.b32.xlu1 %v1128_v6, %s5602_s25  ;;  %1041 = vst.msk [vmem:[#allocation3 + $0x20] sm:$0xff] %vm8423_vm0, %v949_v1  ;;  %v1326_v6 = vsel %vm5834_vm2, %v5844_v7, 0.0 }
  0x91   : > { %1225 = vrot.lane.b32.xlu0 %v1099_v40, %s5602_s25  ;;  %v1330_v40 = vsel %vm5852_vm4, %v5890_v55, 0.0 }
  0x92   : > { %v947_v18 = vpop.permute.xlu1 %946 }
  0x93   : > { %1040 = vst.msk [vmem:[#allocation3 + $0x18] sm:$0xff] %vm8423_vm0, %v947_v18  ;;  %v953_v2 = vpop.permute.xlu0 %952 }
  0x94   : > { %1223 = vrot.lane.b32.xlu1 %v1130_v3, %s5602_s25  ;;  %1043 = vst.msk [vmem:[#allocation3 + $0x30] sm:$0xff] %vm8423_vm0, %v953_v2  ;;  %v1332_v3 = vsel %vm5862_vm5, %v5910_v63, 0.0 }
  0x95   : > { %1390 = vrot.lane.b32.xlu0 %v1326_v6, %s5603_s26 }
  0x96   : > { %v951_v29 = vpop.permute.xlu1 %950 }
  0x97   : > { %1042 = vst.msk [vmem:[#allocation3 + $0x28] sm:$0xff] %vm8423_vm0, %v951_v29  ;;  %v957_v7 = vpop.permute.xlu0 %956 }
  0x98   : > { %1227 = vrot.lane.b32.xlu1 %v1132_v4, %s5602_s25  ;;  %1045 = vst.msk [vmem:[#allocation3 + $0x40] sm:$0xff] %vm8423_vm0, %v957_v7 }
  0x99   : > { %1394 = vrot.lane.b32.xlu0 %v1328_v14, %s5603_s26  ;;  %v1344_v14 = vsel %vm5936_vm11, %v5984_v53, 0.0 }
  0x9a   : > { %v955_v12 = vpop.permute.xlu1 %954 }
  0x9b   : > { %1044 = vst.msk [vmem:[#allocation3 + $0x38] sm:$0xff] %vm8423_vm0, %v955_v12  ;;  %v961_v1 = vpop.permute.xlu0 %960  ;;  %v1346_v12 = vsel %vm5955_vm12, %v5992_v30, 0.0  ;;  %vm8638_vm12 = vnez %v8583_v52 }
  0x9c   : > { %1392 = vrot.lane.b32.xlu1 %v5860_v43, %s5603_s26  ;;  %1047 = vst.msk [vmem:[#allocation3 + $0x50] sm:$0xff] %vm8423_vm0, %v961_v1  ;;  %v1334_v43 = vsel %vm5872_vm6, %v5914_v8, 0.0  ;;  %v1348_v1 = vsel %vm5988_vm13, %v6013_v23, 0.0  ;;  %vm8427_vm13 = vcmask 97344  }
  0x9d   : > { %1398 = vrot.lane.b32.xlu0 %v1330_v40, %s5603_s26 }
  0x9e   : > { %v959_v47 = vpop.permute.xlu1 %958 }
  0x9f   : > { %1046 = vst.msk [vmem:[#allocation3 + $0x48] sm:$0xff] %vm8423_vm0, %v959_v47  ;;  %v965_v18 = vpop.permute.xlu0 %964 }
  0xa0   : > { %1396 = vrot.lane.b32.xlu1 %v5870_v48, %s5603_s26  ;;  %1049 = vst.msk [vmem:[#allocation3 + $0x60] sm:$0xff] %vm8423_vm0, %v965_v18  ;;  %v1336_v48 = vsel %vm5876_vm7, %v5932_v32, 0.0 }
  0xa1   : > { %1402 = vrot.lane.b32.xlu0 %v1332_v3, %s5603_s26  ;;  %v1350_v3 = vsel %vm6020_vm14, %v6031_v19, 0.0  ;;  %vm8639_vm14 = vnez %v8586_v21 }
  0xa2   : > { %v963_v55 = vpop.permute.xlu1 %962 }
  0xa3   : > { %1048 = vst.msk [vmem:[#allocation3 + $0x58] sm:$0xff] %vm8423_vm0, %v963_v55  ;;  %v969_v11 = vpop.permute.xlu0 %968  ;;  %v1352_v55 = vsel %vm8638_vm12, %v6049_v28, 0.0  ;;  %v6351_v28 = vld [vmem:[#allocation2 + $0x100] sm:$0xff] }
  0xa4   : > { %1400 = vrot.lane.b32.xlu1 %v5892_v56, %s5603_s26  ;;  %1051 = vst.msk [vmem:[#allocation3 + $0x70] sm:$0xff] %vm8423_vm0, %v969_v11  ;;  %v1338_v56 = vsel %vm5894_vm8, %v5949_v62, 0.0  ;;  %v1354_v11 = vsel %vm8639_vm14, %v6066_v46, 0.0  ;;  %vm8648_vm14 = vnez %v8595_v26 }
  0xa5   : > { %1406 = vrot.lane.b32.xlu0 %v1334_v43, %s5603_s26 }
  0xa6   : > { %v967_v63 = vpop.permute.xlu1 %966 }
  0xa7   : > { %1050 = vst.msk [vmem:[#allocation3 + $0x68] sm:$0xff] %vm8423_vm0, %v967_v63  ;;  %v973_v6 = vpop.permute.xlu0 %972 }
  0xa8   : > { %1404 = vrot.lane.b32.xlu1 %v5912_v0, %s5603_s26  ;;  %1053 = vst.msk [vmem:[#allocation3 + $0x80] sm:$0xff] %vm8423_vm0, %v973_v6  ;;  %v1340_v0 = vsel %vm5898_vm9, %v5953_v54, 0.0 }
  0xa9   : > { %1410 = vrot.lane.b32.xlu0 %v1336_v48, %s5603_s26 }
  0xaa   : > { %v971_v8 = vpop.permute.xlu1 %970 }
  0xab   : > { %1052 = vst.msk [vmem:[#allocation3 + $0x78] sm:$0xff] %vm8423_vm0, %v971_v8  ;;  %v977_v2 = vpop.permute.xlu0 %976 }
  0xac   : > { %1408 = vrot.lane.b32.xlu1 %v5930_v31, %s5603_s26  ;;  %1055 = vst.msk [vmem:[#allocation3 + $0x90] sm:$0xff] %vm8423_vm0, %v977_v2  ;;  %v1342_v31 = vsel %vm5916_vm10, %v5971_v51, 0.0 }
  0xad   : > { %1414 = vrot.lane.b32.xlu0 %v1338_v56, %s5603_s26  ;;  %v1519_v56 = vld [vmem:[#allocation2 + $0x11] sm:$0xff] }
  0xae   : > { %v975_v32 = vpop.permute.xlu1 %974 }
  0xaf   : > { %1054 = vst.msk [vmem:[#allocation3 + $0x88] sm:$0xff] %vm8423_vm0, %v975_v32  ;;  %v981_v4 = vpop.permute.xlu0 %980  ;;  %v6366_v32 = vld [vmem:[#allocation2 + $0x108] sm:$0xff] }
  0xb0   : > { %1412 = vrot.lane.b32.xlu1 %v5934_v41, %s5603_s26  ;;  %1057 = vst.msk [vmem:[#allocation3 + $0xa0] sm:$0xff] %vm8423_vm0, %v981_v4  ;;  %v6371_v4 = vld [vmem:[#allocation2 + $0x21] sm:$0xff] }
  0xb1   : > { %1418 = vrot.lane.b32.xlu0 %v1340_v0, %s5603_s26 }
  0xb2   : > { %v979_v62 = vpop.permute.xlu1 %978 }
  0xb3   : > { %1056 = vst.msk [vmem:[#allocation3 + $0x98] sm:$0xff] %vm8423_vm0, %v979_v62  ;;  %v985_v29 = vpop.permute.xlu0 %984 }
  0xb4   : > { %1416 = vrot.lane.b32.xlu1 %v5951_v45, %s5603_s26  ;;  %1059 = vst.msk [vmem:[#allocation3 + $0xb0] sm:$0xff] %vm8423_vm0, %v985_v29 }
  0xb5   : > { %1422 = vrot.lane.b32.xlu0 %v1342_v31, %s5603_s26  ;;  %v1520_v31 = vld [vmem:[#allocation2 + $0x19] sm:$0xff] }
  0xb6   : > { %v983_v54 = vpop.permute.xlu1 %982 }
  0xb7   : > { %1058 = vst.msk [vmem:[#allocation3 + $0xa8] sm:$0xff] %vm8423_vm0, %v983_v54  ;;  %v989_v7 = vpop.permute.xlu0 %988  ;;  %v6379_v54 = vld [vmem:[#allocation2 + $0x31] sm:$0xff] }
  0xb8   : > { %1420 = vrot.lane.b32.xlu1 %v5969_v39, %s5603_s26  ;;  %1061 = vst.msk [vmem:[#allocation3 + $0xc0] sm:$0xff] %vm8423_vm0, %v989_v7  ;;  %v6382_v7 = vld [vmem:[#allocation2 + $0x29] sm:$0xff] }
  0xb9   : > { %1426 = vrot.lane.b32.xlu0 %v1344_v14, %s5603_s26 }
  0xba   : > { %v987_v51 = vpop.permute.xlu1 %986 }
  0xbb   : > { %1060 = vst.msk [vmem:[#allocation3 + $0xb8] sm:$0xff] %vm8423_vm0, %v987_v51  ;;  %v993_v40 = vpop.permute.xlu0 %992 }
  0xbc   : > { %1424 = vrot.lane.b32.xlu1 %v5973_v36, %s5603_s26  ;;  %1063 = vst.msk [vmem:[#allocation3 + $0xd0] sm:$0xff] %vm8423_vm0, %v993_v40 }
  0xbd   : > { %1430 = vrot.lane.b32.xlu0 %v1346_v12, %s5603_s26  ;;  %v6388_v12 = vld [vmem:[#allocation2 + $0x41] sm:$0xff] }
  0xbe   : > { %v991_v53 = vpop.permute.xlu1 %990 }
  0xbf   : > { %1062 = vst.msk [vmem:[#allocation3 + $0xc8] sm:$0xff] %vm8423_vm0, %v991_v53  ;;  %v997_v47 = vpop.permute.xlu0 %996  ;;  %v6392_v53 = vld [vmem:[#allocation2 + $0x39] sm:$0xff] }
  0xc0   : > { %1428 = vrot.lane.b32.xlu1 %v5986_v37, %s5603_s26  ;;  %1065 = vst.msk [vmem:[#allocation3 + $0xe0] sm:$0xff] %vm8423_vm0, %v997_v47  ;;  %v6398_v47 = vld [vmem:[#allocation2 + $0x51] sm:$0xff] }
  0xc1   : > { %1434 = vrot.lane.b32.xlu0 %v1348_v1, %s5603_s26 }
  0xc2   : > { %v995_v30 = vpop.permute.xlu1 %994 }
  0xc3   : > { %1064 = vst.msk [vmem:[#allocation3 + $0xd8] sm:$0xff] %vm8423_vm0, %v995_v30  ;;  %v1001_v18 = vpop.permute.xlu0 %1000 }
  0xc4   : > { %1432 = vrot.lane.b32.xlu1 %v6004_v35, %s5603_s26  ;;  %1067 = vst.msk [vmem:[#allocation3 + $0xf0] sm:$0xff] %vm8423_vm0, %v1001_v18 }
  0xc5   : > { %1438 = vrot.lane.b32.xlu0 %v1350_v3, %s5603_s26  ;;  %v6402_v3 = vld [vmem:[#allocation2 + $0x49] sm:$0xff] }
  0xc6   : > { %v999_v23 = vpop.permute.xlu1 %998 }
  0xc7   : > { %1066 = vst.msk [vmem:[#allocation3 + $0xe8] sm:$0xff] %vm8423_vm0, %v999_v23  ;;  %v1166_v19 = vpop.permute.xlu0 %1165  ;;  %v6408_v23 = vld [vmem:[#allocation2 + $0x61] sm:$0xff] }
  0xc8   : > { %1436 = vrot.lane.b32.xlu1 %v6015_v24, %s5603_s26  ;;  %1262 = vst.msk [vmem:[#allocation3] sm:$0xff] %vm8427_vm13, %v1166_v19  ;;  %v6412_v19 = vld [vmem:[#allocation2 + $0x59] sm:$0xff] }
  0xc9   : > { %1442 = vrot.lane.b32.xlu0 %v1352_v55, %s5603_s26 }
  0xca   : > { %v1003_v43 = vpop.permute.xlu1 %1002 }
  0xcb   : > { %1068 = vst.msk [vmem:[#allocation3 + $0xf8] sm:$0xff] %vm8423_vm0, %v1003_v43  ;;  %v1170_v63 = vpop.permute.xlu0 %1169  ;;  %vm8640_vm0 = vnez %v8589_v16 }
  0xcc   : > { %1440 = vrot.lane.b32.xlu1 %v6039_v61, %s5603_s26  ;;  %1264 = vst.msk [vmem:[#allocation3 + $0x10] sm:$0xff] %vm8427_vm13, %v1170_v63  ;;  %v1356_v6 = vsel %vm8640_vm0, %v6351_v28, 0.0  ;;  %vm8464_vm0 = vcmask 130144  }
  0xcd   : > { %1446 = vrot.lane.b32.xlu0 %v1354_v11, %s5603_s26  ;;  %v6418_v11 = vld [vmem:[#allocation2 + $0x71] sm:$0xff] }
  0xce   : > { %v1168_v48 = vpop.permute.xlu1 %1167 }
  0xcf   : > { %1263 = vst.msk [vmem:[#allocation3 + $0x8] sm:$0xff] %vm8427_vm13, %v1168_v48  ;;  %v1174_v46 = vpop.permute.xlu0 %1173  ;;  %v6422_v48 = vld [vmem:[#allocation2 + $0x69] sm:$0xff] }
  0xd0   : > { %1444 = vrot.lane.b32.xlu1 %v6056_v15, %s5603_s26  ;;  %1266 = vst.msk [vmem:[#allocation3 + $0x20] sm:$0xff] %vm8427_vm13, %v1174_v46  ;;  %v6428_v46 = vld [vmem:[#allocation2 + $0x81] sm:$0xff] }
  0xd1   : > { %1450 = vrot.lane.b32.xlu0 %v1356_v6, %s5603_s26 }
  0xd2   : > { %v1172_v8 = vpop.permute.xlu1 %1171 }
  0xd3   : > { %1265 = vst.msk [vmem:[#allocation3 + $0x18] sm:$0xff] %vm8427_vm13, %v1172_v8  ;;  %v1178_v2 = vpop.permute.xlu0 %1177 }
  0xd4   : > { %1448 = vrot.lane.b32.xlu1 %v6072_v13, %s5603_s26  ;;  %1268 = vst.msk [vmem:[#allocation3 + $0x30] sm:$0xff] %vm8427_vm13, %v1178_v2 }
  0xd5   : > { %1583 = vrot.lane.b32.xlu0 %v1519_v56, %s5604_s27  ;;  %v6432_v56 = vld [vmem:[#allocation2 + $0x79] sm:$0xff] }
  0xd6   : > { %v1176_v0 = vpop.permute.xlu1 %1175 }
  0xd7   : > { %1267 = vst.msk [vmem:[#allocation3 + $0x28] sm:$0xff] %vm8427_vm13, %v1176_v0  ;;  %v1182_v62 = vpop.permute.xlu0 %1181  ;;  %v6438_v0 = vld [vmem:[#allocation2 + $0x91] sm:$0xff] }
  0xd8   : > { %1452 = vrot.lane.b32.xlu1 %v6366_v32, %s5603_s26  ;;  %1270 = vst.msk [vmem:[#allocation3 + $0x40] sm:$0xff] %vm8427_vm13, %v1182_v62 }
  0xd9   : > { %1587 = vrot.lane.b32.xlu0 %v6371_v4, %s5604_s27 }
  0xda   : > { %v1180_v29 = vpop.permute.xlu1 %1179 }
  0xdb   : > { %1269 = vst.msk [vmem:[#allocation3 + $0x38] sm:$0xff] %vm8427_vm13, %v1180_v29  ;;  %v1186_v14 = vpop.permute.xlu0 %1185 }
  0xdc   : > { %1585 = vrot.lane.b32.xlu1 %v1520_v31, %s5604_s27  ;;  %1272 = vst.msk [vmem:[#allocation3 + $0x50] sm:$0xff] %vm8427_vm13, %v1186_v14  ;;  %v6442_v31 = vld [vmem:[#allocation2 + $0x89] sm:$0xff]  ;;  %v6448_v14 = vld [vmem:[#allocation2 + $0xa1] sm:$0xff] }
  0xdd   : > { %1591 = vrot.lane.b32.xlu0 %v6379_v54, %s5604_s27  ;;  %8641 = vst [vmem:[#allocation57_spill] sm:$0xff] %v6448_v14 }
  0xde   : > { %v1184_v51 = vpop.permute.xlu1 %1183 }
  0xdf   : > { %1271 = vst.msk [vmem:[#allocation3 + $0x48] sm:$0xff] %vm8427_vm13, %v1184_v51  ;;  %v1190_v40 = vpop.permute.xlu0 %1189 }
  0xe0   : > { %1589 = vrot.lane.b32.xlu1 %v6382_v7, %s5604_s27  ;;  %1274 = vst.msk [vmem:[#allocation3 + $0x60] sm:$0xff] %vm8427_vm13, %v1190_v40  ;;  %v6452_v40 = vld [vmem:[#allocation2 + $0x99] sm:$0xff] }
  0xe1   : > { %1595 = vrot.lane.b32.xlu0 %v6388_v12, %s5604_s27 }
  0xe2   : > { %v1188_v1 = vpop.permute.xlu1 %1187 }
  0xe3   : > { %1273 = vst.msk [vmem:[#allocation3 + $0x58] sm:$0xff] %vm8427_vm13, %v1188_v1  ;;  %v1194_v30 = vpop.permute.xlu0 %1193 }
  0xe4   : > { %1593 = vrot.lane.b32.xlu1 %v6392_v53, %s5604_s27  ;;  %1276 = vst.msk [vmem:[#allocation3 + $0x70] sm:$0xff] %vm8427_vm13, %v1194_v30  ;;  %v6458_v30 = vld [vmem:[#allocation2 + $0xb1] sm:$0xff] }
  0xe5   : > { %1599 = vrot.lane.b32.xlu0 %v6398_v47, %s5604_s27  ;;  %8642 = vst [vmem:[#allocation58_spill] sm:$0xff] %v6458_v30 }
  0xe6   : > { %v1192_v18 = vpop.permute.xlu1 %1191 }
  0xe7   : > { %1275 = vst.msk [vmem:[#allocation3 + $0x68] sm:$0xff] %vm8427_vm13, %v1192_v18  ;;  %v1198_v55 = vpop.permute.xlu0 %1197 }
  0xe8   : > { %1597 = vrot.lane.b32.xlu1 %v6402_v3, %s5604_s27  ;;  %1278 = vst.msk [vmem:[#allocation3 + $0x80] sm:$0xff] %vm8427_vm13, %v1198_v55  ;;  %v6462_v55 = vld [vmem:[#allocation2 + $0xa9] sm:$0xff] }
  0xe9   : > { %1603 = vrot.lane.b32.xlu0 %v6408_v23, %s5604_s27  ;;  %8643 = vst [vmem:[#allocation59_spill] sm:$0xff] %v6462_v55 }
  0xea   : > { %v1196_v43 = vpop.permute.xlu1 %1195 }
  0xeb   : > { %1277 = vst.msk [vmem:[#allocation3 + $0x78] sm:$0xff] %vm8427_vm13, %v1196_v43  ;;  %v1202_v63 = vpop.permute.xlu0 %1201 }
  0xec   : > { %1601 = vrot.lane.b32.xlu1 %v6412_v19, %s5604_s27  ;;  %1280 = vst.msk [vmem:[#allocation3 + $0x90] sm:$0xff] %vm8427_vm13, %v1202_v63  ;;  %v6468_v63 = vld [vmem:[#allocation2 + $0xc1] sm:$0xff] }
  0xed   : > { %1607 = vrot.lane.b32.xlu0 %v6418_v11, %s5604_s27  ;;  %8644 = vst [vmem:[#allocation60_spill] sm:$0xff] %v6468_v63 }
  0xee   : > { %v1200_v6 = vpop.permute.xlu1 %1199 }
  0xef   : > { %1279 = vst.msk [vmem:[#allocation3 + $0x88] sm:$0xff] %vm8427_vm13, %v1200_v6  ;;  %v1206_v8 = vpop.permute.xlu0 %1205 }
  0xf0   : > { %1605 = vrot.lane.b32.xlu1 %v6422_v48, %s5604_s27  ;;  %1282 = vst.msk [vmem:[#allocation3 + $0xa0] sm:$0xff] %vm8427_vm13, %v1206_v8  ;;  %v6472_v8 = vld [vmem:[#allocation2 + $0xb9] sm:$0xff] }
  0xf1   : > { %1611 = vrot.lane.b32.xlu0 %v6428_v46, %s5604_s27  ;;  %8645 = vst [vmem:[#allocation61_spill] sm:$0xff] %v6472_v8 }
  0xf2   : > { %v1204_v2 = vpop.permute.xlu1 %1203 }
  0xf3   : > { %1281 = vst.msk [vmem:[#allocation3 + $0x98] sm:$0xff] %vm8427_vm13, %v1204_v2  ;;  %v1210_v62 = vpop.permute.xlu0 %1209 }
  0xf4   : > { %1609 = vrot.lane.b32.xlu1 %v6432_v56, %s5604_s27  ;;  %1284 = vst.msk [vmem:[#allocation3 + $0xb0] sm:$0xff] %vm8427_vm13, %v1210_v62  ;;  %v1543_v62 = vld [vmem:[#allocation2 + $0xd1] sm:$0xff] }
  0xf5   : > { %1615 = vrot.lane.b32.xlu0 %v6438_v0, %s5604_s27 }
  0xf6   : > { %v1208_v29 = vpop.permute.xlu1 %1207 }
  0xf7   : > { %1283 = vst.msk [vmem:[#allocation3 + $0xa8] sm:$0xff] %vm8427_vm13, %v1208_v29  ;;  %v1214_v51 = vpop.permute.xlu0 %1213 }
  0xf8   : > { %1613 = vrot.lane.b32.xlu1 %v6442_v31, %s5604_s27  ;;  %1286 = vst.msk [vmem:[#allocation3 + $0xc0] sm:$0xff] %vm8427_vm13, %v1214_v51  ;;  %v6480_v51 = vld [vmem:[#allocation2 + $0xc9] sm:$0xff] }
  0xf9   : > { %1619 = vrot.lane.b32.xlu0 %v6448_v14, %s5604_s27  ;;  %8646 = vst [vmem:[#allocation62_spill] sm:$0xff] %v6480_v51  ;;  %v6546_v14 = vld [vmem:[#allocation2 + $0x5a] sm:$0xff] }
  0xfa   : > { %v1212_v1 = vpop.permute.xlu1 %1211  ;;  %8653 = vst [vmem:[#allocation65_spill] sm:$0xff] %v6546_v14 }
  0xfb   : > { %1285 = vst.msk [vmem:[#allocation3 + $0xb8] sm:$0xff] %vm8427_vm13, %v1212_v1  ;;  %v1218_v18 = vpop.permute.xlu0 %1217 }
  0xfc   : > { %1617 = vrot.lane.b32.xlu1 %v6452_v40, %s5604_s27  ;;  %1288 = vst.msk [vmem:[#allocation3 + $0xd0] sm:$0xff] %vm8427_vm13, %v1218_v18  ;;  %v1545_v18 = vld [vmem:[#allocation2 + $0xe1] sm:$0xff] }
  0xfd   : > { %1623 = vrot.lane.b32.xlu0 %v6458_v30, %s5604_s27  ;;  %v6534_v30 = vld [vmem:[#allocation2 + $0x4a] sm:$0xff] }
  0xfe   : > { %v1216_v43 = vpop.permute.xlu1 %1215  ;;  %8650 = vst [vmem:[#allocation63_spill] sm:$0xff] %v6534_v30 }
  0xff   : > { %1287 = vst.msk [vmem:[#allocation3 + $0xc8] sm:$0xff] %vm8427_vm13, %v1216_v43  ;;  %v1222_v6 = vpop.permute.xlu0 %1221 }
 0x100   : > { %1621 = vrot.lane.b32.xlu1 %v6462_v55, %s5604_s27  ;;  %1290 = vst.msk [vmem:[#allocation3 + $0xe0] sm:$0xff] %vm8427_vm13, %v1222_v6  ;;  %v1544_v6 = vld [vmem:[#allocation2 + $0xd9] sm:$0xff] }
 0x101   : > { %1627 = vrot.lane.b32.xlu0 %v6468_v63, %s5604_s27  ;;  %v1546_v63 = vld [vmem:[#allocation2 + $0xe9] sm:$0xff] }
 0x102   : > { %v1220_v2 = vpop.permute.xlu1 %1219 }
 0x103   : > { %1289 = vst.msk [vmem:[#allocation3 + $0xd8] sm:$0xff] %vm8427_vm13, %v1220_v2  ;;  %v1226_v29 = vpop.permute.xlu0 %1225 }
 0x104   : > { %1625 = vrot.lane.b32.xlu1 %v6472_v8, %s5604_s27  ;;  %1292 = vst.msk [vmem:[#allocation3 + $0xf0] sm:$0xff] %vm8427_vm13, %v1226_v29  ;;  %v1547_v29 = vld [vmem:[#allocation2 + $0xf1] sm:$0xff]  ;;  %v1548_v8 = vld [vmem:[#allocation2 + $0xf9] sm:$0xff] }
 0x105   : > { %1631 = vrot.lane.b32.xlu0 %v1543_v62, %s5604_s27 }
 0x106   : > { %v1224_v1 = vpop.permute.xlu1 %1223 }
 0x107   : > { %1291 = vst.msk [vmem:[#allocation3 + $0xe8] sm:$0xff] %vm8427_vm13, %v1224_v1  ;;  %v1391_v43 = vpop.permute.xlu0 %1390 }
 0x108   : > { %1629 = vrot.lane.b32.xlu1 %v6480_v51, %s5604_s27  ;;  %1487 = vst.msk [vmem:[#allocation3] sm:$0xff] %vm8464_vm0, %v1391_v43  ;;  %v1549_v51 = vld [vmem:[#allocation2 + $0x101] sm:$0xff] }
 0x109   : > { %1635 = vrot.lane.b32.xlu0 %v1545_v18, %s5604_s27 }
 0x10a   : > { %v1228_v2 = vpop.permute.xlu1 %1227 }
 0x10b   : > { %1293 = vst.msk [vmem:[#allocation3 + $0xf8] sm:$0xff] %vm8427_vm13, %v1228_v2  ;;  %v1395_v62 = vpop.permute.xlu0 %1394  ;;  %vm8647_vm13 = vnez %v8593_v9 }
 0x10c   : > { %1633 = vrot.lane.b32.xlu1 %v1544_v6, %s5604_s27  ;;  %1489 = vst.msk [vmem:[#allocation3 + $0x10] sm:$0xff] %vm8464_vm0, %v1395_v62  ;;  %v1712_v6 = vld [vmem:[#allocation2 + $0x12] sm:$0xff]  ;;  %v1550_v62 = vld [vmem:[#allocation2 + $0x109] sm:$0xff] }
 0x10d   : > { %1639 = vrot.lane.b32.xlu0 %v1547_v29, %s5604_s27 }
 0x10e   : > { %v1393_v1 = vpop.permute.xlu1 %1392 }
 0x10f   : > { %1488 = vst.msk [vmem:[#allocation3 + $0x8] sm:$0xff] %vm8464_vm0, %v1393_v1  ;;  %v1399_v43 = vpop.permute.xlu0 %1398  ;;  %v6502_v1 = vld [vmem:[#allocation2 + $0x22] sm:$0xff] }
 0x110   : > { %1637 = vrot.lane.b32.xlu1 %v1546_v63, %s5604_s27  ;;  %1491 = vst.msk [vmem:[#allocation3 + $0x20] sm:$0xff] %vm8464_vm0, %v1399_v43  ;;  %v1713_v63 = vld [vmem:[#allocation2 + $0x1a] sm:$0xff] }
 0x111   : > { %1643 = vrot.lane.b32.xlu0 %v1549_v51, %s5604_s27  ;;  %v1745_v43 = vsel %vm8647_vm13, %v1713_v63, 0.0  ;;  %v6522_v63 = vld [vmem:[#allocation2 + $0x3a] sm:$0xff]  ;;  %vm8649_vm13 = vnez %v8597_v17  ;;  %v8655_v17 = vld [vmem:[#allocation45_spill] sm:$0xff] }
 0x112   : > { %v1397_v18 = vpop.permute.xlu1 %1396 }
 0x113   : > { %1490 = vst.msk [vmem:[#allocation3 + $0x18] sm:$0xff] %vm8464_vm0, %v1397_v18  ;;  %v1403_v2 = vpop.permute.xlu0 %1402  ;;  %v6510_v18 = vld [vmem:[#allocation2 + $0x2a] sm:$0xff] }
 0x114   : > { %1641 = vrot.lane.b32.xlu1 %v1548_v8, %s5604_s27  ;;  %1493 = vst.msk [vmem:[#allocation3 + $0x30] sm:$0xff] %vm8464_vm0, %v1403_v2 }
 0x115   : > { %1808 = vrot.lane.b32.xlu0 %v1712_v6, %s5605_s28  ;;  %v6513_v6 = vld [vmem:[#allocation2 + $0x32] sm:$0xff] }
 0x116   : > { %v1401_v29 = vpop.permute.xlu1 %1400 }
 0x117   : > { %1492 = vst.msk [vmem:[#allocation3 + $0x28] sm:$0xff] %vm8464_vm0, %v1401_v29  ;;  %v1407_v51 = vpop.permute.xlu0 %1406 }
 0x118   : > { %1645 = vrot.lane.b32.xlu1 %v1550_v62, %s5604_s27  ;;  %1495 = vst.msk [vmem:[#allocation3 + $0x40] sm:$0xff] %vm8464_vm0, %v1407_v51  ;;  %v1747_v62 = vsel %vm8648_vm14, %v6510_v18, 0.0  ;;  %v6525_v51 = vld [vmem:[#allocation2 + $0x42] sm:$0xff]  ;;  %vm8652_vm14 = vnez %v8600_v20 }
 0x119   : > { %1812 = vrot.lane.b32.xlu0 %v6502_v1, %s5605_s28  ;;  %v1751_v55 = vsel %vm8652_vm14, %v6534_v30, 0.0  ;;  %v8659_v30 = vld [vmem:[#allocation46_spill] sm:$0xff] }
 0x11a   : > { %v1405_v8 = vpop.permute.xlu1 %1404  ;;  %vm8660_vm14 = vnez %v8659_v30 }
 0x11b   : > { %1494 = vst.msk [vmem:[#allocation3 + $0x38] sm:$0xff] %vm8464_vm0, %v1405_v8  ;;  %v1411_v2 = vpop.permute.xlu0 %1410  ;;  %v1749_v8 = vsel %vm8649_vm13, %v6522_v63, 0.0  ;;  %vm8656_vm13 = vnez %v8655_v17 }
 0x11c   : > { %1810 = vrot.lane.b32.xlu1 %v1745_v43, %s5605_s28  ;;  %1497 = vst.msk [vmem:[#allocation3 + $0x50] sm:$0xff] %vm8464_vm0, %v1411_v2  ;;  %v1753_v20 = vsel %vm8656_vm13, %v6546_v14, 0.0  ;;  %v8663_v14 = vld [vmem:[#allocation47_spill] sm:$0xff] }
 0x11d   : > { %1816 = vrot.lane.b32.xlu0 %v6513_v6, %s5605_s28  ;;  %vm8664_vm13 = vnez %v8663_v14 }
 0x11e   : > { %v1409_v29 = vpop.permute.xlu1 %1408 }
 0x11f   : > { %1496 = vst.msk [vmem:[#allocation3 + $0x48] sm:$0xff] %vm8464_vm0, %v1409_v29  ;;  %v1415_v43 = vpop.permute.xlu0 %1414  ;;  %v6537_v29 = vld [vmem:[#allocation2 + $0x52] sm:$0xff] }
 0x120   : > { %1814 = vrot.lane.b32.xlu1 %v1747_v62, %s5605_s28  ;;  %1499 = vst.msk [vmem:[#allocation3 + $0x60] sm:$0xff] %vm8464_vm0, %v1415_v43  ;;  %8651 = vst [vmem:[#allocation64_spill] sm:$0xff] %v6537_v29 }
 0x121   : > { %1820 = vrot.lane.b32.xlu0 %v6525_v51, %s5605_s28 }
 0x122   : > { %v1413_v2 = vpop.permute.xlu1 %1412 }
 0x123   : > { %1498 = vst.msk [vmem:[#allocation3 + $0x58] sm:$0xff] %vm8464_vm0, %v1413_v2  ;;  %v1419_v62 = vpop.permute.xlu0 %1418  ;;  %v6549_v2 = vld [vmem:[#allocation2 + $0x62] sm:$0xff] }
 0x124   : > { %1818 = vrot.lane.b32.xlu1 %v1749_v8, %s5605_s28  ;;  %1501 = vst.msk [vmem:[#allocation3 + $0x70] sm:$0xff] %vm8464_vm0, %v1419_v62  ;;  %8654 = vst [vmem:[#allocation66_spill] sm:$0xff] %v6549_v2 }
 0x125   : > { %1824 = vrot.lane.b32.xlu0 %v6537_v29, %s5605_s28  ;;  %v6558_v29 = vld [vmem:[#allocation2 + $0x6a] sm:$0xff] }
 0x126   : > { %v1417_v43 = vpop.permute.xlu1 %1416  ;;  %8657 = vst [vmem:[#allocation67_spill] sm:$0xff] %v6558_v29  ;;  %v1755_v17 = vsel %vm8660_vm14, %v6558_v29, 0.0  ;;  %v8667_v29 = vld [vmem:[#allocation48_spill] sm:$0xff] }
 0x127   : > { %1500 = vst.msk [vmem:[#allocation3 + $0x68] sm:$0xff] %vm8464_vm0, %v1417_v43  ;;  %v1423_v8 = vpop.permute.xlu0 %1422  ;;  %v6561_v43 = vld [vmem:[#allocation2 + $0x72] sm:$0xff]  ;;  %vm8668_vm14 = vnez %v8667_v29 }
 0x128   : > { %1822 = vrot.lane.b32.xlu1 %v1751_v55, %s5605_s28  ;;  %1503 = vst.msk [vmem:[#allocation3 + $0x80] sm:$0xff] %vm8464_vm0, %v1423_v8  ;;  %8658 = vst [vmem:[#allocation68_spill] sm:$0xff] %v6561_v43 }
 0x129   : > { %1828 = vrot.lane.b32.xlu0 %v6549_v2, %s5605_s28  ;;  %v6570_v2 = vld [vmem:[#allocation2 + $0x7a] sm:$0xff] }
 0x12a   : > { %v1421_v62 = vpop.permute.xlu1 %1420  ;;  %8661 = vst [vmem:[#allocation69_spill] sm:$0xff] %v6570_v2  ;;  %v1757_v30 = vsel %vm8664_vm13, %v6570_v2, 0.0  ;;  %v8671_v2 = vld [vmem:[#allocation49_spill] sm:$0xff] }
 0x12b   : > { %1502 = vst.msk [vmem:[#allocation3 + $0x78] sm:$0xff] %vm8464_vm0, %v1421_v62  ;;  %v1427_v55 = vpop.permute.xlu0 %1426  ;;  %v6573_v62 = vld [vmem:[#allocation2 + $0x82] sm:$0xff]  ;;  %vm8672_vm13 = vnez %v8671_v2 }
 0x12c   : > { %1826 = vrot.lane.b32.xlu1 %v1753_v20, %s5605_s28  ;;  %1505 = vst.msk [vmem:[#allocation3 + $0x90] sm:$0xff] %vm8464_vm0, %v1427_v55  ;;  %8662 = vst [vmem:[#allocation70_spill] sm:$0xff] %v6573_v62 }
 0x12d   : > { %1832 = vrot.lane.b32.xlu0 %v6561_v43, %s5605_s28  ;;  %v6582_v43 = vld [vmem:[#allocation2 + $0x8a] sm:$0xff] }
 0x12e   : > { %v1425_v8 = vpop.permute.xlu1 %1424  ;;  %8665 = vst [vmem:[#allocation71_spill] sm:$0xff] %v6582_v43  ;;  %v1759_v14 = vsel %vm8668_vm14, %v6582_v43, 0.0  ;;  %v8675_v43 = vld [vmem:[#allocation50_spill] sm:$0xff] }
 0x12f   : > { %1504 = vst.msk [vmem:[#allocation3 + $0x88] sm:$0xff] %vm8464_vm0, %v1425_v8  ;;  %v1431_v20 = vpop.permute.xlu0 %1430  ;;  %v6585_v8 = vld [vmem:[#allocation2 + $0x92] sm:$0xff]  ;;  %vm8676_vm14 = vnez %v8675_v43 }
 0x130   : > { %1830 = vrot.lane.b32.xlu1 %v1755_v17, %s5605_s28  ;;  %1507 = vst.msk [vmem:[#allocation3 + $0xa0] sm:$0xff] %vm8464_vm0, %v1431_v20  ;;  %8666 = vst [vmem:[#allocation72_spill] sm:$0xff] %v6585_v8 }
 0x131   : > { %1836 = vrot.lane.b32.xlu0 %v6573_v62, %s5605_s28  ;;  %v6594_v62 = vld [vmem:[#allocation2 + $0x9a] sm:$0xff] }
 0x132   : > { %v1429_v55 = vpop.permute.xlu1 %1428  ;;  %8669 = vst [vmem:[#allocation73_spill] sm:$0xff] %v6594_v62  ;;  %v1761_v29 = vsel %vm8672_vm13, %v6594_v62, 0.0  ;;  %v8679_v62 = vld [vmem:[#allocation51_spill] sm:$0xff] }
 0x133   : > { %1506 = vst.msk [vmem:[#allocation3 + $0x98] sm:$0xff] %vm8464_vm0, %v1429_v55  ;;  %v1435_v17 = vpop.permute.xlu0 %1434  ;;  %v6597_v55 = vld [vmem:[#allocation2 + $0xa2] sm:$0xff]  ;;  %vm8680_vm13 = vnez %v8679_v62 }
 0x134   : > { %1834 = vrot.lane.b32.xlu1 %v1757_v30, %s5605_s28  ;;  %1509 = vst.msk [vmem:[#allocation3 + $0xb0] sm:$0xff] %vm8464_vm0, %v1435_v17  ;;  %8670 = vst [vmem:[#allocation74_spill] sm:$0xff] %v6597_v55 }
 0x135   : > { %1840 = vrot.lane.b32.xlu0 %v6585_v8, %s5605_s28  ;;  %v6606_v8 = vld [vmem:[#allocation2 + $0xaa] sm:$0xff] }
 0x136   : > { %v1433_v20 = vpop.permute.xlu1 %1432  ;;  %8673 = vst [vmem:[#allocation75_spill] sm:$0xff] %v6606_v8  ;;  %v1763_v2 = vsel %vm8676_vm14, %v6606_v8, 0.0  ;;  %v8682_v8 = vld [vmem:[#allocation52_spill] sm:$0xff] }
 0x137   : > { %1508 = vst.msk [vmem:[#allocation3 + $0xa8] sm:$0xff] %vm8464_vm0, %v1433_v20  ;;  %v1439_v30 = vpop.permute.xlu0 %1438  ;;  %v6609_v20 = vld [vmem:[#allocation2 + $0xb2] sm:$0xff]  ;;  %vm8683_vm14 = vnez %v8682_v8 }
 0x138   : > { %1838 = vrot.lane.b32.xlu1 %v1759_v14, %s5605_s28  ;;  %1511 = vst.msk [vmem:[#allocation3 + $0xc0] sm:$0xff] %vm8464_vm0, %v1439_v30  ;;  %8674 = vst [vmem:[#allocation76_spill] sm:$0xff] %v6609_v20 }
 0x139   : > { %1844 = vrot.lane.b32.xlu0 %v6597_v55, %s5605_s28  ;;  %v6618_v55 = vld [vmem:[#allocation2 + $0xba] sm:$0xff] }
 0x13a   : > { %v1437_v17 = vpop.permute.xlu1 %1436  ;;  %8677 = vst [vmem:[#allocation77_spill] sm:$0xff] %v6618_v55  ;;  %v1765_v43 = vsel %vm8680_vm13, %v6618_v55, 0.0  ;;  %vm8469_vm13 = vcmask 162944   ;;  %v8686_v55 = vld [vmem:[#allocation53_spill] sm:$0xff] }
 0x13b   : > { %1510 = vst.msk [vmem:[#allocation3 + $0xb8] sm:$0xff] %vm8464_vm0, %v1437_v17  ;;  %v1443_v14 = vpop.permute.xlu0 %1442  ;;  %v6621_v17 = vld [vmem:[#allocation2 + $0xc2] sm:$0xff]  ;;  %vm8687_vm12 = vnez %v8686_v55 }
 0x13c   : > { %1842 = vrot.lane.b32.xlu1 %v1761_v29, %s5605_s28  ;;  %1513 = vst.msk [vmem:[#allocation3 + $0xd0] sm:$0xff] %vm8464_vm0, %v1443_v14  ;;  %8678 = vst [vmem:[#allocation78_spill] sm:$0xff] %v6621_v17 }
 0x13d   : > { %1848 = vrot.lane.b32.xlu0 %v6609_v20, %s5605_s28  ;;  %v6630_v20 = vld [vmem:[#allocation2 + $0xca] sm:$0xff] }
 0x13e   : > { %v1441_v30 = vpop.permute.xlu1 %1440  ;;  %v1767_v62 = vsel %vm8683_vm14, %v6630_v20, 0.0  ;;  %vm8690_vm14 = vnez %v8630_v10 }
 0x13f   : > { %1512 = vst.msk [vmem:[#allocation3 + $0xc8] sm:$0xff] %vm8464_vm0, %v1441_v30  ;;  %v1447_v29 = vpop.permute.xlu0 %1446  ;;  %v6633_v30 = vld [vmem:[#allocation2 + $0xd2] sm:$0xff] }
 0x140   : > { %1846 = vrot.lane.b32.xlu1 %v1763_v2, %s5605_s28  ;;  %1515 = vst.msk [vmem:[#allocation3 + $0xe0] sm:$0xff] %vm8464_vm0, %v1447_v29  ;;  %8681 = vst [vmem:[#allocation79_spill] sm:$0xff] %v6633_v30 }
 0x141   : > { %1852 = vrot.lane.b32.xlu0 %v6621_v17, %s5605_s28  ;;  %v6642_v17 = vld [vmem:[#allocation2 + $0xda] sm:$0xff] }
 0x142   : > { %v1445_v14 = vpop.permute.xlu1 %1444  ;;  %8684 = vst [vmem:[#allocation80_spill] sm:$0xff] %v6642_v17  ;;  %v1769_v8 = vsel %vm8687_vm12, %v6642_v17, 0.0  ;;  %v1937_v17 = vld [vmem:[#allocation2 + $0x20] sm:$0xff] }
 0x143   : > { %1514 = vst.msk [vmem:[#allocation3 + $0xd8] sm:$0xff] %vm8464_vm0, %v1445_v14  ;;  %v1451_v2 = vpop.permute.xlu0 %1450  ;;  %v6645_v14 = vld [vmem:[#allocation2 + $0xe2] sm:$0xff] }
 0x144   : > { %1850 = vrot.lane.b32.xlu1 %v1765_v43, %s5605_s28  ;;  %1517 = vst.msk [vmem:[#allocation3 + $0xf0] sm:$0xff] %vm8464_vm0, %v1451_v2  ;;  %8685 = vst [vmem:[#allocation81_spill] sm:$0xff] %v6645_v14 }
 0x145   : > { %1856 = vrot.lane.b32.xlu0 %v6633_v30, %s5605_s28  ;;  %v6654_v30 = vld [vmem:[#allocation2 + $0xea] sm:$0xff] }
 0x146   : > { %v1449_v29 = vpop.permute.xlu1 %1448  ;;  %8688 = vst [vmem:[#allocation82_spill] sm:$0xff] %v6654_v30  ;;  %v1771_v55 = vsel %vm8690_vm14, %v6654_v30, 0.0  ;;  %v1939_v30 = vld [vmem:[#allocation2 + $0x30] sm:$0xff] }
 0x147   : > { %1516 = vst.msk [vmem:[#allocation3 + $0xe8] sm:$0xff] %vm8464_vm0, %v1449_v29  ;;  %v1584_v43 = vpop.permute.xlu0 %1583  ;;  %v6657_v29 = vld [vmem:[#allocation2 + $0xf2] sm:$0xff] }
 0x148   : > { %1854 = vrot.lane.b32.xlu1 %v1767_v62, %s5605_s28  ;;  %1680 = vst.msk [vmem:[#allocation3] sm:$0xff] %vm8469_vm13, %v1584_v43  ;;  %8689 = vst [vmem:[#allocation83_spill] sm:$0xff] %v6657_v29 }
 0x149   : > { %1860 = vrot.lane.b32.xlu0 %v6645_v14, %s5605_s28  ;;  %v6666_v14 = vld [vmem:[#allocation2 + $0xfa] sm:$0xff] }
 0x14a   : > { %v1453_v2 = vpop.permute.xlu1 %1452  ;;  %v1773_v10 = vsel %vm6219_vm15, %v6666_v14, 0.0 }
 0x14b   : > { %1518 = vst.msk [vmem:[#allocation3 + $0xf8] sm:$0xff] %vm8464_vm0, %v1453_v2  ;;  %v1588_v62 = vpop.permute.xlu0 %1587  ;;  %v6669_v2 = vld [vmem:[#allocation2 + $0x102] sm:$0xff]  ;;  %vm8691_vm0 = vnez %v8574_v27 }
 0x14c   : > { %1858 = vrot.lane.b32.xlu1 %v1769_v8, %s5605_s28  ;;  %1682 = vst.msk [vmem:[#allocation3 + $0x10] sm:$0xff] %vm8469_vm13, %v1588_v62 }
 0x14d   : > { %1864 = vrot.lane.b32.xlu0 %v6657_v29, %s5605_s28  ;;  %v6678_v29 = vld [vmem:[#allocation2 + $0x10a] sm:$0xff] }
 0x14e   : > { %v1586_v43 = vpop.permute.xlu1 %1585  ;;  %v1775_v22 = vsel %vm6229_vm1, %v6678_v29, 0.0 }
 0x14f   : > { %1681 = vst.msk [vmem:[#allocation3 + $0x8] sm:$0xff] %vm8469_vm13, %v1586_v43  ;;  %v1592_v8 = vpop.permute.xlu0 %1591  ;;  %v1969_v43 = vsel %vm5834_vm2, %v1937_v17, 0.0  ;;  %v1941_v17 = vld [vmem:[#allocation2 + $0x40] sm:$0xff] }
 0x150   : > { %1862 = vrot.lane.b32.xlu1 %v1771_v55, %s5605_s28  ;;  %1684 = vst.msk [vmem:[#allocation3 + $0x20] sm:$0xff] %vm8469_vm13, %v1592_v8 }
 0x151   : > { %1868 = vrot.lane.b32.xlu0 %v6669_v2, %s5605_s28 }
 0x152   : > { %v1590_v62 = vpop.permute.xlu1 %1589 }
 0x153   : > { %1683 = vst.msk [vmem:[#allocation3 + $0x18] sm:$0xff] %vm8469_vm13, %v1590_v62  ;;  %v1596_v55 = vpop.permute.xlu0 %1595  ;;  %v1971_v62 = vsel %vm5838_vm3, %v1939_v30, 0.0  ;;  %v1940_v30 = vld [vmem:[#allocation2 + $0x38] sm:$0xff] }
 0x154   : > { %1866 = vrot.lane.b32.xlu1 %v1773_v10, %s5605_s28  ;;  %1686 = vst.msk [vmem:[#allocation3 + $0x30] sm:$0xff] %vm8469_vm13, %v1596_v55 }
 0x155   : > { %2033 = vrot.lane.b32.xlu0 %v1969_v43, %s5606_s29  ;;  %v1973_v43 = vsel %vm5852_vm4, %v1941_v17, 0.0  ;;  %v1942_v17 = vld [vmem:[#allocation2 + $0x48] sm:$0xff] }
 0x156   : > { %v1594_v8 = vpop.permute.xlu1 %1593 }
 0x157   : > { %1685 = vst.msk [vmem:[#allocation3 + $0x28] sm:$0xff] %vm8469_vm13, %v1594_v8  ;;  %v1600_v10 = vpop.permute.xlu0 %1599  ;;  %v1943_v8 = vld [vmem:[#allocation2 + $0x50] sm:$0xff] }
 0x158   : > { %1870 = vrot.lane.b32.xlu1 %v1775_v22, %s5605_s28  ;;  %1688 = vst.msk [vmem:[#allocation3 + $0x40] sm:$0xff] %vm8469_vm13, %v1600_v10  ;;  %v1945_v10 = vld [vmem:[#allocation2 + $0x60] sm:$0xff] }
 0x159   : > { %2037 = vrot.lane.b32.xlu0 %v1971_v62, %s5606_s29  ;;  %v1975_v62 = vsel %vm5862_vm5, %v1943_v8, 0.0 }
 0x15a   : > { %v1598_v5 = vpop.permute.xlu1 %1597 }
 0x15b   : > { %1687 = vst.msk [vmem:[#allocation3 + $0x38] sm:$0xff] %vm8469_vm13, %v1598_v5  ;;  %v1604_v55 = vpop.permute.xlu0 %1603 }
 0x15c   : > { %2035 = vrot.lane.b32.xlu1 %v1938_v57, %s5606_s29  ;;  %1690 = vst.msk [vmem:[#allocation3 + $0x50] sm:$0xff] %vm8469_vm13, %v1604_v55 }
 0x15d   : > { %2041 = vrot.lane.b32.xlu0 %v1973_v43, %s5606_s29  ;;  %v1977_v43 = vsel %vm5872_vm6, %v1945_v10, 0.0 }
 0x15e   : > { %v1602_v22 = vpop.permute.xlu1 %1601 }
 0x15f   : > { %1689 = vst.msk [vmem:[#allocation3 + $0x48] sm:$0xff] %vm8469_vm13, %v1602_v22  ;;  %v1608_v5 = vpop.permute.xlu0 %1607  ;;  %v1944_v22 = vld [vmem:[#allocation2 + $0x58] sm:$0xff] }
 0x160   : > { %2039 = vrot.lane.b32.xlu1 %v1940_v30, %s5606_s29  ;;  %1692 = vst.msk [vmem:[#allocation3 + $0x60] sm:$0xff] %vm8469_vm13, %v1608_v5  ;;  %v5579_v30 = vld [vmem:[#allocation2 + $0x70] sm:$0xff] }
 0x161   : > { %2045 = vrot.lane.b32.xlu0 %v1975_v62, %s5606_s29  ;;  %v1979_v62 = vsel %vm5876_vm7, %v5579_v30, 0.0 }
 0x162   : > { %v1606_v57 = vpop.permute.xlu1 %1605 }
 0x163   : > { %1691 = vst.msk [vmem:[#allocation3 + $0x58] sm:$0xff] %vm8469_vm13, %v1606_v57  ;;  %v1612_v55 = vpop.permute.xlu0 %1611 }
 0x164   : > { %2043 = vrot.lane.b32.xlu1 %v1942_v17, %s5606_s29  ;;  %1694 = vst.msk [vmem:[#allocation3 + $0x70] sm:$0xff] %vm8469_vm13, %v1612_v55  ;;  %v5580_v17 = vld [vmem:[#allocation2 + $0x80] sm:$0xff] }
 0x165   : > { %2049 = vrot.lane.b32.xlu0 %v1977_v43, %s5606_s29  ;;  %v1981_v57 = vsel %vm5894_vm8, %v5580_v17, 0.0 }
 0x166   : > { %v1610_v8 = vpop.permute.xlu1 %1609 }
 0x167   : > { %1693 = vst.msk [vmem:[#allocation3 + $0x68] sm:$0xff] %vm8469_vm13, %v1610_v8  ;;  %v1616_v5 = vpop.permute.xlu0 %1615 }
 0x168   : > { %2047 = vrot.lane.b32.xlu1 %v1944_v22, %s5606_s29  ;;  %1696 = vst.msk [vmem:[#allocation3 + $0x80] sm:$0xff] %vm8469_vm13, %v1616_v5  ;;  %v5581_v22 = vld [vmem:[#allocation2 + $0x90] sm:$0xff] }
 0x169   : > { %2053 = vrot.lane.b32.xlu0 %v1979_v62, %s5606_s29  ;;  %v1983_v8 = vsel %vm5898_vm9, %v5581_v22, 0.0 }
 0x16a   : > { %v1614_v10 = vpop.permute.xlu1 %1613 }
 0x16b   : > { %1695 = vst.msk [vmem:[#allocation3 + $0x78] sm:$0xff] %vm8469_vm13, %v1614_v10  ;;  %v1620_v43 = vpop.permute.xlu0 %1619 }
 0x16c   : > { %2051 = vrot.lane.b32.xlu1 %v5934_v41, %s5606_s29  ;;  %1698 = vst.msk [vmem:[#allocation3 + $0x90] sm:$0xff] %vm8469_vm13, %v1620_v43  ;;  %v5582_v41 = vld [vmem:[#allocation2 + $0xa0] sm:$0xff] }
 0x16d   : > { %2057 = vrot.lane.b32.xlu0 %v1981_v57, %s5606_s29  ;;  %v1985_v5 = vsel %vm5916_vm10, %v5582_v41, 0.0  ;;  %vm8694_vm10 = vnez %v8583_v52 }
 0x16e   : > { %v1618_v55 = vpop.permute.xlu1 %1617 }
 0x16f   : > { %1697 = vst.msk [vmem:[#allocation3 + $0x88] sm:$0xff] %vm8469_vm13, %v1618_v55  ;;  %v1624_v30 = vpop.permute.xlu0 %1623 }
 0x170   : > { %2055 = vrot.lane.b32.xlu1 %v5951_v45, %s5606_s29  ;;  %1700 = vst.msk [vmem:[#allocation3 + $0xa0] sm:$0xff] %vm8469_vm13, %v1624_v30  ;;  %v5583_v45 = vld [vmem:[#allocation2 + $0xb0] sm:$0xff] }
 0x171   : > { %2061 = vrot.lane.b32.xlu0 %v1983_v8, %s5606_s29  ;;  %v1987_v57 = vsel %vm5936_vm11, %v5583_v45, 0.0  ;;  %vm8692_vm11 = vnez %v8577_v34 }
 0x172   : > { %v1622_v62 = vpop.permute.xlu1 %1621 }
 0x173   : > { %1699 = vst.msk [vmem:[#allocation3 + $0x98] sm:$0xff] %vm8469_vm13, %v1622_v62  ;;  %v1628_v10 = vpop.permute.xlu0 %1627 }
 0x174   : > { %2059 = vrot.lane.b32.xlu1 %v5969_v39, %s5606_s29  ;;  %1702 = vst.msk [vmem:[#allocation3 + $0xb0] sm:$0xff] %vm8469_vm13, %v1628_v10  ;;  %v5584_v39 = vld [vmem:[#allocation2 + $0xc0] sm:$0xff] }
 0x175   : > { %2065 = vrot.lane.b32.xlu0 %v1985_v5, %s5606_s29  ;;  %v1989_v22 = vsel %vm8691_vm0, %v5584_v39, 0.0  ;;  %vm8693_vm0 = vnez %v8580_v38 }
 0x176   : > { %v1626_v17 = vpop.permute.xlu1 %1625 }
 0x177   : > { %1701 = vst.msk [vmem:[#allocation3 + $0xa8] sm:$0xff] %vm8469_vm13, %v1626_v17  ;;  %v1632_v43 = vpop.permute.xlu0 %1631 }
 0x178   : > { %2063 = vrot.lane.b32.xlu1 %v5973_v36, %s5606_s29  ;;  %1704 = vst.msk [vmem:[#allocation3 + $0xc0] sm:$0xff] %vm8469_vm13, %v1632_v43  ;;  %v5585_v36 = vld [vmem:[#allocation2 + $0xd0] sm:$0xff] }
 0x179   : > { %2069 = vrot.lane.b32.xlu0 %v1987_v57, %s5606_s29  ;;  %v1991_v62 = vsel %vm8692_vm11, %v5585_v36, 0.0  ;;  %vm8471_vm11 = vcmask 195744   ;;  %v1968_v36 = vld [vmem:[#allocation2 + $0x118] sm:$0xff] }
 0x17a   : > { %v1630_v55 = vpop.permute.xlu1 %1629 }
 0x17b   : > { %1703 = vst.msk [vmem:[#allocation3 + $0xb8] sm:$0xff] %vm8469_vm13, %v1630_v55  ;;  %v1636_v8 = vpop.permute.xlu0 %1635 }
 0x17c   : > { %2067 = vrot.lane.b32.xlu1 %v5986_v37, %s5606_s29  ;;  %1706 = vst.msk [vmem:[#allocation3 + $0xd0] sm:$0xff] %vm8469_vm13, %v1636_v8  ;;  %v5586_v37 = vld [vmem:[#allocation2 + $0xe0] sm:$0xff] }
 0x17d   : > { %2073 = vrot.lane.b32.xlu0 %v1989_v22, %s5606_s29  ;;  %v1993_v10 = vsel %vm8693_vm0, %v5586_v37, 0.0  ;;  %vm8695_vm0 = vnez %v8586_v21  ;;  %v1967_v22 = vld [vmem:[#allocation2 + $0x110] sm:$0xff] }
 0x17e   : > { %v1634_v30 = vpop.permute.xlu1 %1633  ;;  %v1997_v55 = vsel %vm8695_vm0, %v6351_v28, 0.0 }
 0x17f   : > { %1705 = vst.msk [vmem:[#allocation3 + $0xc8] sm:$0xff] %vm8469_vm13, %v1634_v30  ;;  %v1640_v41 = vpop.permute.xlu0 %1639 }
 0x180   : > { %2071 = vrot.lane.b32.xlu1 %v6004_v35, %s5606_s29  ;;  %1708 = vst.msk [vmem:[#allocation3 + $0xe0] sm:$0xff] %vm8469_vm13, %v1640_v41  ;;  %v5587_v35 = vld [vmem:[#allocation2 + $0xf0] sm:$0xff] }
 0x181   : > { %2077 = vrot.lane.b32.xlu0 %v1991_v62, %s5606_s29  ;;  %v1995_v57 = vsel %vm8694_vm10, %v5587_v35, 0.0  ;;  %vm8696_vm10 = vnez %v8589_v16 }
 0x182   : > { %v1638_v5 = vpop.permute.xlu1 %1637  ;;  %v1999_v8 = vsel %vm8696_vm10, %v1967_v22, 0.0  ;;  %vm8698_vm10 = vnez %v8595_v26  ;;  %v8704_v22 = vld [vmem:[#allocation44_spill] sm:$0xff] }
 0x183   : > { %1707 = vst.msk [vmem:[#allocation3 + $0xd8] sm:$0xff] %vm8469_vm13, %v1638_v5  ;;  %v1644_v17 = vpop.permute.xlu0 %1643 }
 0x184   : > { %2075 = vrot.lane.b32.xlu1 %v6015_v24, %s5606_s29  ;;  %1710 = vst.msk [vmem:[#allocation3 + $0xf0] sm:$0xff] %vm8469_vm13, %v1644_v17 }
 0x185   : > { %2081 = vrot.lane.b32.xlu0 %v1993_v10, %s5606_s29  ;;  %v2613_v10 = vld [vmem:[%s8327_s1 + $0x8] sm:$0xff] }
 0x186   : > { %v1642_v45 = vpop.permute.xlu1 %1641 }
 0x187   : > { %1709 = vst.msk [vmem:[#allocation3 + $0xe8] sm:$0xff] %vm8469_vm13, %v1642_v45  ;;  %v1809_v43 = vpop.permute.xlu0 %1808 }
 0x188   : > { %2079 = vrot.lane.b32.xlu1 %v6039_v61, %s5606_s29  ;;  %1905 = vst.msk [vmem:[#allocation3] sm:$0xff] %vm8471_vm11, %v1809_v43  ;;  %v8700_v43 = vld [vmem:[#allocation43_spill] sm:$0xff] }
 0x189   : > { %2085 = vrot.lane.b32.xlu0 %v1995_v57, %s5606_s29 }
 0x18a   : > { %v1646_v24 = vpop.permute.xlu1 %1645 }
 0x18b   : > { %1711 = vst.msk [vmem:[#allocation3 + $0xf8] sm:$0xff] %vm8469_vm13, %v1646_v24  ;;  %v1813_v39 = vpop.permute.xlu0 %1812  ;;  %vm8470_vm13 = vcmask 1043456  }
 0x18c   : > { %2083 = vrot.lane.b32.xlu1 %v6056_v15, %s5606_s29  ;;  %1907 = vst.msk [vmem:[#allocation3 + $0x10] sm:$0xff] %vm8471_vm11, %v1813_v39  ;;  %v8703_v39 = vld [vmem:[#allocation65_spill] sm:$0xff] }
 0x18d   : > { %2089 = vrot.lane.b32.xlu0 %v1997_v55, %s5606_s29 }
 0x18e   : > { %v1811_v61 = vpop.permute.xlu1 %1810 }
 0x18f   : > { %1906 = vst.msk [vmem:[#allocation3 + $0x8] sm:$0xff] %vm8471_vm11, %v1811_v61  ;;  %v1817_v30 = vpop.permute.xlu0 %1816 }
 0x190   : > { %2087 = vrot.lane.b32.xlu1 %v6072_v13, %s5606_s29  ;;  %1909 = vst.msk [vmem:[#allocation3 + $0x20] sm:$0xff] %vm8471_vm11, %v1817_v30  ;;  %v8706_v30 = vld [vmem:[#allocation66_spill] sm:$0xff] }
 0x191   : > { %2093 = vrot.lane.b32.xlu0 %v1999_v8, %s5606_s29 }
 0x192   : > { %v1815_v28 = vpop.permute.xlu1 %1814 }
 0x193   : > { %1908 = vst.msk [vmem:[#allocation3 + $0x18] sm:$0xff] %vm8471_vm11, %v1815_v28  ;;  %v1821_v15 = vpop.permute.xlu0 %1820 }
 0x194   : > { %2091 = vrot.lane.b32.xlu1 %v6366_v32, %s5606_s29  ;;  %1911 = vst.msk [vmem:[#allocation3 + $0x30] sm:$0xff] %vm8471_vm11, %v1821_v15  ;;  %v8707_v15 = vld [vmem:[#allocation67_spill] sm:$0xff] }
 0x195   : > { %2226 = vrot.lane.b32.xlu0 %v6371_v4, %s5607_s30 }
 0x196   : > { %v1819_v62 = vpop.permute.xlu1 %1818 }
 0x197   : > { %1910 = vst.msk [vmem:[#allocation3 + $0x28] sm:$0xff] %vm8471_vm11, %v1819_v62  ;;  %v1825_v13 = vpop.permute.xlu0 %1824 }
 0x198   : > { %2095 = vrot.lane.b32.xlu1 %v1968_v36, %s5606_s29  ;;  %1913 = vst.msk [vmem:[#allocation3 + $0x40] sm:$0xff] %vm8471_vm11, %v1825_v13  ;;  %v8708_v36 = vld [vmem:[#allocation45_spill] sm:$0xff] }
 0x199   : > { %2230 = vrot.lane.b32.xlu0 %v6379_v54, %s5607_s30  ;;  %vm8709_vm0 = vnez %v8708_v36 }
 0x19a   : > { %v1823_v41 = vpop.permute.xlu1 %1822  ;;  %v2396_v62 = vsel %vm8709_vm0, %v8707_v15, 0.0 }
 0x19b   : > { %1912 = vst.msk [vmem:[#allocation3 + $0x38] sm:$0xff] %vm8471_vm11, %v1823_v41  ;;  %v1829_v32 = vpop.permute.xlu0 %1828  ;;  %v8710_v41 = vld [vmem:[#allocation68_spill] sm:$0xff] }
 0x19c   : > { %2228 = vrot.lane.b32.xlu1 %v6382_v7, %s5607_s30  ;;  %1915 = vst.msk [vmem:[#allocation3 + $0x50] sm:$0xff] %vm8471_vm11, %v1829_v32 }
 0x19d   : > { %2234 = vrot.lane.b32.xlu0 %v6388_v12, %s5607_s30 }
 0x19e   : > { %v1827_v4 = vpop.permute.xlu1 %1826 }
 0x19f   : > { %1914 = vst.msk [vmem:[#allocation3 + $0x48] sm:$0xff] %vm8471_vm11, %v1827_v4  ;;  %v1833_v5 = vpop.permute.xlu0 %1832  ;;  %v8711_v4 = vld [vmem:[#allocation69_spill] sm:$0xff] }
 0x1a0   : > { %2232 = vrot.lane.b32.xlu1 %v6392_v53, %s5607_s30  ;;  %1917 = vst.msk [vmem:[#allocation3 + $0x60] sm:$0xff] %vm8471_vm11, %v1833_v5  ;;  %v8712_v5 = vld [vmem:[#allocation46_spill] sm:$0xff] }
 0x1a1   : > { %2238 = vrot.lane.b32.xlu0 %v6398_v47, %s5607_s30 }
 0x1a2   : > { %v1831_v54 = vpop.permute.xlu1 %1830 }
 0x1a3   : > { %1916 = vst.msk [vmem:[#allocation3 + $0x58] sm:$0xff] %vm8471_vm11, %v1831_v54  ;;  %v1837_v7 = vpop.permute.xlu0 %1836 }
 0x1a4   : > { %2236 = vrot.lane.b32.xlu1 %v6402_v3, %s5607_s30  ;;  %1919 = vst.msk [vmem:[#allocation3 + $0x70] sm:$0xff] %vm8471_vm11, %v1837_v7  ;;  %v2616_v3 = vld [vmem:[%s8327_s1 + $0x20] sm:$0xf] }
 0x1a5   : > { %2242 = vrot.lane.b32.xlu0 %v6408_v23, %s5607_s30  ;;  %5446 = vmatprep.subr.msk.mxu0 %vm8470_vm13, %v2616_v3 }
 0x1a6   : > { %v1835_v12 = vpop.permute.xlu1 %1834  ;;  %5447 = vmatpush3.msk.msra.mxu0 %vm8470_vm13, %v2616_v3  ;;  %vm8697_vm13 = vnez %v8593_v9  ;;  %v8716_v3 = vld [vmem:[#allocation47_spill] sm:$0xff] }
 0x1a7   : > { %1918 = vst.msk [vmem:[#allocation3 + $0x68] sm:$0xff] %vm8471_vm11, %v1835_v12  ;;  %v1841_v53 = vpop.permute.xlu0 %1840  ;;  %v8714_v12 = vld [vmem:[#allocation70_spill] sm:$0xff] }
 0x1a8   : > { %2240 = vrot.lane.b32.xlu1 %v6412_v19, %s5607_s30  ;;  %1921 = vst.msk [vmem:[#allocation3 + $0x80] sm:$0xff] %vm8471_vm11, %v1841_v53 }
 0x1a9   : > { %2246 = vrot.lane.b32.xlu0 %v6418_v11, %s5607_s30  ;;  %v2615_v11 = vld [vmem:[%s8327_s1 + $0x18] sm:$0xff] }
 0x1aa   : > { %v1839_v47 = vpop.permute.xlu1 %1838  ;;  %5448 = vmatprep.subr.mxu0 %v2615_v11 }
 0x1ab   : > { %1920 = vst.msk [vmem:[#allocation3 + $0x78] sm:$0xff] %vm8471_vm11, %v1839_v47  ;;  %v1845_v23 = vpop.permute.xlu0 %1844  ;;  %5449 = vmatpush3.msra.mxu0 %v2615_v11  ;;  %v8715_v47 = vld [vmem:[#allocation71_spill] sm:$0xff]  ;;  %v8718_v11 = vld [vmem:[#allocation72_spill] sm:$0xff] }
 0x1ac   : > { %2244 = vrot.lane.b32.xlu1 %v6422_v48, %s5607_s30  ;;  %1923 = vst.msk [vmem:[#allocation3 + $0x90] sm:$0xff] %vm8471_vm11, %v1845_v23  ;;  %v2614_v48 = vld [vmem:[%s8327_s1 + $0x10] sm:$0xff] }
 0x1ad   : > { %2250 = vrot.lane.b32.xlu0 %v6428_v46, %s5607_s30  ;;  %5450 = vmatprep.subr.mxu0 %v2614_v48 }
 0x1ae   : > { %v1843_v19 = vpop.permute.xlu1 %1842  ;;  %5451 = vmatpush3.msra.mxu0 %v2614_v48 }
 0x1af   : > { %1922 = vst.msk [vmem:[#allocation3 + $0x88] sm:$0xff] %vm8471_vm11, %v1843_v19  ;;  %v1849_v37 = vpop.permute.xlu0 %1848  ;;  %5452 = vmatprep.subr.mxu0 %v2613_v10 }
 0x1b0   : > { %2248 = vrot.lane.b32.xlu1 %v6432_v56, %s5607_s30  ;;  %1925 = vst.msk [vmem:[#allocation3 + $0xa0] sm:$0xff] %vm8471_vm11, %v1849_v37  ;;  %v2612_v56 = vld [vmem:[%s8327_s1] sm:$0xff]  ;;  %5453 = vmatpush3.msra.mxu0 %v2613_v10  ;;  %v8719_v37 = vld [vmem:[#allocation73_spill] sm:$0xff] }
 0x1b1   : > { %2254 = vrot.lane.b32.xlu0 %v6438_v0, %s5607_s30  ;;  %5454 = vmatprep.subr.mxu0 %v2612_v56 }
 0x1b2   : > { %v1847_v46 = vpop.permute.xlu1 %1846  ;;  %5455 = vmatpush3.msra.mxu0 %v2612_v56 }
 0x1b3   : > { %1924 = vst.msk [vmem:[#allocation3 + $0x98] sm:$0xff] %vm8471_vm11, %v1847_v46  ;;  %v1853_v17 = vpop.permute.xlu0 %1852  ;;  %v8720_v46 = vld [vmem:[#allocation48_spill] sm:$0xff] }
 0x1b4   : > { %2252 = vrot.lane.b32.xlu1 %v6442_v31, %s5607_s30  ;;  %1927 = vst.msk [vmem:[#allocation3 + $0xb0] sm:$0xff] %vm8471_vm11, %v1853_v17  ;;  %v2388_v31 = vsel %vm8697_vm13, %v6510_v18, 0.0  ;;  %vm8701_vm13 = vnez %v8700_v43  ;;  %v8722_v17 = vld [vmem:[#allocation57_spill] sm:$0xff] }
 0x1b5   : > { %2451 = vrot.lane.b32.xlu0 %v6502_v1, %s5608_s16 }
 0x1b6   : > { %v1851_v0 = vpop.permute.xlu1 %1850 }
 0x1b7   : > { %1926 = vst.msk [vmem:[#allocation3 + $0xa8] sm:$0xff] %vm8471_vm11, %v1851_v0  ;;  %v1857_v45 = vpop.permute.xlu0 %1856 }
 0x1b8   : > { %2256 = vrot.lane.b32.xlu1 %v6452_v40, %s5607_s30  ;;  %1929 = vst.msk [vmem:[#allocation3 + $0xc0] sm:$0xff] %vm8471_vm11, %v1857_v45  ;;  %v2390_v40 = vsel %vm8698_vm10, %v6522_v63, 0.0  ;;  %v8702_v63 = vld [vmem:[#allocation64_spill] sm:$0xff]  ;;  %vm8705_vm10 = vnez %v8704_v22 }
 0x1b9   : > { %2455 = vrot.lane.b32.xlu0 %v6513_v6, %s5608_s16  ;;  %v8699_v6 = vld [vmem:[#allocation63_spill] sm:$0xff]  ;;  %v2394_v61 = vsel %vm8705_vm10, %v8703_v39, 0.0  ;;  %vm8713_vm10 = vnez %v8712_v5  ;;  %v8730_v39 = vld [vmem:[#allocation61_spill] sm:$0xff] }
 0x1ba   : > { %v1855_v35 = vpop.permute.xlu1 %1854  ;;  %v2392_v24 = vsel %vm8701_vm13, %v8699_v6, 0.0  ;;  %vm8473_vm13 = vcmask 228544   ;;  %v2398_v54 = vsel %vm8713_vm10, %v8711_v4, 0.0  ;;  %vm8721_vm10 = vnez %v8720_v46  ;;  %v2184_v4 = vld [vmem:[#allocation2 + $0xd1] sm:$0xff] }
 0x1bb   : > { %1928 = vst.msk [vmem:[#allocation3 + $0xb8] sm:$0xff] %vm8471_vm11, %v1855_v35  ;;  %v1861_v1 = vpop.permute.xlu0 %1860  ;;  %v2402_v10 = vsel %vm8721_vm10, %v8719_v37, 0.0  ;;  %v8724_v35 = vld [vmem:[#allocation59_spill] sm:$0xff] }
 0x1bc   : > { %2453 = vrot.lane.b32.xlu1 %v2388_v31, %s5608_s16  ;;  %1931 = vst.msk [vmem:[#allocation3 + $0xd0] sm:$0xff] %vm8471_vm11, %v1861_v1  ;;  %v8723_v31 = vld [vmem:[#allocation74_spill] sm:$0xff] }
 0x1bd   : > { %2459 = vrot.lane.b32.xlu0 %v6525_v51, %s5608_s16 }
 0x1be   : > { %v1859_v57 = vpop.permute.xlu1 %1858 }
 0x1bf   : > { %1930 = vst.msk [vmem:[#allocation3 + $0xc8] sm:$0xff] %vm8471_vm11, %v1859_v57  ;;  %v1865_v18 = vpop.permute.xlu0 %1864  ;;  %v8726_v57 = vld [vmem:[#allocation49_spill] sm:$0xff] }
 0x1c0   : > { %2457 = vrot.lane.b32.xlu1 %v2390_v40, %s5608_s16  ;;  %1933 = vst.msk [vmem:[#allocation3 + $0xe0] sm:$0xff] %vm8471_vm11, %v1865_v18  ;;  %v8725_v40 = vld [vmem:[#allocation75_spill] sm:$0xff]  ;;  %vm8727_vm10 = vnez %v8726_v57 }
 0x1c1   : > { %2463 = vrot.lane.b32.xlu0 %v8702_v63, %s5608_s16  ;;  %v2404_v18 = vsel %vm8727_vm10, %v8725_v40, 0.0  ;;  %v2188_v40 = vld [vmem:[#allocation2 + $0xf1] sm:$0xff] }
 0x1c2   : > { %v1863_v55 = vpop.permute.xlu1 %1862 }
 0x1c3   : > { %1932 = vst.msk [vmem:[#allocation3 + $0xd8] sm:$0xff] %vm8471_vm11, %v1863_v55  ;;  %v1869_v51 = vpop.permute.xlu0 %1868 }
 0x1c4   : > { %2461 = vrot.lane.b32.xlu1 %v2392_v24, %s5608_s16  ;;  %1935 = vst.msk [vmem:[#allocation3 + $0xf0] sm:$0xff] %vm8471_vm11, %v1869_v51  ;;  %v8728_v24 = vld [vmem:[#allocation58_spill] sm:$0xff]  ;;  %v8729_v51 = vld [vmem:[#allocation76_spill] sm:$0xff] }
 0x1c5   : > { %2467 = vrot.lane.b32.xlu0 %v8706_v30, %s5608_s16  ;;  %v8732_v30 = vld [vmem:[#allocation50_spill] sm:$0xff] }
 0x1c6   : > { %v1867_v8 = vpop.permute.xlu1 %1866  ;;  %vm8733_vm10 = vnez %v8732_v30 }
 0x1c7   : > { %1934 = vst.msk [vmem:[#allocation3 + $0xe8] sm:$0xff] %vm8471_vm11, %v1867_v8  ;;  %v2034_v28 = vpop.permute.xlu0 %2033  ;;  %v8731_v8 = vld [vmem:[#allocation77_spill] sm:$0xff] }
 0x1c8   : > { %2465 = vrot.lane.b32.xlu1 %v2394_v61, %s5608_s16  ;;  %2130 = vst.msk [vmem:[#allocation3] sm:$0xff] %vm8473_vm13, %v2034_v28  ;;  %v2406_v28 = vsel %vm8733_vm10, %v8731_v8, 0.0  ;;  %v8746_v8 = vld [vmem:[#allocation83_spill] sm:$0xff] }
 0x1c9   : > { %2471 = vrot.lane.b32.xlu0 %v8710_v41, %s5608_s16 }
 0x1ca   : > { %v1871_v13 = vpop.permute.xlu1 %1870 }
 0x1cb   : > { %1936 = vst.msk [vmem:[#allocation3 + $0xf8] sm:$0xff] %vm8471_vm11, %v1871_v13  ;;  %v2038_v32 = vpop.permute.xlu0 %2037  ;;  %vm8717_vm11 = vnez %v8716_v3 }
 0x1cc   : > { %2469 = vrot.lane.b32.xlu1 %v2396_v62, %s5608_s16  ;;  %2132 = vst.msk [vmem:[#allocation3 + $0x10] sm:$0xff] %vm8473_vm13, %v2038_v32  ;;  %v2400_v23 = vsel %vm8717_vm11, %v8715_v47, 0.0  ;;  %v8734_v62 = vld [vmem:[#allocation60_spill] sm:$0xff]  ;;  %v8735_v32 = vld [vmem:[#allocation78_spill] sm:$0xff] }
 0x1cd   : > { %2475 = vrot.lane.b32.xlu0 %v8714_v12, %s5608_s16  ;;  %v8737_v12 = vld [vmem:[#allocation51_spill] sm:$0xff] }
 0x1ce   : > { %v2036_v7 = vpop.permute.xlu1 %2035  ;;  %vm8738_vm10 = vnez %v8737_v12 }
 0x1cf   : > { %2131 = vst.msk [vmem:[#allocation3 + $0x8] sm:$0xff] %vm8473_vm13, %v2036_v7  ;;  %v2042_v53 = vpop.permute.xlu0 %2041 }
 0x1d0   : > { %2473 = vrot.lane.b32.xlu1 %v2398_v54, %s5608_s16  ;;  %2134 = vst.msk [vmem:[#allocation3 + $0x20] sm:$0xff] %vm8473_vm13, %v2042_v53  ;;  %v8736_v54 = vld [vmem:[#allocation62_spill] sm:$0xff]  ;;  %v2408_v53 = vsel %vm8738_vm10, %v6630_v20, 0.0  ;;  %v2186_v20 = vld [vmem:[#allocation2 + $0xe1] sm:$0xff] }
 0x1d1   : > { %2479 = vrot.lane.b32.xlu0 %v8718_v11, %s5608_s16 }
 0x1d2   : > { %v2040_v19 = vpop.permute.xlu1 %2039 }
 0x1d3   : > { %2133 = vst.msk [vmem:[#allocation3 + $0x18] sm:$0xff] %vm8473_vm13, %v2040_v19  ;;  %v2046_v48 = vpop.permute.xlu0 %2045  ;;  %v2185_v19 = vld [vmem:[#allocation2 + $0xd9] sm:$0xff] }
 0x1d4   : > { %2477 = vrot.lane.b32.xlu1 %v2400_v23, %s5608_s16  ;;  %2136 = vst.msk [vmem:[#allocation3 + $0x30] sm:$0xff] %vm8473_vm13, %v2046_v48  ;;  %v8739_v48 = vld [vmem:[#allocation79_spill] sm:$0xff] }
 0x1d5   : > { %2258 = vrot.lane.b32.xlu0 %v8722_v17, %s5607_s30 }
 0x1d6   : > { %v2044_v56 = vpop.permute.xlu1 %2043 }
 0x1d7   : > { %2135 = vst.msk [vmem:[#allocation3 + $0x28] sm:$0xff] %vm8473_vm13, %v2044_v56  ;;  %v2050_v0 = vpop.permute.xlu0 %2049  ;;  %v8741_v56 = vld [vmem:[#allocation52_spill] sm:$0xff] }
 0x1d8   : > { %2481 = vrot.lane.b32.xlu1 %v2402_v10, %s5608_s16  ;;  %2138 = vst.msk [vmem:[#allocation3 + $0x40] sm:$0xff] %vm8473_vm13, %v2050_v0  ;;  %v8740_v10 = vld [vmem:[#allocation80_spill] sm:$0xff]  ;;  %vm8742_vm10 = vnez %v8741_v56 }
 0x1d9   : > { %2483 = vrot.lane.b32.xlu0 %v8723_v31, %s5608_s16  ;;  %v2410_v17 = vsel %vm8742_vm10, %v8740_v10, 0.0  ;;  %v2187_v31 = vld [vmem:[#allocation2 + $0xe9] sm:$0xff] }
 0x1da   : > { %v2048_v45 = vpop.permute.xlu1 %2047 }
 0x1db   : > { %2137 = vst.msk [vmem:[#allocation3 + $0x38] sm:$0xff] %vm8473_vm13, %v2048_v45  ;;  %v2054_v1 = vpop.permute.xlu0 %2053 }
 0x1dc   : > { %2260 = vrot.lane.b32.xlu1 %v8724_v35, %s5607_s30  ;;  %2140 = vst.msk [vmem:[#allocation3 + $0x50] sm:$0xff] %vm8473_vm13, %v2054_v1  ;;  %v8743_v1 = vld [vmem:[#allocation81_spill] sm:$0xff] }
 0x1dd   : > { %2262 = vrot.lane.b32.xlu0 %v8728_v24, %s5607_s30  ;;  %v8745_v24 = vld [vmem:[#allocation53_spill] sm:$0xff] }
 0x1de   : > { %v2052_v6 = vpop.permute.xlu1 %2051 }
 0x1df   : > { %2139 = vst.msk [vmem:[#allocation3 + $0x48] sm:$0xff] %vm8473_vm13, %v2052_v6  ;;  %v2058_v55 = vpop.permute.xlu0 %2057  ;;  %v8744_v6 = vld [vmem:[#allocation82_spill] sm:$0xff] }
 0x1e0   : > { %2485 = vrot.lane.b32.xlu1 %v2404_v18, %s5608_s16  ;;  %2142 = vst.msk [vmem:[#allocation3 + $0x60] sm:$0xff] %vm8473_vm13, %v2058_v55  ;;  %v2412_v55 = vsel %vm8687_vm12, %v8744_v6, 0.0  ;;  %vm8479_vm12 = vcmask 261344  }
 0x1e1   : > { %2487 = vrot.lane.b32.xlu0 %v8729_v51, %s5608_s16 }
 0x1e2   : > { %v2056_v63 = vpop.permute.xlu1 %2055 }
 0x1e3   : > { %2141 = vst.msk [vmem:[#allocation3 + $0x58] sm:$0xff] %vm8473_vm13, %v2056_v63  ;;  %v2062_v61 = vpop.permute.xlu0 %2061 }
 0x1e4   : > { %2264 = vrot.lane.b32.xlu1 %v8730_v39, %s5607_s30  ;;  %2144 = vst.msk [vmem:[#allocation3 + $0x70] sm:$0xff] %vm8473_vm13, %v2062_v61  ;;  %v2189_v39 = vld [vmem:[#allocation2 + $0xf9] sm:$0xff] }
 0x1e5   : > { %2266 = vrot.lane.b32.xlu0 %v8734_v62, %s5607_s30  ;;  %v8747_v62 = vld [vmem:[#allocation54_spill] sm:$0xff] }
 0x1e6   : > { %v2060_v15 = vpop.permute.xlu1 %2059 }
 0x1e7   : > { %2143 = vst.msk [vmem:[#allocation3 + $0x68] sm:$0xff] %vm8473_vm13, %v2060_v15  ;;  %v2066_v13 = vpop.permute.xlu0 %2065 }
 0x1e8   : > { %2489 = vrot.lane.b32.xlu1 %v2406_v28, %s5608_s16  ;;  %2146 = vst.msk [vmem:[#allocation3 + $0x80] sm:$0xff] %vm8473_vm13, %v2066_v13  ;;  %v2190_v28 = vld [vmem:[#allocation2 + $0x101] sm:$0xff]  ;;  %v2414_v13 = vsel %vm8690_vm14, %v6666_v14, 0.0  ;;  %v2192_v14 = vld [vmem:[#allocation2 + $0x111] sm:$0xff]  ;;  %vm8751_vm14 = vcmask 64544  }
 0x1e9   : > { %2491 = vrot.lane.b32.xlu0 %v8735_v32, %s5608_s16 }
 0x1ea   : > { %v2064_v41 = vpop.permute.xlu1 %2063 }
 0x1eb   : > { %2145 = vst.msk [vmem:[#allocation3 + $0x78] sm:$0xff] %vm8473_vm13, %v2064_v41  ;;  %v2070_v7 = vpop.permute.xlu0 %2069 }
 0x1ec   : > { %2268 = vrot.lane.b32.xlu1 %v8736_v54, %s5607_s30  ;;  %2148 = vst.msk [vmem:[#allocation3 + $0x90] sm:$0xff] %vm8473_vm13, %v2070_v7 }
 0x1ed   : > { %2270 = vrot.lane.b32.xlu0 %v2184_v4, %s5607_s30  ;;  %v2191_v4 = vld [vmem:[#allocation2 + $0x109] sm:$0xff] }
 0x1ee   : > { %v2068_v47 = vpop.permute.xlu1 %2067 }
 0x1ef   : > { %2147 = vst.msk [vmem:[#allocation3 + $0x88] sm:$0xff] %vm8473_vm13, %v2068_v47  ;;  %v2074_v23 = vpop.permute.xlu0 %2073  ;;  %v2416_v47 = vsel %vm6219_vm15, %v6678_v29, 0.0  ;;  %vm8750_vm15 = vcmask 31744  }
 0x1f0   : > { %2493 = vrot.lane.b32.xlu1 %v2408_v53, %s5608_s16  ;;  %2150 = vst.msk [vmem:[#allocation3 + $0xa0] sm:$0xff] %vm8473_vm13, %v2074_v23  ;;  %v8748_v53 = vld [vmem:[#allocation55_spill] sm:$0xff] }
 0x1f1   : > { %2495 = vrot.lane.b32.xlu0 %v8739_v48, %s5608_s16 }
 0x1f2   : > { %v2072_v11 = vpop.permute.xlu1 %2071 }
 0x1f3   : > { %2149 = vst.msk [vmem:[#allocation3 + $0x98] sm:$0xff] %vm8473_vm13, %v2072_v11  ;;  %v2078_v37 = vpop.permute.xlu0 %2077  ;;  %v2193_v11 = vld [vmem:[#allocation2 + $0x119] sm:$0xff] }
 0x1f4   : > { %2272 = vrot.lane.b32.xlu1 %v2185_v19, %s5607_s30  ;;  %2152 = vst.msk [vmem:[#allocation3 + $0xb0] sm:$0xff] %vm8473_vm13, %v2078_v37  ;;  %v2385_v19 = vld [vmem:[#allocation2 + $0x112] sm:$0xff]  ;;  %v8749_v37 = vld [vmem:[#allocation56_spill] sm:$0xff] }
 0x1f5   : > { %2274 = vrot.lane.b32.xlu0 %v2186_v20, %s5607_s30  ;;  %v2386_v20 = vld [vmem:[#allocation2 + $0x11a] sm:$0xff] }
 0x1f6   : > { %v2076_v0 = vpop.permute.xlu1 %2075  ;;  %v2418_v10 = vsel %vm6229_vm1, %v2386_v20, 0.0  ;;  %vm8482_vm1 = vcmask 293888  }
 0x1f7   : > { %2151 = vst.msk [vmem:[#allocation3 + $0xa8] sm:$0xff] %vm8473_vm13, %v2076_v0  ;;  %v2082_v45 = vpop.permute.xlu0 %2081 }
 0x1f8   : > { %2497 = vrot.lane.b32.xlu1 %v2410_v17, %s5608_s16  ;;  %2154 = vst.msk [vmem:[#allocation3 + $0xc0] sm:$0xff] %vm8473_vm13, %v2082_v45 }
 0x1f9   : > { %2499 = vrot.lane.b32.xlu0 %v8743_v1, %s5608_s16 }
 0x1fa   : > { %v2080_v35 = vpop.permute.xlu1 %2079 }
 0x1fb   : > { %2153 = vst.msk [vmem:[#allocation3 + $0xb8] sm:$0xff] %vm8473_vm13, %v2080_v35  ;;  %v2086_v18 = vpop.permute.xlu0 %2085 }
 0x1fc   : > { %2276 = vrot.lane.b32.xlu1 %v2187_v31, %s5607_s30  ;;  %2156 = vst.msk [vmem:[#allocation3 + $0xd0] sm:$0xff] %vm8473_vm13, %v2086_v18 }
 0x1fd   : > { %2278 = vrot.lane.b32.xlu0 %v2188_v40, %s5607_s30 }
 0x1fe   : > { %v2084_v63 = vpop.permute.xlu1 %2083 }
 0x1ff   : > { %2155 = vst.msk [vmem:[#allocation3 + $0xc8] sm:$0xff] %vm8473_vm13, %v2084_v63  ;;  %v2090_v51 = vpop.permute.xlu0 %2089 }
 0x200   : > { %2501 = vrot.lane.b32.xlu1 %v2412_v55, %s5608_s16  ;;  %2158 = vst.msk [vmem:[#allocation3 + $0xe0] sm:$0xff] %vm8473_vm13, %v2090_v51 }
 0x201   : > { %2503 = vrot.lane.b32.xlu0 %v8746_v8, %s5608_s16 }
 0x202   : > { %v2088_v61 = vpop.permute.xlu1 %2087 }
 0x203   : > { %2157 = vst.msk [vmem:[#allocation3 + $0xd8] sm:$0xff] %vm8473_vm13, %v2088_v61  ;;  %v2094_v15 = vpop.permute.xlu0 %2093 }
 0x204   : > { %2280 = vrot.lane.b32.xlu1 %v2189_v39, %s5607_s30  ;;  %2160 = vst.msk [vmem:[#allocation3 + $0xf0] sm:$0xff] %vm8473_vm13, %v2094_v15 }
 0x205   : > { %2282 = vrot.lane.b32.xlu0 %v2190_v28, %s5607_s30 }
 0x206   : > { %v2092_v41 = vpop.permute.xlu1 %2091 }
 0x207   : > { %2159 = vst.msk [vmem:[#allocation3 + $0xe8] sm:$0xff] %vm8473_vm13, %v2092_v41  ;;  %v2227_v32 = vpop.permute.xlu0 %2226 }
 0x208   : > { %2505 = vrot.lane.b32.xlu1 %v2414_v13, %s5608_s16  ;;  %2323 = vst.msk [vmem:[#allocation3] sm:$0xff] %vm8479_vm12, %v2227_v32 }
 0x209   : > { %2507 = vrot.lane.b32.xlu0 %v6669_v2, %s5608_s16 }
 0x20a   : > { %v2096_v54 = vpop.permute.xlu1 %2095 }
 0x20b   : > { %2161 = vst.msk [vmem:[#allocation3 + $0xf8] sm:$0xff] %vm8473_vm13, %v2096_v54  ;;  %v2231_v7 = vpop.permute.xlu0 %2230  ;;  %vm8480_vm13 = vcmask 294144  }
 0x20c   : > { %2284 = vrot.lane.b32.xlu1 %v2191_v4, %s5607_s30  ;;  %2325 = vst.msk [vmem:[#allocation3 + $0x10] sm:$0xff] %vm8479_vm12, %v2231_v7 }
 0x20d   : > { %2286 = vrot.lane.b32.xlu0 %v2192_v14, %s5607_s30 }
 0x20e   : > { %v2229_v23 = vpop.permute.xlu1 %2228 }
 0x20f   : > { %2324 = vst.msk [vmem:[#allocation3 + $0x8] sm:$0xff] %vm8479_vm12, %v2229_v23  ;;  %v2235_v2 = vpop.permute.xlu0 %2234 }
 0x210   : > { %2509 = vrot.lane.b32.xlu1 %v2416_v47, %s5608_s16  ;;  %2327 = vst.msk [vmem:[#allocation3 + $0x20] sm:$0xff] %vm8479_vm12, %v2235_v2 }
 0x211   : > { %2511 = vrot.lane.b32.xlu0 %v2385_v19, %s5608_s16 }
 0x212   : > { %v2233_v48 = vpop.permute.xlu1 %2232 }
 0x213   : > { %2326 = vst.msk [vmem:[#allocation3 + $0x18] sm:$0xff] %vm8479_vm12, %v2233_v48  ;;  %v2239_v29 = vpop.permute.xlu0 %2238 }
 0x214   : > { %2288 = vrot.lane.b32.xlu1 %v2193_v11, %s5607_s30  ;;  %2329 = vst.msk [vmem:[#allocation3 + $0x30] sm:$0xff] %vm8479_vm12, %v2239_v29 }
 0x216   : > { %v2237_v17 = vpop.permute.xlu1 %2236 }
 0x217   : > { %2328 = vst.msk [vmem:[#allocation3 + $0x28] sm:$0xff] %vm8479_vm12, %v2237_v17  ;;  %v2243_v0 = vpop.permute.xlu0 %2242 }
 0x218   : > { %2513 = vrot.lane.b32.xlu1 %v2418_v10, %s5608_s16  ;;  %2331 = vst.msk [vmem:[#allocation3 + $0x40] sm:$0xff] %vm8479_vm12, %v2243_v0 }
 0x21a   : > { %v2241_v45 = vpop.permute.xlu1 %2240 }
 0x21b   : > { %2330 = vst.msk [vmem:[#allocation3 + $0x38] sm:$0xff] %vm8479_vm12, %v2241_v45  ;;  %v2247_v31 = vpop.permute.xlu0 %2246 }
 0x21c   : > { %2333 = vst.msk [vmem:[#allocation3 + $0x50] sm:$0xff] %vm8479_vm12, %v2247_v31 }
 0x21e   : > { %v2245_v35 = vpop.permute.xlu1 %2244 }
 0x21f   : > { %2332 = vst.msk [vmem:[#allocation3 + $0x48] sm:$0xff] %vm8479_vm12, %v2245_v35  ;;  %v2251_v1 = vpop.permute.xlu0 %2250 }
 0x220   : > { %2335 = vst.msk [vmem:[#allocation3 + $0x60] sm:$0xff] %vm8479_vm12, %v2251_v1 }
 0x222   : > { %v2249_v40 = vpop.permute.xlu1 %2248 }
 0x223   : > { %2334 = vst.msk [vmem:[#allocation3 + $0x58] sm:$0xff] %vm8479_vm12, %v2249_v40  ;;  %v2255_v18 = vpop.permute.xlu0 %2254 }
 0x224   : > { %2337 = vst.msk [vmem:[#allocation3 + $0x70] sm:$0xff] %vm8479_vm12, %v2255_v18 }
 0x226   : > { %v2253_v6 = vpop.permute.xlu1 %2252 }
 0x227   : > { %2336 = vst.msk [vmem:[#allocation3 + $0x68] sm:$0xff] %vm8479_vm12, %v2253_v6  ;;  %v2452_v55 = vpop.permute.xlu0 %2451 }
 0x228   : > { %2548 = vst.msk [vmem:[#allocation3] sm:$0xff] %vm8480_vm13, %v2452_v55 }
 0x22a   : > { %v2257_v63 = vpop.permute.xlu1 %2256 }
 0x22b   : > { %2338 = vst.msk [vmem:[#allocation3 + $0x78] sm:$0xff] %vm8479_vm12, %v2257_v63  ;;  %v2456_v51 = vpop.permute.xlu0 %2455 }
 0x22c   : > { %2550 = vst.msk [vmem:[#allocation3 + $0x10] sm:$0xff] %vm8480_vm13, %v2456_v51 }
 0x22e   : > { %v2454_v39 = vpop.permute.xlu1 %2453 }
 0x22f   : > { %2549 = vst.msk [vmem:[#allocation3 + $0x8] sm:$0xff] %vm8480_vm13, %v2454_v39  ;;  %v2460_v61 = vpop.permute.xlu0 %2459  ;;  %v2580_v8 = vld [vmem:[#allocation3] sm:$0xff] }
 0x230   : > { %2552 = vst.msk [vmem:[#allocation3 + $0x20] sm:$0xff] %vm8480_vm13, %v2460_v61  ;;  %5456 = vmatprep.mubr.msk.f32.mxu0 %vm8482_vm1, %v2580_v8 }
 0x232   : > { %v2458_v28 = vpop.permute.xlu1 %2457 }
 0x233   : > { %2551 = vst.msk [vmem:[#allocation3 + $0x18] sm:$0xff] %vm8480_vm13, %v2458_v28  ;;  %v2464_v15 = vpop.permute.xlu0 %2463  ;;  %v2582_v13 = vld [vmem:[#allocation3 + $0x10] sm:$0xff] }
 0x234   : > { %2554 = vst.msk [vmem:[#allocation3 + $0x30] sm:$0xff] %vm8480_vm13, %v2464_v15 }
 0x236   : > { %v2462_v41 = vpop.permute.xlu1 %2461  ;;  %v2581_v32 = vld [vmem:[#allocation3 + $0x8] sm:$0xff] }
 0x237   : > { %2553 = vst.msk [vmem:[#allocation3 + $0x28] sm:$0xff] %vm8480_vm13, %v2462_v41  ;;  %5457 = vmatmul.mubr.msk.f32.vlgmr.msra.gmra.mxu0 %vm8482_vm1, %v2581_v32  ;;  %v2468_v4 = vpop.permute.xlu0 %2467  ;;  %v2584_v54 = vld [vmem:[#allocation3 + $0x20] sm:$0xff] }
 0x238   : > { %5459 = vmatprep.mubr.msk.f32.mxu0 %vm8482_vm1, %v2582_v13  ;;  %2556 = vst.msk [vmem:[#allocation3 + $0x40] sm:$0xff] %vm8480_vm13, %v2468_v4 }
 0x23a   : > { %v2466_v14 = vpop.permute.xlu1 %2465  ;;  %v2583_v7 = vld [vmem:[#allocation3 + $0x18] sm:$0xff] }
 0x23b   : > { %2555 = vst.msk [vmem:[#allocation3 + $0x38] sm:$0xff] %vm8480_vm13, %v2466_v14  ;;  %5460 = vmatmul.mubr.msk.f32.gmra.mxu0 %vm8482_vm1, %v2583_v7  ;;  %v2472_v47 = vpop.permute.xlu0 %2471  ;;  %v2586_v23 = vld [vmem:[#allocation3 + $0x30] sm:$0xff] }
 0x23c   : > { %5462 = vmatprep.mubr.msk.f32.mxu0 %vm8482_vm1, %v2584_v54  ;;  %2558 = vst.msk [vmem:[#allocation3 + $0x50] sm:$0xff] %vm8480_vm13, %v2472_v47 }
 0x23e   : > { %v2470_v19 = vpop.permute.xlu1 %2469  ;;  %v2585_v2 = vld [vmem:[#allocation3 + $0x28] sm:$0xff] }
 0x23f   : > { %2557 = vst.msk [vmem:[#allocation3 + $0x48] sm:$0xff] %vm8480_vm13, %v2470_v19  ;;  %5463 = vmatmul.mubr.msk.f32.gmra.mxu0 %vm8482_vm1, %v2585_v2  ;;  %v2476_v11 = vpop.permute.xlu0 %2475  ;;  %v2588_v48 = vld [vmem:[#allocation3 + $0x40] sm:$0xff] }
 0x240   : > { %5465 = vmatprep.mubr.msk.f32.mxu0 %vm8482_vm1, %v2586_v23  ;;  %2560 = vst.msk [vmem:[#allocation3 + $0x60] sm:$0xff] %vm8480_vm13, %v2476_v11 }
 0x242   : > { %v2474_v20 = vpop.permute.xlu1 %2473  ;;  %v2587_v29 = vld [vmem:[#allocation3 + $0x38] sm:$0xff] }
 0x243   : > { %2559 = vst.msk [vmem:[#allocation3 + $0x58] sm:$0xff] %vm8480_vm13, %v2474_v20  ;;  %5466 = vmatmul.mubr.msk.f32.gmra.mxu0 %vm8482_vm1, %v2587_v29  ;;  %v2480_v10 = vpop.permute.xlu0 %2479  ;;  %v2590_v17 = vld [vmem:[#allocation3 + $0x50] sm:$0xff] }
 0x244   : > { %5468 = vmatprep.mubr.msk.f32.mxu0 %vm8482_vm1, %v2588_v48  ;;  %2562 = vst.msk [vmem:[#allocation3 + $0x70] sm:$0xff] %vm8480_vm13, %v2480_v10 }
 0x246   : > { %v2478_v0 = vpop.permute.xlu1 %2477  ;;  %v2589_v45 = vld [vmem:[#allocation3 + $0x48] sm:$0xff] }
 0x247   : > { %2561 = vst.msk [vmem:[#allocation3 + $0x68] sm:$0xff] %vm8480_vm13, %v2478_v0  ;;  %5469 = vmatmul.mubr.msk.f32.gmra.mxu0 %vm8482_vm1, %v2589_v45  ;;  %v2259_v31 = vpop.permute.xlu0 %2258  ;;  %v2592_v35 = vld [vmem:[#allocation3 + $0x60] sm:$0xff] }
 0x248   : > { %5471 = vmatprep.mubr.msk.f32.mxu0 %vm8482_vm1, %v2590_v17  ;;  %2339 = vst.msk [vmem:[#allocation3 + $0x80] sm:$0xff] %vm8479_vm12, %v2259_v31 }
 0x24a   : > { %v2482_v1 = vpop.permute.xlu1 %2481  ;;  %v2591_v40 = vld [vmem:[#allocation3 + $0x58] sm:$0xff] }
 0x24b   : > { %2563 = vst.msk [vmem:[#allocation3 + $0x78] sm:$0xff] %vm8480_vm13, %v2482_v1  ;;  %5472 = vmatmul.mubr.msk.f32.gmra.mxu0 %vm8482_vm1, %v2591_v40  ;;  %v2484_v18 = vpop.permute.xlu0 %2483  ;;  %v2594_v6 = vld [vmem:[#allocation3 + $0x70] sm:$0xff] }
 0x24c   : > { %5474 = vmatprep.mubr.msk.f32.mxu0 %vm8482_vm1, %v2592_v35  ;;  %2564 = vst.msk [vmem:[#allocation3 + $0x80] sm:$0xff] %vm8480_vm13, %v2484_v18 }
 0x24e   : > { %v2261_v55 = vpop.permute.xlu1 %2260  ;;  %v2593_v63 = vld [vmem:[#allocation3 + $0x68] sm:$0xff] }
 0x24f   : > { %2340 = vst.msk [vmem:[#allocation3 + $0x88] sm:$0xff] %vm8479_vm12, %v2261_v55  ;;  %5475 = vmatmul.mubr.msk.f32.gmra.mxu0 %vm8482_vm1, %v2593_v63  ;;  %v2263_v51 = vpop.permute.xlu0 %2262 }
 0x250   : > { %5477 = vmatprep.mubr.msk.f32.mxu0 %vm8482_vm1, %v2594_v6  ;;  %2341 = vst.msk [vmem:[#allocation3 + $0x90] sm:$0xff] %vm8479_vm12, %v2263_v51 }
 0x252   : > { %v2486_v39 = vpop.permute.xlu1 %2485  ;;  %v2595_v61 = vld [vmem:[#allocation3 + $0x78] sm:$0xff] }
 0x253   : > { %2565 = vst.msk [vmem:[#allocation3 + $0x88] sm:$0xff] %vm8480_vm13, %v2486_v39  ;;  %5478 = vmatmul.mubr.msk.f32.gmra.mxu0 %vm8482_vm1, %v2595_v61  ;;  %v2488_v8 = vpop.permute.xlu0 %2487  ;;  %v2596_v28 = vld [vmem:[#allocation3 + $0x80] sm:$0xff] }
 0x254   : > { %2566 = vst.msk [vmem:[#allocation3 + $0x90] sm:$0xff] %vm8480_vm13, %v2488_v8  ;;  %5480 = vmatprep.mubr.msk.f32.mxu0 %vm8482_vm1, %v2596_v28  ;;  %v3110_v8 = vld [vmem:[#allocation2 + $0x9] sm:$0xff] }
 0x255   : > { %3175 = vrot.lane.b32.xlu1 %v3110_v8, %s5601_s24 }
 0x256   : > { %v2265_v15 = vpop.permute.xlu1 %2264 }
 0x257   : > { %2342 = vst.msk [vmem:[#allocation3 + $0x98] sm:$0xff] %vm8479_vm12, %v2265_v15  ;;  %v2267_v13 = vpop.permute.xlu0 %2266  ;;  %v3109_v15 = vld [vmem:[#allocation2 + $0x1] sm:$0xff] }
 0x258   : > { %2343 = vst.msk [vmem:[#allocation3 + $0xa0] sm:$0xff] %vm8479_vm12, %v2267_v13  ;;  %3173 = vrot.lane.b32.xlu0 %v3109_v15, %s5601_s24 }
 0x25a   : > { %v2490_v41 = vpop.permute.xlu1 %2489  ;;  %v2597_v32 = vld [vmem:[#allocation3 + $0x88] sm:$0xff] }
 0x25b   : > { %2567 = vst.msk [vmem:[#allocation3 + $0x98] sm:$0xff] %vm8480_vm13, %v2490_v41  ;;  %5481 = vmatmul.mubr.msk.f32.gmra.mxu0 %vm8482_vm1, %v2597_v32  ;;  %v2492_v4 = vpop.permute.xlu0 %2491  ;;  %v2598_v54 = vld [vmem:[#allocation3 + $0x90] sm:$0xff] }
 0x25c   : > { %2568 = vst.msk [vmem:[#allocation3 + $0xa0] sm:$0xff] %vm8480_vm13, %v2492_v4  ;;  %5483 = vmatprep.mubr.msk.f32.mxu0 %vm8482_vm1, %v2598_v54 }
 0x25e   : > { %v2269_v14 = vpop.permute.xlu1 %2268 }
 0x25f   : > { %2344 = vst.msk [vmem:[#allocation3 + $0xa8] sm:$0xff] %vm8479_vm12, %v2269_v14  ;;  %v2271_v7 = vpop.permute.xlu0 %2270 }
 0x260   : > { %2345 = vst.msk [vmem:[#allocation3 + $0xb0] sm:$0xff] %vm8479_vm12, %v2271_v7 }
 0x262   : > { %v2494_v47 = vpop.permute.xlu1 %2493  ;;  %v2599_v23 = vld [vmem:[#allocation3 + $0x98] sm:$0xff] }
 0x263   : > { %2569 = vst.msk [vmem:[#allocation3 + $0xa8] sm:$0xff] %vm8480_vm13, %v2494_v47  ;;  %5484 = vmatmul.mubr.msk.f32.gmra.mxu0 %vm8482_vm1, %v2599_v23  ;;  %v2496_v19 = vpop.permute.xlu0 %2495  ;;  %v2600_v2 = vld [vmem:[#allocation3 + $0xa0] sm:$0xff] }
 0x264   : > { %2570 = vst.msk [vmem:[#allocation3 + $0xb0] sm:$0xff] %vm8480_vm13, %v2496_v19  ;;  %5486 = vmatprep.mubr.msk.f32.mxu0 %vm8482_vm1, %v2600_v2  ;;  %v3014_v19 = vld [vmem:[#allocation2 + $0x8] sm:$0xff] }
 0x265   : > { %3078 = vst.msk [vmem:[#allocation3 + $0x8] sm:$0xff] %vm8750_vm15, %v3014_v19 }
 0x266   : > { %v2273_v11 = vpop.permute.xlu1 %2272 }
 0x267   : > { %2346 = vst.msk [vmem:[#allocation3 + $0xb8] sm:$0xff] %vm8479_vm12, %v2273_v11  ;;  %v2275_v48 = vpop.permute.xlu0 %2274  ;;  %v3013_v11 = vld [vmem:[#allocation2] sm:$0xff] }
 0x268   : > { %2347 = vst.msk [vmem:[#allocation3 + $0xc0] sm:$0xff] %vm8479_vm12, %v2275_v48  ;;  %v4840_v48 = vld [vmem:[%s8329_s3 + $0x18] sm:$0xff] }
 0x26a   : > { %v2498_v20 = vpop.permute.xlu1 %2497  ;;  %v2601_v29 = vld [vmem:[#allocation3 + $0xa8] sm:$0xff] }
 0x26b   : > { %2571 = vst.msk [vmem:[#allocation3 + $0xb8] sm:$0xff] %vm8480_vm13, %v2498_v20  ;;  %5487 = vmatmul.mubr.msk.f32.gmra.mxu0 %vm8482_vm1, %v2601_v29  ;;  %v2500_v10 = vpop.permute.xlu0 %2499  ;;  %v2602_v17 = vld [vmem:[#allocation3 + $0xb0] sm:$0xff]  ;;  %v3045_v20 = vsel %vm5834_vm2, %v3013_v11, 0.0 }
 0x26c   : > { %2572 = vst.msk [vmem:[#allocation3 + $0xc0] sm:$0xff] %vm8480_vm13, %v2500_v10  ;;  %5489 = vmatprep.mubr.msk.f32.mxu0 %vm8482_vm1, %v2602_v17  ;;  %v7124_v10 = vld [vmem:[%s8328_s2] ss:$0 sm:$0xff] }
 0x26e   : > { %v2277_v0 = vpop.permute.xlu1 %2276 }
 0x26f   : > { %2348 = vst.msk [vmem:[#allocation3 + $0xc8] sm:$0xff] %vm8479_vm12, %v2277_v0  ;;  %v2279_v45 = vpop.permute.xlu0 %2278 }
 0x270   : > { %2349 = vst.msk [vmem:[#allocation3 + $0xd0] sm:$0xff] %vm8479_vm12, %v2279_v45 }
 0x272   : > { %v2502_v31 = vpop.permute.xlu1 %2501  ;;  %v2603_v35 = vld [vmem:[#allocation3 + $0xb8] sm:$0xff] }
 0x273   : > { %2573 = vst.msk [vmem:[#allocation3 + $0xc8] sm:$0xff] %vm8480_vm13, %v2502_v31  ;;  %5490 = vmatmul.mubr.msk.f32.gmra.mxu0 %vm8482_vm1, %v2603_v35  ;;  %v2504_v1 = vpop.permute.xlu0 %2503  ;;  %v2604_v40 = vld [vmem:[#allocation3 + $0xc0] sm:$0xff] }
 0x274   : > { %2574 = vst.msk [vmem:[#allocation3 + $0xd0] sm:$0xff] %vm8480_vm13, %v2504_v1  ;;  %5492 = vmatprep.mubr.msk.f32.mxu0 %vm8482_vm1, %v2604_v40 }
 0x276   : > { %v2281_v18 = vpop.permute.xlu1 %2280 }
 0x277   : > { %2350 = vst.msk [vmem:[#allocation3 + $0xd8] sm:$0xff] %vm8479_vm12, %v2281_v18  ;;  %v2283_v6 = vpop.permute.xlu0 %2282 }
 0x278   : > { %2351 = vst.msk [vmem:[#allocation3 + $0xe0] sm:$0xff] %vm8479_vm12, %v2283_v6 }
 0x27a   : > { %v2506_v55 = vpop.permute.xlu1 %2505  ;;  %v2605_v63 = vld [vmem:[#allocation3 + $0xc8] sm:$0xff] }
 0x27b   : > { %2575 = vst.msk [vmem:[#allocation3 + $0xd8] sm:$0xff] %vm8480_vm13, %v2506_v55  ;;  %5493 = vmatmul.mubr.msk.f32.gmra.mxu0 %vm8482_vm1, %v2605_v63  ;;  %v2508_v51 = vpop.permute.xlu0 %2507  ;;  %v2606_v39 = vld [vmem:[#allocation3 + $0xd0] sm:$0xff] }
 0x27c   : > { %2576 = vst.msk [vmem:[#allocation3 + $0xe0] sm:$0xff] %vm8480_vm13, %v2508_v51  ;;  %5495 = vmatprep.mubr.msk.f32.mxu0 %vm8482_vm1, %v2606_v39 }
 0x27e   : > { %v2285_v61 = vpop.permute.xlu1 %2284 }
 0x27f   : > { %2352 = vst.msk [vmem:[#allocation3 + $0xe8] sm:$0xff] %vm8479_vm12, %v2285_v61  ;;  %v2287_v28 = vpop.permute.xlu0 %2286 }
 0x280   : > { %2353 = vst.msk [vmem:[#allocation3 + $0xf0] sm:$0xff] %vm8479_vm12, %v2287_v28 }
 0x282   : > { %v2510_v13 = vpop.permute.xlu1 %2509  ;;  %v2607_v41 = vld [vmem:[#allocation3 + $0xd8] sm:$0xff] }
 0x283   : > { %2577 = vst.msk [vmem:[#allocation3 + $0xe8] sm:$0xff] %vm8480_vm13, %v2510_v13  ;;  %5496 = vmatmul.mubr.msk.f32.gmra.mxu0 %vm8482_vm1, %v2607_v41  ;;  %v2512_v32 = vpop.permute.xlu0 %2511  ;;  %v2608_v4 = vld [vmem:[#allocation3 + $0xe0] sm:$0xff] }
 0x284   : > { %2578 = vst.msk [vmem:[#allocation3 + $0xf0] sm:$0xff] %vm8480_vm13, %v2512_v32  ;;  %5498 = vmatprep.mubr.msk.f32.mxu0 %vm8482_vm1, %v2608_v4 }
 0x286   : > { %v2289_v54 = vpop.permute.xlu1 %2288 }
 0x287   : > { %2354 = vst.msk [vmem:[#allocation3 + $0xf8] sm:$0xff] %vm8479_vm12, %v2289_v54  ;;  %vm8753_vm12 = vmmov %vm8750_vm15 }
 0x288   : > { %3077 = vst.msk [vmem:[#allocation3] sm:$0xff] %vm8753_vm12, %v3045_v20  ;;  %vm8757_vm15 = vmmov %vm8753_vm12 }
 0x28a   : > { %v2514_v14 = vpop.permute.xlu1 %2513  ;;  %v2609_v7 = vld [vmem:[#allocation3 + $0xe8] sm:$0xff] }
 0x28b   : > { %2579 = vst.msk [vmem:[#allocation3 + $0xf8] sm:$0xff] %vm8480_vm13, %v2514_v14  ;;  %5499 = vmatmul.mubr.msk.f32.gmra.mxu0 %vm8482_vm1, %v2609_v7  ;;  %v2610_v47 = vld [vmem:[#allocation3 + $0xf0] sm:$0xff]  ;;  %vm8754_vm13 = vmmov %vm8751_vm14 }
 0x28c   : > { %5501 = vmatprep.mubr.msk.f32.mxu0 %vm8482_vm1, %v2610_v47 }
 0x292   : > { %v2611_v23 = vld [vmem:[#allocation3 + $0xf8] sm:$0xff] }
 0x293   : > { %5502 = vmatmul.mubr.msk.f32.gmra.mxu0 %vm8482_vm1, %v2611_v23  ;;  %vm8789_vm1 = vnez %v8572_v42 }
 0x2c7   : > { %v3176_v2 = vpop.permute.xlu1 %3175 }
 0x2c8   : > { %3270 = vst.msk [vmem:[#allocation3 + $0x8] sm:$0xff] %vm8751_vm14, %v3176_v2  ;;  %vm8755_vm14 = vmmov %vm8753_vm12 }
 0x2ca   : > { %v3174_v29 = vpop.permute.xlu0 %3173 }
 0x2cb   : > { %3269 = vst.msk [vmem:[#allocation3] sm:$0xff] %vm8754_vm13, %v3174_v29  ;;  %vm8756_vm13 = vmmov %vm8753_vm12 }
 0x2f7   : > { %v5458_v17 = vpop.f32.mrf.mxu0 }
 0x2f8   : > { %v2796_v0 = vadd.f32 %v5458_v17, %v7124_v10 }
 0x2f9   : > { %v2790_v45 = vpop.f32.mrf.mxu0 }
 0x2fa   : > { %v2950_v31 = vmax.f32 %v2796_v0, 0.0  ;;  %v2791_v35 = vadd.f32 %v7124_v10, %v2790_v45 }
 0x2fb   : > { %v5461_v1 = vpop.f32.mrf.mxu0 }
 0x2fc   : > { %2982 = vst.msk [vmem:[#allocation2 + $0x19] sm:$0xff] %vm8755_vm14, %v2950_v31  ;;  %v2949_v40 = vmax.f32 %v2791_v35, 0.0  ;;  %v2806_v18 = vadd.f32 %v5461_v1, %v7124_v10  ;;  %vm8759_vm14 = vmmov %vm8753_vm12 }
 0x2fd   : > { %v2800_v6 = vpop.f32.mrf.mxu0 }
 0x2fe   : > { %2981 = vst.msk [vmem:[#allocation2 + $0x11] sm:$0xff] %vm8753_vm12, %v2949_v40  ;;  %v2952_v55 = vmax.f32 %v2806_v18, 0.0  ;;  %v2801_v63 = vadd.f32 %v7124_v10, %v2800_v6 }
 0x2ff   : > { %v5464_v51 = vpop.f32.mrf.mxu0 }
 0x300   : > { %2984 = vst.msk [vmem:[#allocation2 + $0x29] sm:$0xff] %vm8756_vm13, %v2952_v55  ;;  %v2951_v39 = vmax.f32 %v2801_v63, 0.0  ;;  %v2816_v61 = vadd.f32 %v5464_v51, %v7124_v10  ;;  %vm8762_vm13 = vmmov %vm8753_vm12 }
 0x301   : > { %v2810_v8 = vpop.f32.mrf.mxu0 }
 0x302   : > { %2983 = vst.msk [vmem:[#allocation2 + $0x21] sm:$0xff] %vm8757_vm15, %v2951_v39  ;;  %v2954_v28 = vmax.f32 %v2816_v61, 0.0  ;;  %v2811_v15 = vadd.f32 %v7124_v10, %v2810_v8  ;;  %vm8763_vm15 = vmmov %vm8753_vm12 }
 0x303   : > { %v5467_v13 = vpop.f32.mrf.mxu0  ;;  %v7137_v41 = vld [vmem:[#allocation2 + $0x19] sm:$0xff] }
 0x304   : > { %8758 = vst [vmem:[#allocation63_spill] sm:$0xff] %v7137_v41  ;;  %2986 = vst.msk [vmem:[#allocation2 + $0x39] sm:$0xff] %vm8759_vm14, %v2954_v28  ;;  %v2953_v32 = vmax.f32 %v2811_v15, 0.0  ;;  %v2826_v4 = vadd.f32 %v5467_v13, %v7124_v10  ;;  %3179 = vrot.lane.b32.xlu1 %v7137_v41, %s5601_s24 }
 0x305   : > { %v2820_v54 = vpop.f32.mrf.mxu0  ;;  %v7143_v14 = vld [vmem:[#allocation2 + $0x11] sm:$0xff]  ;;  %vm8764_vm14 = vmmov %vm8753_vm12 }
 0x306   : > { %8760 = vst [vmem:[#allocation43_spill] sm:$0xff] %v7143_v14  ;;  %2985 = vst.msk [vmem:[#allocation2 + $0x31] sm:$0xff] %vm8753_vm12, %v2953_v32  ;;  %v2956_v7 = vmax.f32 %v2826_v4, 0.0  ;;  %v2821_v47 = vadd.f32 %v7124_v10, %v2820_v54  ;;  %3177 = vrot.lane.b32.xlu0 %v7143_v14, %s5601_s24  ;;  %v7149_v23 = vld [vmem:[#allocation2 + $0x18] sm:$0xff]  ;;  %v7151_v19 = vld [vmem:[#allocation2 + $0x10] sm:$0xff] }
 0x307   : > { %v5470_v2 = vpop.f32.mrf.mxu0  ;;  %v7153_v11 = vld [vmem:[#allocation2 + $0x29] sm:$0xff]  ;;  %3080 = vst.msk [vmem:[#allocation3 + $0x18] sm:$0xff] %vm8762_vm13, %v7149_v23  ;;  %v3047_v20 = vsel %vm5838_vm3, %v7151_v19, 0.0  ;;  %vm8767_vm13 = vmmov %vm8753_vm12 }
 0x308   : > { %8761 = vst [vmem:[#allocation64_spill] sm:$0xff] %v7153_v11  ;;  %2988 = vst.msk [vmem:[#allocation2 + $0x49] sm:$0xff] %vm8763_vm15, %v2956_v7  ;;  %v2955_v29 = vmax.f32 %v2821_v47, 0.0  ;;  %v2836_v17 = vadd.f32 %v5470_v2, %v7124_v10  ;;  %3183 = vrot.lane.b32.xlu1 %v7153_v11, %s5601_s24 }
 0x309   : > { %3079 = vst.msk [vmem:[#allocation3 + $0x10] sm:$0xff] %vm8764_vm14, %v3047_v20  ;;  %v2830_v0 = vpop.f32.mrf.mxu0  ;;  %v7165_v45 = vld [vmem:[#allocation2 + $0x21] sm:$0xff]  ;;  %vm8768_vm15 = vmmov %vm8753_vm12 }
 0x30a   : > { %8765 = vst [vmem:[#allocation65_spill] sm:$0xff] %v7165_v45  ;;  %2987 = vst.msk [vmem:[#allocation2 + $0x41] sm:$0xff] %vm8753_vm12, %v2955_v29  ;;  %v2958_v31 = vmax.f32 %v2836_v17, 0.0  ;;  %v2831_v35 = vadd.f32 %v7124_v10, %v2830_v0  ;;  %3181 = vrot.lane.b32.xlu0 %v7165_v45, %s5601_s24  ;;  %v7171_v1 = vld [vmem:[#allocation2 + $0x28] sm:$0xff]  ;;  %v7173_v40 = vld [vmem:[#allocation2 + $0x20] sm:$0xff] }
 0x30b   : > { %v5473_v18 = vpop.f32.mrf.mxu0  ;;  %v7175_v6 = vld [vmem:[#allocation2 + $0x39] sm:$0xff]  ;;  %3082 = vst.msk [vmem:[#allocation3 + $0x28] sm:$0xff] %vm8767_vm13, %v7171_v1  ;;  %v3049_v55 = vsel %vm5852_vm4, %v7173_v40, 0.0  ;;  %vm8769_vm14 = vmmov %vm8753_vm12 }
 0x30c   : > { %8766 = vst [vmem:[#allocation66_spill] sm:$0xff] %v7175_v6  ;;  %2990 = vst.msk [vmem:[#allocation2 + $0x59] sm:$0xff] %vm8768_vm15, %v2958_v31  ;;  %v2957_v63 = vmax.f32 %v2831_v35, 0.0  ;;  %v2846_v51 = vadd.f32 %v5473_v18, %v7124_v10  ;;  %3187 = vrot.lane.b32.xlu1 %v7175_v6, %s5601_s24 }
 0x30d   : > { %3081 = vst.msk [vmem:[#allocation3 + $0x20] sm:$0xff] %vm8769_vm14, %v3049_v55  ;;  %v2840_v39 = vpop.f32.mrf.mxu0  ;;  %v7187_v61 = vld [vmem:[#allocation2 + $0x31] sm:$0xff]  ;;  %vm8771_vm13 = vmmov %vm8753_vm12 }
 0x30e   : > { %8770 = vst [vmem:[#allocation67_spill] sm:$0xff] %v7187_v61  ;;  %2989 = vst.msk [vmem:[#allocation2 + $0x51] sm:$0xff] %vm8753_vm12, %v2957_v63  ;;  %v2960_v8 = vmax.f32 %v2846_v51, 0.0  ;;  %v2841_v28 = vadd.f32 %v7124_v10, %v2840_v39  ;;  %3185 = vrot.lane.b32.xlu0 %v7187_v61, %s5601_s24  ;;  %v7193_v15 = vld [vmem:[#allocation2 + $0x38] sm:$0xff]  ;;  %v7195_v13 = vld [vmem:[#allocation2 + $0x30] sm:$0xff] }
 0x30f   : > { %v5476_v32 = vpop.f32.mrf.mxu0  ;;  %v3118_v4 = vld [vmem:[#allocation2 + $0x49] sm:$0xff]  ;;  %3084 = vst.msk [vmem:[#allocation3 + $0x38] sm:$0xff] %vm8771_vm13, %v7193_v15  ;;  %v3051_v54 = vsel %vm5862_vm5, %v7195_v13, 0.0  ;;  %vm8772_vm15 = vmmov %vm8753_vm12 }
 0x310   : > { %2992 = vst.msk [vmem:[#allocation2 + $0x69] sm:$0xff] %vm8772_vm15, %v2960_v8  ;;  %v2959_v7 = vmax.f32 %v2841_v28, 0.0  ;;  %v2856_v47 = vadd.f32 %v5476_v32, %v7124_v10  ;;  %3191 = vrot.lane.b32.xlu1 %v3118_v4, %s5601_s24  ;;  %vm8773_vm14 = vmmov %vm8753_vm12 }
 0x311   : > { %3083 = vst.msk [vmem:[#allocation3 + $0x30] sm:$0xff] %vm8773_vm14, %v3051_v54  ;;  %v2850_v2 = vpop.f32.mrf.mxu0  ;;  %v3117_v20 = vld [vmem:[#allocation2 + $0x41] sm:$0xff]  ;;  %vm8774_vm13 = vmmov %vm8753_vm12 }
 0x312   : > { %2991 = vst.msk [vmem:[#allocation2 + $0x61] sm:$0xff] %vm8753_vm12, %v2959_v7  ;;  %v2962_v29 = vmax.f32 %v2856_v47, 0.0  ;;  %v2851_v17 = vadd.f32 %v7124_v10, %v2850_v2  ;;  %3189 = vrot.lane.b32.xlu0 %v3117_v20, %s5601_s24  ;;  %v7209_v0 = vld [vmem:[#allocation2 + $0x48] sm:$0xff]  ;;  %v7211_v31 = vld [vmem:[#allocation2 + $0x40] sm:$0xff]  ;;  %vm8775_vm15 = vmmov %vm8753_vm12 }
 0x313   : > { %v5479_v35 = vpop.f32.mrf.mxu0  ;;  %v3120_v18 = vld [vmem:[#allocation2 + $0x59] sm:$0xff]  ;;  %3086 = vst.msk [vmem:[#allocation3 + $0x48] sm:$0xff] %vm8774_vm13, %v7209_v0  ;;  %v3053_v55 = vsel %vm5872_vm6, %v7211_v31, 0.0  ;;  %vm8776_vm14 = vmmov %vm8753_vm12 }
 0x314   : > { %2994 = vst.msk [vmem:[#allocation2 + $0x79] sm:$0xff] %vm8775_vm15, %v2962_v29  ;;  %v2961_v63 = vmax.f32 %v2851_v17, 0.0  ;;  %v2866_v51 = vadd.f32 %v5479_v35, %v7124_v10  ;;  %3195 = vrot.lane.b32.xlu1 %v3120_v18, %s5601_s24  ;;  %vm8777_vm13 = vmmov %vm8753_vm12 }
 0x315   : > { %3085 = vst.msk [vmem:[#allocation3 + $0x40] sm:$0xff] %vm8776_vm14, %v3053_v55  ;;  %v2860_v39 = vpop.f32.mrf.mxu0  ;;  %v3119_v8 = vld [vmem:[#allocation2 + $0x51] sm:$0xff]  ;;  %vm8778_vm15 = vmmov %vm8753_vm12 }
 0x316   : > { %2993 = vst.msk [vmem:[#allocation2 + $0x71] sm:$0xff] %vm8753_vm12, %v2961_v63  ;;  %v2964_v28 = vmax.f32 %v2866_v51, 0.0  ;;  %v2861_v32 = vadd.f32 %v7124_v10, %v2860_v39  ;;  %3193 = vrot.lane.b32.xlu0 %v3119_v8, %s5601_s24  ;;  %v7225_v4 = vld [vmem:[#allocation2 + $0x58] sm:$0xff]  ;;  %v7227_v54 = vld [vmem:[#allocation2 + $0x50] sm:$0xff]  ;;  %vm8779_vm14 = vmmov %vm8753_vm12 }
 0x317   : > { %v3122_v7 = vld [vmem:[#allocation2 + $0x69] sm:$0xff]  ;;  %3088 = vst.msk [vmem:[#allocation3 + $0x58] sm:$0xff] %vm8777_vm13, %v7225_v4  ;;  %v3055_v47 = vsel %vm5876_vm7, %v7227_v54, 0.0  ;;  %vm8780_vm13 = vmmov %vm8753_vm12 }
 0x318   : > { %2996 = vst.msk [vmem:[#allocation2 + $0x89] sm:$0xff] %vm8778_vm15, %v2964_v28  ;;  %v2963_v2 = vmax.f32 %v2861_v32, 0.0  ;;  %3199 = vrot.lane.b32.xlu1 %v3122_v7, %s5601_s24  ;;  %vm8781_vm15 = vmmov %vm8753_vm12 }
 0x319   : > { %3087 = vst.msk [vmem:[#allocation3 + $0x50] sm:$0xff] %vm8779_vm14, %v3055_v47  ;;  %v3121_v20 = vld [vmem:[#allocation2 + $0x61] sm:$0xff]  ;;  %vm8782_vm14 = vmmov %vm8753_vm12 }
 0x31a   : > { %2995 = vst.msk [vmem:[#allocation2 + $0x81] sm:$0xff] %vm8753_vm12, %v2963_v2  ;;  %3197 = vrot.lane.b32.xlu0 %v3121_v20, %s5601_s24  ;;  %v7239_v29 = vld [vmem:[#allocation2 + $0x68] sm:$0xff]  ;;  %v7241_v17 = vld [vmem:[#allocation2 + $0x60] sm:$0xff] }
 0x31b   : > { %v5482_v35 = vpop.f32.mrf.mxu0  ;;  %v3124_v18 = vld [vmem:[#allocation2 + $0x79] sm:$0xff]  ;;  %3090 = vst.msk [vmem:[#allocation3 + $0x68] sm:$0xff] %vm8780_vm13, %v7239_v29  ;;  %v3057_v55 = vsel %vm5894_vm8, %v7241_v17, 0.0  ;;  %vm8783_vm13 = vmmov %vm8753_vm12 }
 0x31c   : > { %v2876_v63 = vadd.f32 %v5482_v35, %v7124_v10  ;;  %3203 = vrot.lane.b32.xlu1 %v3124_v18, %s5601_s24  ;;  %3089 = vst.msk [vmem:[#allocation3 + $0x60] sm:$0xff] %vm8781_vm15, %v3057_v55  ;;  %vm8784_vm15 = vmmov %vm8753_vm12 }
 0x31d   : > { %v2870_v51 = vpop.f32.mrf.mxu0  ;;  %v3123_v39 = vld [vmem:[#allocation2 + $0x71] sm:$0xff] }
 0x31e   : > { %v2966_v8 = vmax.f32 %v2876_v63, 0.0  ;;  %v2871_v28 = vadd.f32 %v7124_v10, %v2870_v51  ;;  %3201 = vrot.lane.b32.xlu0 %v3123_v39, %s5601_s24  ;;  %v7253_v32 = vld [vmem:[#allocation2 + $0x78] sm:$0xff]  ;;  %v7255_v7 = vld [vmem:[#allocation2 + $0x70] sm:$0xff] }
 0x31f   : > { %v3126_v47 = vld [vmem:[#allocation2 + $0x89] sm:$0xff]  ;;  %3092 = vst.msk [vmem:[#allocation3 + $0x78] sm:$0xff] %vm8782_vm14, %v7253_v32  ;;  %v3059_v2 = vsel %vm5898_vm9, %v7255_v7, 0.0  ;;  %vm8785_vm14 = vmmov %vm8753_vm12 }
 0x320   : > { %2998 = vst.msk [vmem:[#allocation2 + $0x99] sm:$0xff] %vm8753_vm12, %v2966_v8  ;;  %v2965_v20 = vmax.f32 %v2871_v28, 0.0  ;;  %3207 = vrot.lane.b32.xlu1 %v3126_v47, %s5601_s24  ;;  %vm8786_vm12 = vnez %v8570_v25 }
 0x321   : > { %3091 = vst.msk [vmem:[#allocation3 + $0x70] sm:$0xff] %vm8783_vm13, %v3059_v2  ;;  %v3125_v35 = vld [vmem:[#allocation2 + $0x81] sm:$0xff] }
 0x322   : > { %2997 = vst.msk [vmem:[#allocation2 + $0x91] sm:$0xff] %vm8784_vm15, %v2965_v20  ;;  %3205 = vrot.lane.b32.xlu0 %v3125_v35, %s5601_s24  ;;  %v7267_v18 = vld [vmem:[#allocation2 + $0x88] sm:$0xff]  ;;  %v7269_v55 = vld [vmem:[#allocation2 + $0x80] sm:$0xff]  ;;  %vm8787_vm15 = vmmov %vm8783_vm13 }
 0x323   : > { %v5485_v63 = vpop.f32.mrf.mxu0  ;;  %3094 = vst.msk [vmem:[#allocation3 + $0x88] sm:$0xff] %vm8785_vm14, %v7267_v18  ;;  %v3061_v51 = vsel %vm8786_vm12, %v7269_v55, 0.0  ;;  %vm8788_vm14 = vmmov %vm8783_vm13  ;;  %vm8815_vm12 = vnez %v8589_v16  ;;  %v7432_v16 = vld [vmem:[#allocation2 + $0x52] sm:$0xff]  ;;  %v7440_v36 = vld [vmem:[#allocation2 + $0x7a] sm:$0xff] }
 0x324   : > { %v2886_v39 = vadd.f32 %v5485_v63, %v7124_v10  ;;  %3093 = vst.msk [vmem:[#allocation3 + $0x80] sm:$0xff] %vm8783_vm13, %v3061_v51  ;;  %8823 = vst [vmem:[#allocation72_spill] sm:$0xff] %v7440_v36 }
 0x325   : > { %v2880_v8 = vpop.f32.mrf.mxu0 }
 0x326   : > { %v2968_v28 = vmax.f32 %v2886_v39, 0.0  ;;  %v2881_v47 = vadd.f32 %v7124_v10, %v2880_v8 }
 0x327   : > { %v3128_v2 = vld [vmem:[#allocation2 + $0x99] sm:$0xff] }
 0x328   : > { %3000 = vst.msk [vmem:[#allocation2 + $0xa9] sm:$0xff] %vm8787_vm15, %v2968_v28  ;;  %v2967_v20 = vmax.f32 %v2881_v47, 0.0  ;;  %3211 = vrot.lane.b32.xlu1 %v3128_v2, %s5601_s24  ;;  %vm8790_vm15 = vmmov %vm8783_vm13 }
 0x329   : > { %v3127_v35 = vld [vmem:[#allocation2 + $0x91] sm:$0xff] }
 0x32a   : > { %2999 = vst.msk [vmem:[#allocation2 + $0xa1] sm:$0xff] %vm8788_vm14, %v2967_v20  ;;  %3209 = vrot.lane.b32.xlu0 %v3127_v35, %s5601_s24  ;;  %v7283_v6 = vld [vmem:[#allocation2 + $0x98] sm:$0xff]  ;;  %v7285_v63 = vld [vmem:[#allocation2 + $0x90] sm:$0xff]  ;;  %vm8791_vm14 = vmmov %vm8783_vm13 }
 0x32b   : > { %v5488_v51 = vpop.f32.mrf.mxu0  ;;  %3096 = vst.msk [vmem:[#allocation3 + $0x98] sm:$0xff] %vm8783_vm13, %v7283_v6  ;;  %v3063_v39 = vsel %vm8789_vm1, %v7285_v63, 0.0  ;;  %vm8793_vm1 = vnez %v8574_v27  ;;  %v3318_v3 = vld [vmem:[#allocation2 + $0x8a] sm:$0xff] }
 0x32c   : > { %v2896_v8 = vadd.f32 %v5488_v51, %v7124_v10  ;;  %3095 = vst.msk [vmem:[#allocation3 + $0x90] sm:$0xff] %vm8790_vm15, %v3063_v39  ;;  %vm8792_vm15 = vmmov %vm8783_vm13 }
 0x32d   : > { %v2890_v28 = vpop.f32.mrf.mxu0 }
 0x32e   : > { %v2970_v47 = vmax.f32 %v2896_v8, 0.0  ;;  %v2891_v2 = vadd.f32 %v7124_v10, %v2890_v28 }
 0x32f   : > { %v3130_v20 = vld [vmem:[#allocation2 + $0xa9] sm:$0xff] }
 0x330   : > { %3002 = vst.msk [vmem:[#allocation2 + $0xb9] sm:$0xff] %vm8791_vm14, %v2970_v47  ;;  %v2969_v35 = vmax.f32 %v2891_v2, 0.0  ;;  %3215 = vrot.lane.b32.xlu1 %v3130_v20, %s5601_s24  ;;  %vm8794_vm14 = vmmov %vm8783_vm13 }
 0x331   : > { %v3129_v61 = vld [vmem:[#allocation2 + $0xa1] sm:$0xff] }
 0x332   : > { %3001 = vst.msk [vmem:[#allocation2 + $0xb1] sm:$0xff] %vm8783_vm13, %v2969_v35  ;;  %3213 = vrot.lane.b32.xlu0 %v3129_v61, %s5601_s24  ;;  %v7299_v11 = vld [vmem:[#allocation2 + $0xa8] sm:$0xff]  ;;  %v7301_v51 = vld [vmem:[#allocation2 + $0xa0] sm:$0xff] }
 0x333   : > { %v5491_v39 = vpop.f32.mrf.mxu0  ;;  %3098 = vst.msk [vmem:[#allocation3 + $0xa8] sm:$0xff] %vm8792_vm15, %v7299_v11  ;;  %v3065_v8 = vsel %vm8793_vm1, %v7301_v51, 0.0  ;;  %vm8795_vm15 = vmmov %vm8783_vm13  ;;  %vm8797_vm1 = vnez %v8577_v34 }
 0x334   : > { %v2906_v28 = vadd.f32 %v5491_v39, %v7124_v10  ;;  %3097 = vst.msk [vmem:[#allocation3 + $0xa0] sm:$0xff] %vm8794_vm14, %v3065_v8  ;;  %vm8796_vm14 = vmmov %vm8783_vm13 }
 0x335   : > { %v2900_v47 = vpop.f32.mrf.mxu0 }
 0x336   : > { %v2972_v2 = vmax.f32 %v2906_v28, 0.0  ;;  %v2901_v61 = vadd.f32 %v7124_v10, %v2900_v47 }
 0x337   : > { %v3132_v20 = vld [vmem:[#allocation2 + $0xb9] sm:$0xff] }
 0x338   : > { %3004 = vst.msk [vmem:[#allocation2 + $0xc9] sm:$0xff] %vm8783_vm13, %v2972_v2  ;;  %v2971_v35 = vmax.f32 %v2901_v61, 0.0  ;;  %3219 = vrot.lane.b32.xlu1 %v3132_v20, %s5601_s24 }
 0x339   : > { %v3131_v45 = vld [vmem:[#allocation2 + $0xb1] sm:$0xff] }
 0x33a   : > { %3003 = vst.msk [vmem:[#allocation2 + $0xc1] sm:$0xff] %vm8795_vm15, %v2971_v35  ;;  %3217 = vrot.lane.b32.xlu0 %v3131_v45, %s5601_s24  ;;  %v7315_v41 = vld [vmem:[#allocation2 + $0xb8] sm:$0xff]  ;;  %v7317_v39 = vld [vmem:[#allocation2 + $0xb0] sm:$0xff]  ;;  %vm8798_vm15 = vmmov %vm8783_vm13 }
 0x33b   : > { %v5494_v8 = vpop.f32.mrf.mxu0  ;;  %3100 = vst.msk [vmem:[#allocation3 + $0xb8] sm:$0xff] %vm8796_vm14, %v7315_v41  ;;  %v3067_v28 = vsel %vm8797_vm1, %v7317_v39, 0.0  ;;  %vm8799_vm14 = vmmov %vm8783_vm13  ;;  %vm8801_vm1 = vnez %v8580_v38 }
 0x33c   : > { %v2916_v47 = vadd.f32 %v5494_v8, %v7124_v10  ;;  %3099 = vst.msk [vmem:[#allocation3 + $0xb0] sm:$0xff] %vm8783_vm13, %v3067_v28 }
 0x33d   : > { %v2910_v2 = vpop.f32.mrf.mxu0 }
 0x33e   : > { %v2974_v61 = vmax.f32 %v2916_v47, 0.0  ;;  %v2911_v45 = vadd.f32 %v7124_v10, %v2910_v2 }
 0x33f   : > { %v3134_v20 = vld [vmem:[#allocation2 + $0xc9] sm:$0xff] }
 0x340   : > { %3006 = vst.msk [vmem:[#allocation2 + $0xd9] sm:$0xff] %vm8798_vm15, %v2974_v61  ;;  %v2973_v35 = vmax.f32 %v2911_v45, 0.0  ;;  %3223 = vrot.lane.b32.xlu1 %v3134_v20, %s5601_s24  ;;  %vm8802_vm15 = vmmov %vm8783_vm13 }
 0x341   : > { %v3133_v14 = vld [vmem:[#allocation2 + $0xc1] sm:$0xff] }
 0x342   : > { %3005 = vst.msk [vmem:[#allocation2 + $0xd1] sm:$0xff] %vm8799_vm14, %v2973_v35  ;;  %3221 = vrot.lane.b32.xlu0 %v3133_v14, %s5601_s24  ;;  %v7331_v34 = vld [vmem:[#allocation2 + $0xc8] sm:$0xff]  ;;  %v7333_v8 = vld [vmem:[#allocation2 + $0xc0] sm:$0xff]  ;;  %vm8803_vm14 = vmmov %vm8783_vm13 }
 0x343   : > { %8800 = vst [vmem:[#allocation68_spill] sm:$0xff] %v7333_v8  ;;  %v5497_v28 = vpop.f32.mrf.mxu0  ;;  %3102 = vst.msk [vmem:[#allocation3 + $0xc8] sm:$0xff] %vm8783_vm13, %v7331_v34  ;;  %v3069_v47 = vsel %vm8801_vm1, %v7333_v8, 0.0  ;;  %vm8806_vm1 = vnez %v8583_v52 }
 0x344   : > { %v2926_v2 = vadd.f32 %v5497_v28, %v7124_v10  ;;  %3101 = vst.msk [vmem:[#allocation3 + $0xc0] sm:$0xff] %vm8802_vm15, %v3069_v47  ;;  %vm8805_vm15 = vmmov %vm8783_vm13 }
 0x345   : > { %v2920_v61 = vpop.f32.mrf.mxu0 }
 0x346   : > { %v2976_v45 = vmax.f32 %v2926_v2, 0.0  ;;  %v2921_v14 = vadd.f32 %v7124_v10, %v2920_v61 }
 0x347   : > { %v3136_v20 = vld [vmem:[#allocation2 + $0xd9] sm:$0xff] }
 0x348   : > { %3008 = vst.msk [vmem:[#allocation2 + $0xe9] sm:$0xff] %vm8803_vm14, %v2976_v45  ;;  %v2975_v35 = vmax.f32 %v2921_v14, 0.0  ;;  %3227 = vrot.lane.b32.xlu1 %v3136_v20, %s5601_s24  ;;  %vm8807_vm14 = vmmov %vm8783_vm13 }
 0x349   : > { %v3135_v27 = vld [vmem:[#allocation2 + $0xd1] sm:$0xff] }
 0x34a   : > { %3007 = vst.msk [vmem:[#allocation2 + $0xe1] sm:$0xff] %vm8783_vm13, %v2975_v35  ;;  %3225 = vrot.lane.b32.xlu0 %v3135_v27, %s5601_s24  ;;  %v7347_v38 = vld [vmem:[#allocation2 + $0xd8] sm:$0xff]  ;;  %v7349_v28 = vld [vmem:[#allocation2 + $0xd0] sm:$0xff] }
 0x34b   : > { %8804 = vst [vmem:[#allocation69_spill] sm:$0xff] %v7349_v28  ;;  %v5500_v47 = vpop.f32.mrf.mxu0  ;;  %3104 = vst.msk [vmem:[#allocation3 + $0xd8] sm:$0xff] %vm8805_vm15, %v7347_v38  ;;  %v3071_v2 = vsel %vm8806_vm1, %v7349_v28, 0.0  ;;  %vm8810_vm1 = vnez %v8586_v21 }
 0x34c   : > { %v2936_v61 = vadd.f32 %v5500_v47, %v7124_v10  ;;  %3103 = vst.msk [vmem:[#allocation3 + $0xd0] sm:$0xff] %vm8807_vm14, %v3071_v2  ;;  %vm8808_vm15 = vmmov %vm8783_vm13 }
 0x34d   : > { %v2930_v45 = vpop.f32.mrf.mxu0  ;;  %vm8809_vm14 = vmmov %vm8783_vm13 }
 0x34e   : > { %v2978_v14 = vmax.f32 %v2936_v61, 0.0  ;;  %v2931_v27 = vadd.f32 %v7124_v10, %v2930_v45 }
 0x34f   : > { %v3138_v20 = vld [vmem:[#allocation2 + $0xe9] sm:$0xff] }
 0x350   : > { %3010 = vst.msk [vmem:[#allocation2 + $0xf9] sm:$0xff] %vm8783_vm13, %v2978_v14  ;;  %v2977_v35 = vmax.f32 %v2931_v27, 0.0  ;;  %3231 = vrot.lane.b32.xlu1 %v3138_v20, %s5601_s24 }
 0x351   : > { %v3137_v8 = vld [vmem:[#allocation2 + $0xe1] sm:$0xff] }
 0x352   : > { %3009 = vst.msk [vmem:[#allocation2 + $0xf1] sm:$0xff] %vm8808_vm15, %v2977_v35  ;;  %3229 = vrot.lane.b32.xlu0 %v3137_v8, %s5601_s24  ;;  %v3042_v52 = vld [vmem:[#allocation2 + $0xe8] sm:$0xff]  ;;  %v7363_v28 = vld [vmem:[#allocation2 + $0xe0] sm:$0xff]  ;;  %vm8811_vm15 = vmmov %vm8783_vm13 }
 0x353   : > { %v5503_v47 = vpop.f32.mrf.mxu0  ;;  %3106 = vst.msk [vmem:[#allocation3 + $0xe8] sm:$0xff] %vm8809_vm14, %v3042_v52  ;;  %v3073_v2 = vsel %vm8810_vm1, %v7363_v28, 0.0  ;;  %v3302_v35 = vld [vmem:[#allocation2 + $0xa] sm:$0xff]  ;;  %vm8812_vm14 = vmmov %vm8783_vm13 }
 0x354   : > { %v2946_v61 = vadd.f32 %v5503_v47, %v7124_v10  ;;  %3105 = vst.msk [vmem:[#allocation3 + $0xe0] sm:$0xff] %vm8783_vm13, %v3073_v2  ;;  %vm8813_vm13 = vnez %v8593_v9  ;;  %vm8814_vm1 = vmmov %vm8812_vm14 }
 0x355   : > { %v2940_v45 = vpop.f32.mrf.mxu0  ;;  %v3334_v2 = vsel %vm8813_vm13, %v3302_v35, 0.0  ;;  %v7402_v35 = vld [vmem:[#allocation2 + $0x22] sm:$0xff] }
 0x356   : > { %v2980_v14 = vmax.f32 %v2946_v61, 0.0  ;;  %v2941_v27 = vadd.f32 %v7124_v10, %v2940_v45  ;;  %v3301_v61 = vld [vmem:[#allocation2 + $0x2] sm:$0xff]  ;;  %v7382_v45 = vld [vmem:[#allocation2 + $0x1a] sm:$0xff] }
 0x357   : > { %v3140_v20 = vld [vmem:[#allocation2 + $0xf9] sm:$0xff] }
 0x358   : > { %3012 = vst.msk [vmem:[#allocation2 + $0x109] sm:$0xff] %vm8811_vm15, %v2980_v14  ;;  %v2979_v8 = vmax.f32 %v2941_v27, 0.0  ;;  %3235 = vrot.lane.b32.xlu1 %v3140_v20, %s5601_s24  ;;  %vm8816_vm15 = vmmov %vm8814_vm1  ;;  %v7390_v27 = vld [vmem:[#allocation2 + $0x2a] sm:$0xff] }
 0x359   : > { %v3139_v52 = vld [vmem:[#allocation2 + $0xf1] sm:$0xff] }
 0x35a   : > { %3011 = vst.msk [vmem:[#allocation2 + $0x101] sm:$0xff] %vm8812_vm14, %v2979_v8  ;;  %3233 = vrot.lane.b32.xlu0 %v3139_v52, %s5601_s24  ;;  %v3044_v21 = vld [vmem:[#allocation2 + $0xf8] sm:$0xff]  ;;  %v3043_v47 = vld [vmem:[#allocation2 + $0xf0] sm:$0xff]  ;;  %vm8817_vm14 = vnez %v8595_v26 }
 0x35b   : > { %3108 = vst.msk [vmem:[#allocation3 + $0xf8] sm:$0xff] %vm8814_vm1, %v3044_v21  ;;  %v3075_v10 = vsel %vm8815_vm12, %v3043_v47, 0.0  ;;  %v3336_v14 = vsel %vm8817_vm14, %v7382_v45, 0.0  ;;  %v7392_v21 = vld [vmem:[#allocation2 + $0x12] sm:$0xff]  ;;  %vm8818_vm1 = vnez %v8700_v43  ;;  %v7400_v8 = vld [vmem:[#allocation2 + $0x3a] sm:$0xff]  ;;  %v7410_v47 = vld [vmem:[#allocation2 + $0x4a] sm:$0xff]  ;;  %vm8821_vm12 = vnez %v8712_v5 }
 0x35c   : > { %3399 = vrot.lane.b32.xlu1 %v3334_v2, %s5602_s25  ;;  %3107 = vst.msk [vmem:[#allocation3 + $0xf0] sm:$0xff] %vm8816_vm15, %v3075_v10  ;;  %v3338_v20 = vsel %vm8818_vm1, %v7390_v27, 0.0  ;;  %vm8819_vm15 = vnez %v8704_v22  ;;  %v7412_v2 = vld [vmem:[#allocation2 + $0x32] sm:$0xff]  ;;  %v7420_v10 = vld [vmem:[#allocation2 + $0x5a] sm:$0xff]  ;;  %v7442_v22 = vld [vmem:[#allocation2 + $0x62] sm:$0xff]  ;;  %vm8832_vm1 = vnez %v8732_v30  ;;  %v3976_v9 = vsel %vm8817_vm14, %v7390_v27, 0.0 }
 0x35d   : > { %v3340_v52 = vsel %vm8819_vm15, %v7400_v8, 0.0  ;;  %8820 = vst [vmem:[#allocation70_spill] sm:$0xff] %v7420_v10  ;;  %8824 = vst [vmem:[#allocation73_spill] sm:$0xff] %v7442_v22 }
 0x35e   : > { %3397 = vrot.lane.b32.xlu0 %v3301_v61, %s5602_s25  ;;  %v3342_v61 = vsel %vm8709_vm0, %v7410_v47, 0.0  ;;  %vm8826_vm0 = vnez %v8720_v46 }
 0x360   : > { %3403 = vrot.lane.b32.xlu1 %v3336_v14, %s5602_s25  ;;  %v7422_v14 = vld [vmem:[#allocation2 + $0x42] sm:$0xff] }
 0x362   : > { %3401 = vrot.lane.b32.xlu0 %v7392_v21, %s5602_s25 }
 0x364   : > { %3407 = vrot.lane.b32.xlu1 %v3338_v20, %s5602_s25  ;;  %v3344_v20 = vsel %vm8821_vm12, %v7420_v10, 0.0  ;;  %vm8825_vm12 = vcmask 64544  }
 0x366   : > { %3405 = vrot.lane.b32.xlu0 %v7402_v35, %s5602_s25 }
 0x368   : > { %3411 = vrot.lane.b32.xlu1 %v3340_v52, %s5602_s25  ;;  %v7430_v52 = vld [vmem:[#allocation2 + $0x6a] sm:$0xff] }
 0x369   : > { %8822 = vst [vmem:[#allocation71_spill] sm:$0xff] %v7430_v52 }
 0x36a   : > { %3409 = vrot.lane.b32.xlu0 %v7412_v2, %s5602_s25 }
 0x36c   : > { %3415 = vrot.lane.b32.xlu1 %v3342_v61, %s5602_s25  ;;  %v3346_v61 = vsel %vm8717_vm11, %v7430_v52, 0.0  ;;  %vm8827_vm11 = vmmov %vm8825_vm12 }
 0x36d   : > { %vm8828_vm15 = vmmov %vm8827_vm11 }
 0x36e   : > { %3413 = vrot.lane.b32.xlu0 %v7422_v14, %s5602_s25 }
 0x370   : > { %3419 = vrot.lane.b32.xlu1 %v3344_v20, %s5602_s25  ;;  %v3348_v20 = vsel %vm8826_vm0, %v7440_v36, 0.0  ;;  %v3320_v36 = vld [vmem:[#allocation2 + $0x9a] sm:$0xff]  ;;  %vm8830_vm0 = vmmov %vm8827_vm11 }
 0x372   : > { %3417 = vrot.lane.b32.xlu0 %v7432_v16, %s5602_s25 }
 0x374   : > { %3423 = vrot.lane.b32.xlu1 %v3346_v61, %s5602_s25  ;;  %v7452_v61 = vld [vmem:[#allocation2 + $0x72] sm:$0xff] }
 0x376   : > { %v3180_v5 = vpop.permute.xlu1 %3179  ;;  %3421 = vrot.lane.b32.xlu0 %v7442_v22, %s5602_s25 }
 0x377   : > { %3272 = vst.msk [vmem:[#allocation3 + $0x18] sm:$0xff] %vm8825_vm12, %v3180_v5  ;;  %vm8829_vm12 = vnez %v8726_v57  ;;  %v3322_v57 = vld [vmem:[#allocation2 + $0xaa] sm:$0xff] }
 0x378   : > { %v3178_v10 = vpop.permute.xlu0 %3177  ;;  %3427 = vrot.lane.b32.xlu1 %v3348_v20, %s5602_s25  ;;  %v3350_v5 = vsel %vm8829_vm12, %v3318_v3, 0.0  ;;  %v3317_v20 = vld [vmem:[#allocation2 + $0x82] sm:$0xff]  ;;  %v3319_v3 = vld [vmem:[#allocation2 + $0x92] sm:$0xff]  ;;  %vm8834_vm12 = vnez %v8737_v12 }
 0x379   : > { %3271 = vst.msk [vmem:[#allocation3 + $0x10] sm:$0xff] %vm8827_vm11, %v3178_v10  ;;  %vm8831_vm11 = vmmov %vm8830_vm0  ;;  %v3352_v10 = vsel %vm8832_vm1, %v3320_v36, 0.0  ;;  %v3321_v36 = vld [vmem:[#allocation2 + $0xa2] sm:$0xff] }
 0x37a   : > { %v3184_v52 = vpop.permute.xlu1 %3183  ;;  %3425 = vrot.lane.b32.xlu0 %v7452_v61, %s5602_s25 }
 0x37b   : > { %3274 = vst.msk [vmem:[#allocation3 + $0x28] sm:$0xff] %vm8828_vm15, %v3184_v52  ;;  %vm8833_vm15 = vmmov %vm8830_vm0 }
 0x37c   : > { %3431 = vrot.lane.b32.xlu1 %v3350_v5, %s5602_s25  ;;  %v3182_v46 = vpop.permute.xlu0 %3181 }
 0x37d   : > { %3273 = vst.msk [vmem:[#allocation3 + $0x20] sm:$0xff] %vm8830_vm0, %v3182_v46  ;;  %v3354_v46 = vsel %vm8834_vm12, %v3322_v57, 0.0  ;;  %v3323_v57 = vld [vmem:[#allocation2 + $0xb2] sm:$0xff]  ;;  %vm8838_vm12 = vnez %v8745_v24 }
 0x37e   : > { %v3188_v22 = vpop.permute.xlu1 %3187  ;;  %3429 = vrot.lane.b32.xlu0 %v3317_v20, %s5602_s25  ;;  %v3324_v20 = vld [vmem:[#allocation2 + $0xba] sm:$0xff] }
 0x37f   : > { %3276 = vst.msk [vmem:[#allocation3 + $0x38] sm:$0xff] %vm8831_vm11, %v3188_v22  ;;  %vm8835_vm11 = vmmov %vm8830_vm0 }
 0x380   : > { %3435 = vrot.lane.b32.xlu1 %v3352_v10, %s5602_s25  ;;  %v3186_v52 = vpop.permute.xlu0 %3185 }
 0x381   : > { %3275 = vst.msk [vmem:[#allocation3 + $0x30] sm:$0xff] %vm8833_vm15, %v3186_v52  ;;  %vm8836_vm15 = vmmov %vm8830_vm0  ;;  %v3356_v52 = vsel %vm8742_vm10, %v3324_v20, 0.0  ;;  %v3325_v20 = vld [vmem:[#allocation2 + $0xc2] sm:$0xff]  ;;  %vm8840_vm10 = vnez %v8747_v62 }
 0x382   : > { %v3192_v5 = vpop.permute.xlu1 %3191  ;;  %3433 = vrot.lane.b32.xlu0 %v3319_v3, %s5602_s25 }
 0x383   : > { %3278 = vst.msk [vmem:[#allocation3 + $0x48] sm:$0xff] %vm8830_vm0, %v3192_v5  ;;  %v3326_v5 = vld [vmem:[#allocation2 + $0xca] sm:$0xff] }
 0x384   : > { %3439 = vrot.lane.b32.xlu1 %v3354_v46, %s5602_s25  ;;  %v3190_v22 = vpop.permute.xlu0 %3189 }
 0x385   : > { %3277 = vst.msk [vmem:[#allocation3 + $0x40] sm:$0xff] %vm8835_vm11, %v3190_v22  ;;  %vm8837_vm11 = vmmov %vm8830_vm0  ;;  %v3358_v22 = vsel %vm8838_vm12, %v3326_v5, 0.0  ;;  %v3327_v5 = vld [vmem:[#allocation2 + $0xd2] sm:$0xff]  ;;  %vm8843_vm12 = vnez %v8748_v53 }
 0x386   : > { %v3196_v10 = vpop.permute.xlu1 %3195  ;;  %3437 = vrot.lane.b32.xlu0 %v3321_v36, %s5602_s25 }
 0x387   : > { %3280 = vst.msk [vmem:[#allocation3 + $0x58] sm:$0xff] %vm8836_vm15, %v3196_v10  ;;  %v3328_v10 = vld [vmem:[#allocation2 + $0xda] sm:$0xff]  ;;  %vm8839_vm15 = vmmov %vm8830_vm0 }
 0x388   : > { %3443 = vrot.lane.b32.xlu1 %v3356_v52, %s5602_s25  ;;  %v3194_v3 = vpop.permute.xlu0 %3193 }
 0x389   : > { %3279 = vst.msk [vmem:[#allocation3 + $0x50] sm:$0xff] %vm8830_vm0, %v3194_v3  ;;  %v3360_v3 = vsel %vm8840_vm10, %v3328_v10, 0.0  ;;  %v3329_v10 = vld [vmem:[#allocation2 + $0xe2] sm:$0xff] }
 0x38a   : > { %v3200_v46 = vpop.permute.xlu1 %3199  ;;  %3441 = vrot.lane.b32.xlu0 %v3323_v57, %s5602_s25 }
 0x38b   : > { %3282 = vst.msk [vmem:[#allocation3 + $0x68] sm:$0xff] %vm8837_vm11, %v3200_v46  ;;  %v3330_v46 = vld [vmem:[#allocation2 + $0xea] sm:$0xff]  ;;  %vm8841_vm11 = vmmov %vm8830_vm0 }
 0x38c   : > { %3447 = vrot.lane.b32.xlu1 %v3358_v22, %s5602_s25  ;;  %v3198_v36 = vpop.permute.xlu0 %3197 }
 0x38d   : > { %3281 = vst.msk [vmem:[#allocation3 + $0x60] sm:$0xff] %vm8839_vm15, %v3198_v36  ;;  %vm8842_vm15 = vmmov %vm8830_vm0  ;;  %v3362_v36 = vsel %vm8843_vm12, %v3330_v46, 0.0 }
 0x38e   : > { %v3204_v52 = vpop.permute.xlu1 %3203  ;;  %3445 = vrot.lane.b32.xlu0 %v3325_v20, %s5602_s25  ;;  %vm8846_vm12 = vmmov %vm8830_vm0 }
 0x38f   : > { %3284 = vst.msk [vmem:[#allocation3 + $0x78] sm:$0xff] %vm8830_vm0, %v3204_v52  ;;  %v3332_v52 = vld [vmem:[#allocation2 + $0xfa] sm:$0xff] }
 0x390   : > { %3451 = vrot.lane.b32.xlu1 %v3360_v3, %s5602_s25  ;;  %v3202_v57 = vpop.permute.xlu0 %3201 }
 0x391   : > { %3283 = vst.msk [vmem:[#allocation3 + $0x70] sm:$0xff] %vm8841_vm11, %v3202_v57  ;;  %vm8844_vm11 = vnez %v8749_v37  ;;  %v3331_v57 = vld [vmem:[#allocation2 + $0xf2] sm:$0xff] }
 0x392   : > { %v3208_v22 = vpop.permute.xlu1 %3207  ;;  %3449 = vrot.lane.b32.xlu0 %v3327_v5, %s5602_s25  ;;  %v3364_v3 = vsel %vm8844_vm11, %v3332_v52, 0.0  ;;  %v3563_v52 = vsel %vm5862_vm5, %v7211_v31, 0.0  ;;  %vm8853_vm11 = vnez %v8572_v42 }
 0x393   : > { %3286 = vst.msk [vmem:[#allocation3 + $0x88] sm:$0xff] %vm8842_vm15, %v3208_v22  ;;  %vm8845_vm15 = vmmov %vm8830_vm0  ;;  %v3557_v22 = vsel %vm5834_vm2, %v7151_v19, 0.0  ;;  %v3561_v19 = vsel %vm5852_vm4, %v7195_v13, 0.0 }
 0x394   : > { %3455 = vrot.lane.b32.xlu1 %v3362_v36, %s5602_s25  ;;  %v3206_v20 = vpop.permute.xlu0 %3205  ;;  %v3559_v36 = vsel %vm5838_vm3, %v7173_v40, 0.0 }
 0x395   : > { %3285 = vst.msk [vmem:[#allocation3 + $0x80] sm:$0xff] %vm8830_vm0, %v3206_v20 }
 0x396   : > { %3453 = vrot.lane.b32.xlu0 %v3329_v10, %s5602_s25 }
 0x398   : > { %3459 = vrot.lane.b32.xlu1 %v3364_v3, %s5602_s25 }
 0x39a   : > { %v3212_v5 = vpop.permute.xlu1 %3211  ;;  %3457 = vrot.lane.b32.xlu0 %v3331_v57, %s5602_s25  ;;  %v3565_v57 = vsel %vm5872_vm6, %v7227_v54, 0.0 }
 0x39b   : > { %3288 = vst.msk [vmem:[#allocation3 + $0x98] sm:$0xff] %vm8845_vm15, %v3212_v5  ;;  %vm8848_vm15 = vmmov %vm8830_vm0  ;;  %v3567_v5 = vsel %vm5876_vm7, %v7241_v17, 0.0 }
 0x39c   : > { %3623 = vrot.lane.b32.xlu1 %v7149_v23, %s5603_s26  ;;  %v3210_v46 = vpop.permute.xlu0 %3209 }
 0x39d   : > { %3287 = vst.msk [vmem:[#allocation3 + $0x90] sm:$0xff] %vm8846_vm12, %v3210_v46  ;;  %vm8847_vm12 = vmmov %vm8830_vm0 }
 0x39e   : > { %3621 = vrot.lane.b32.xlu0 %v3557_v22, %s5603_s26 }
 0x3a0   : > { %3627 = vrot.lane.b32.xlu1 %v7171_v1, %s5603_s26 }
 0x3a2   : > { %v3216_v20 = vpop.permute.xlu1 %3215  ;;  %3625 = vrot.lane.b32.xlu0 %v3559_v36, %s5603_s26  ;;  %v3569_v36 = vsel %vm5894_vm8, %v7255_v7, 0.0 }
 0x3a3   : > { %3290 = vst.msk [vmem:[#allocation3 + $0xa8] sm:$0xff] %vm8830_vm0, %v3216_v20  ;;  %v3571_v20 = vsel %vm5898_vm9, %v7269_v55, 0.0  ;;  %v3575_v55 = vsel %vm8853_vm11, %v7301_v51, 0.0  ;;  %v8858_v51 = vld [vmem:[#allocation37_spill] sm:$0xff]  ;;  %vm8864_vm11 = vcmask 97344  }
 0x3a4   : > { %3631 = vrot.lane.b32.xlu1 %v7193_v15, %s5603_s26  ;;  %v3214_v23 = vpop.permute.xlu0 %3213  ;;  %vm8859_vm1 = vnez %v8858_v51 }
 0x3a5   : > { %3289 = vst.msk [vmem:[#allocation3 + $0xa0] sm:$0xff] %vm8847_vm12, %v3214_v23  ;;  %vm8849_vm12 = vmmov %vm8830_vm0 }
 0x3a6   : > { %3629 = vrot.lane.b32.xlu0 %v3561_v19, %s5603_s26 }
 0x3a8   : > { %3635 = vrot.lane.b32.xlu1 %v7209_v0, %s5603_s26 }
 0x3aa   : > { %v3220_v10 = vpop.permute.xlu1 %3219  ;;  %3633 = vrot.lane.b32.xlu0 %v3563_v52, %s5603_s26 }
 0x3ab   : > { %3292 = vst.msk [vmem:[#allocation3 + $0xb8] sm:$0xff] %vm8848_vm15, %v3220_v10  ;;  %vm8850_vm15 = vmmov %vm8830_vm0 }
 0x3ac   : > { %3639 = vrot.lane.b32.xlu1 %v7225_v4, %s5603_s26  ;;  %v3218_v3 = vpop.permute.xlu0 %3217 }
 0x3ad   : > { %3291 = vst.msk [vmem:[#allocation3 + $0xb0] sm:$0xff] %vm8830_vm0, %v3218_v3 }
 0x3ae   : > { %3637 = vrot.lane.b32.xlu0 %v3565_v57, %s5603_s26 }
 0x3b0   : > { %3643 = vrot.lane.b32.xlu1 %v7239_v29, %s5603_s26 }
 0x3b2   : > { %v3224_v46 = vpop.permute.xlu1 %3223  ;;  %3641 = vrot.lane.b32.xlu0 %v3567_v5, %s5603_s26 }
 0x3b3   : > { %3294 = vst.msk [vmem:[#allocation3 + $0xc8] sm:$0xff] %vm8849_vm12, %v3224_v46  ;;  %vm8851_vm12 = vmmov %vm8830_vm0  ;;  %v8862_v46 = vld [vmem:[#allocation38_spill] sm:$0xff] }
 0x3b4   : > { %3647 = vrot.lane.b32.xlu1 %v7253_v32, %s5603_s26  ;;  %v3222_v22 = vpop.permute.xlu0 %3221 }
 0x3b5   : > { %3293 = vst.msk [vmem:[#allocation3 + $0xc0] sm:$0xff] %vm8850_vm15, %v3222_v22  ;;  %vm8852_vm15 = vnez %v8570_v25  ;;  %v4182_v25 = vld [vmem:[#allocation2 + $0xa8] sm:$0xff] }
 0x3b6   : > { %3645 = vrot.lane.b32.xlu0 %v3569_v36, %s5603_s26  ;;  %v3573_v7 = vsel %vm8852_vm15, %v7285_v63, 0.0  ;;  %v8855_v63 = vld [vmem:[#allocation36_spill] sm:$0xff]  ;;  %v8865_v36 = vld [vmem:[#allocation43_spill] sm:$0xff] }
 0x3b7   : > { %vm8856_vm10 = vnez %v8855_v63 }
 0x3b8   : > { %3651 = vrot.lane.b32.xlu1 %v7267_v18, %s5603_s26  ;;  %v3577_v3 = vsel %vm8856_vm10, %v7317_v39, 0.0  ;;  %v8861_v39 = vld [vmem:[#allocation69_spill] sm:$0xff]  ;;  %vm8863_vm10 = vnez %v8862_v46  ;;  %v4190_v46 = vld [vmem:[#allocation2 + $0xe8] sm:$0xff] }
 0x3b9   : > { %v3581_v22 = vsel %vm8863_vm10, %v8861_v39, 0.0  ;;  %v8878_v39 = vld [vmem:[#allocation64_spill] sm:$0xff] }
 0x3ba   : > { %v3228_v23 = vpop.permute.xlu1 %3227  ;;  %3649 = vrot.lane.b32.xlu0 %v3571_v20, %s5603_s26 }
 0x3bb   : > { %3296 = vst.msk [vmem:[#allocation3 + $0xd8] sm:$0xff] %vm8830_vm0, %v3228_v23 }
 0x3bc   : > { %3655 = vrot.lane.b32.xlu1 %v7283_v6, %s5603_s26  ;;  %v3226_v19 = vpop.permute.xlu0 %3225 }
 0x3bd   : > { %3295 = vst.msk [vmem:[#allocation3 + $0xd0] sm:$0xff] %vm8851_vm12, %v3226_v19  ;;  %vm8854_vm12 = vmmov %vm8830_vm0 }
 0x3be   : > { %3653 = vrot.lane.b32.xlu0 %v3573_v7, %s5603_s26 }
 0x3c0   : > { %3659 = vrot.lane.b32.xlu1 %v7299_v11, %s5603_s26  ;;  %v8857_v11 = vld [vmem:[#allocation68_spill] sm:$0xff] }
 0x3c1   : > { %v3579_v57 = vsel %vm8859_vm1, %v8857_v11, 0.0 }
 0x3c2   : > { %v3232_v52 = vpop.permute.xlu1 %3231  ;;  %3657 = vrot.lane.b32.xlu0 %v3575_v55, %s5603_s26 }
 0x3c3   : > { %3298 = vst.msk [vmem:[#allocation3 + $0xe8] sm:$0xff] %vm8830_vm0, %v3232_v52  ;;  %v8871_v52 = vld [vmem:[#allocation63_spill] sm:$0xff] }
 0x3c4   : > { %3663 = vrot.lane.b32.xlu1 %v7315_v41, %s5603_s26  ;;  %v3230_v10 = vpop.permute.xlu0 %3229 }
 0x3c5   : > { %3297 = vst.msk [vmem:[#allocation3 + $0xe0] sm:$0xff] %vm8854_vm12, %v3230_v10  ;;  %vm8860_vm12 = vmmov %vm8830_vm0 }
 0x3c6   : > { %3661 = vrot.lane.b32.xlu0 %v3577_v3, %s5603_s26  ;;  %v4841_v3 = vld [vmem:[%s8329_s3 + $0x20] sm:$0xf] }
 0x3c8   : > { %3667 = vrot.lane.b32.xlu1 %v7331_v34, %s5603_s26 }
 0x3ca   : > { %v3236_v5 = vpop.permute.xlu1 %3235  ;;  %3665 = vrot.lane.b32.xlu0 %v3579_v57, %s5603_s26  ;;  %v4839_v57 = vld [vmem:[%s8329_s3 + $0x10] sm:$0xff] }
 0x3cb   : > { %3300 = vst.msk [vmem:[#allocation3 + $0xf8] sm:$0xff] %vm8830_vm0, %v3236_v5  ;;  %vm8866_vm0 = vmmov %vm8864_vm11 }
 0x3cc   : > { %3671 = vrot.lane.b32.xlu1 %v7347_v38, %s5603_s26  ;;  %v3234_v41 = vpop.permute.xlu0 %3233  ;;  %v8867_v38 = vld [vmem:[#allocation39_spill] sm:$0xff] }
 0x3cd   : > { %3299 = vst.msk [vmem:[#allocation3 + $0xf0] sm:$0xff] %vm8860_vm12, %v3234_v41  ;;  %vm8868_vm1 = vnez %v8867_v38  ;;  %vm8869_vm12 = vmmov %vm8866_vm0  ;;  %v4838_v41 = vld [vmem:[%s8329_s3 + $0x8] sm:$0xff] }
 0x3ce   : > { %v3400_v34 = vpop.permute.xlu1 %3399  ;;  %3669 = vrot.lane.b32.xlu0 %v3581_v22, %s5603_s26  ;;  %v3583_v23 = vsel %vm8868_vm1, %v7363_v28, 0.0  ;;  %v4197_v28 = vsel %vm5834_vm2, %v7173_v40, 0.0  ;;  %v8875_v40 = vld [vmem:[#allocation65_spill] sm:$0xff] }
 0x3cf   : > { %3494 = vst.msk [vmem:[#allocation3 + $0x8] sm:$0xff] %vm8864_vm11, %v3400_v34  ;;  %vm8870_vm11 = vmmov %vm8866_vm0 }
 0x3d0   : > { %3813 = vrot.lane.b32.xlu1 %v8865_v36, %s5604_s27  ;;  %v3398_v20 = vpop.permute.xlu0 %3397 }
 0x3d1   : > { %3493 = vst.msk [vmem:[#allocation3] sm:$0xff] %vm8866_vm0, %v3398_v20 }
 0x3d2   : > { %v3404_v19 = vpop.permute.xlu1 %3403  ;;  %3673 = vrot.lane.b32.xlu0 %v3583_v23, %s5603_s26  ;;  %v4614_v23 = vsel %vm8813_vm13, %v7390_v27, 0.0 }
 0x3d3   : > { %3496 = vst.msk [vmem:[#allocation3 + $0x18] sm:$0xff] %vm8869_vm12, %v3404_v19  ;;  %vm8872_vm12 = vmmov %vm8866_vm0 }
 0x3d4   : > { %4037 = vrot.lane.b32.xlu1 %v7392_v21, %s5605_s28  ;;  %v3402_v7 = vpop.permute.xlu0 %3401  ;;  %v3974_v21 = vsel %vm8813_vm13, %v7382_v45, 0.0  ;;  %vm8884_vm13 = vmmov %vm8866_vm0 }
 0x3d5   : > { %3495 = vst.msk [vmem:[#allocation3 + $0x10] sm:$0xff] %vm8870_vm11, %v3402_v7  ;;  %vm8873_vm11 = vcmask 1043456  }
 0x3d6   : > { %v3408_v55 = vpop.permute.xlu1 %3407  ;;  %3815 = vrot.lane.b32.xlu0 %v8871_v52, %s5604_s27  ;;  %5504 = vmatprep.subr.msk.mxu1 %vm8873_vm11, %v4841_v3  ;;  %vm8874_vm2 = vmmov %vm8873_vm11 }
 0x3d7   : > { %3498 = vst.msk [vmem:[#allocation3 + $0x28] sm:$0xff] %vm8866_vm0, %v3408_v55  ;;  %5505 = vmatpush3.msk.msra.mxu1 %vm8874_vm2, %v4841_v3  ;;  %vm8877_vm11 = vmmov %vm8866_vm0  ;;  %v4199_v55 = vsel %vm5838_vm3, %v7195_v13, 0.0  ;;  %v8888_v13 = vld [vmem:[#allocation66_spill] sm:$0xff] }
 0x3d8   : > { %4261 = vrot.lane.b32.xlu1 %v4197_v28, %s5606_s29  ;;  %v3406_v10 = vpop.permute.xlu0 %3405  ;;  %5506 = vmatprep.subr.mxu1 %v4840_v48  ;;  %vm8879_vm2 = vmmov %vm8866_vm0  ;;  %v3754_v3 = vld [vmem:[#allocation2 + $0x39] sm:$0xff] }
 0x3d9   : > { %3497 = vst.msk [vmem:[#allocation3 + $0x20] sm:$0xff] %vm8872_vm12, %v3406_v10  ;;  %vm8876_vm12 = vmmov %vm8866_vm0  ;;  %5507 = vmatpush3.msra.mxu1 %v4840_v48  ;;  %v4616_v48 = vsel %vm8817_vm14, %v7400_v8, 0.0  ;;  %vm8894_vm14 = vnez %v8700_v43  ;;  %v8905_v43 = vld [vmem:[#allocation44_spill] sm:$0xff] }
 0x3da   : > { %v3412_v11 = vpop.permute.xlu1 %3411  ;;  %4039 = vrot.lane.b32.xlu0 %v3974_v21, %s5605_s28  ;;  %5508 = vmatprep.subr.mxu1 %v4839_v57  ;;  %vm8887_vm3 = vmmov %vm8866_vm0  ;;  %v3978_v26 = vsel %vm8894_vm14, %v7400_v8, 0.0 }
 0x3db   : > { %3500 = vst.msk [vmem:[#allocation3 + $0x38] sm:$0xff] %vm8866_vm0, %v3412_v11  ;;  %5509 = vmatpush3.msra.mxu1 %v4839_v57  ;;  %v4201_v57 = vsel %vm5852_vm4, %v7211_v31, 0.0  ;;  %vm8897_vm4 = vmmov %vm8866_vm0  ;;  %v4394_v31 = vld [vmem:[#allocation2 + $0x49] sm:$0xff] }
 0x3dc   : > { %4453 = vrot.lane.b32.xlu1 %v8875_v40, %s5607_s30  ;;  %v3410_v45 = vpop.permute.xlu0 %3409  ;;  %5510 = vmatprep.subr.mxu1 %v4838_v41 }
 0x3dd   : > { %3499 = vst.msk [vmem:[#allocation3 + $0x30] sm:$0xff] %vm8876_vm12, %v3410_v45  ;;  %5511 = vmatpush3.msra.mxu1 %v4838_v41  ;;  %vm8880_vm12 = vmmov %vm8866_vm0 }
 0x3de   : > { %v3416_v5 = vpop.permute.xlu1 %3415  ;;  %4263 = vrot.lane.b32.xlu0 %v7171_v1, %s5606_s29  ;;  %v4837_v1 = vld [vmem:[%s8329_s3] sm:$0xff] }
 0x3df   : > { %3502 = vst.msk [vmem:[#allocation3 + $0x48] sm:$0xff] %vm8877_vm11, %v3416_v5  ;;  %5512 = vmatprep.subr.mxu1 %v4837_v1  ;;  %vm8881_vm11 = vmmov %vm8866_vm0 }
 0x3e0   : > { %4455 = vrot.lane.b32.xlu1 %v8878_v39, %s5607_s30  ;;  %v3414_v22 = vpop.permute.xlu0 %3413  ;;  %5513 = vmatpush3.msra.mxu1 %v4837_v1 }
 0x3e1   : > { %3501 = vst.msk [vmem:[#allocation3 + $0x40] sm:$0xff] %vm8866_vm0, %v3414_v22 }
 0x3e2   : > { %v3420_v34 = vpop.permute.xlu1 %3419  ;;  %3817 = vrot.lane.b32.xlu0 %v8875_v40, %s5604_s27 }
 0x3e3   : > { %3504 = vst.msk [vmem:[#allocation3 + $0x58] sm:$0xff] %vm8879_vm2, %v3420_v34  ;;  %vm8882_vm2 = vmmov %vm8866_vm0 }
 0x3e4   : > { %3819 = vrot.lane.b32.xlu1 %v8878_v39, %s5604_s27  ;;  %v3418_v36 = vpop.permute.xlu0 %3417 }
 0x3e5   : > { %3503 = vst.msk [vmem:[#allocation3 + $0x50] sm:$0xff] %vm8880_vm12, %v3418_v36  ;;  %vm8883_vm12 = vmmov %vm8866_vm0 }
 0x3e6   : > { %v3424_v20 = vpop.permute.xlu1 %3423  ;;  %4677 = vrot.lane.b32.xlu0 %v7402_v35, %s5608_s16 }
 0x3e7   : > { %3506 = vst.msk [vmem:[#allocation3 + $0x68] sm:$0xff] %vm8881_vm11, %v3424_v20  ;;  %vm8886_vm11 = vmmov %vm8866_vm0 }
 0x3e8   : > { %4679 = vrot.lane.b32.xlu1 %v4614_v23, %s5608_s16  ;;  %v3422_v19 = vpop.permute.xlu0 %3421  ;;  %v4203_v23 = vsel %vm5862_vm5, %v7227_v54, 0.0  ;;  %v4396_v54 = vld [vmem:[#allocation2 + $0x59] sm:$0xff] }
 0x3e9   : > { %3505 = vst.msk [vmem:[#allocation3 + $0x60] sm:$0xff] %vm8866_vm0, %v3422_v19 }
 0x3ea   : > { %v3428_v7 = vpop.permute.xlu1 %3427  ;;  %4041 = vrot.lane.b32.xlu0 %v7402_v35, %s5605_s28  ;;  %v8885_v35 = vld [vmem:[#allocation67_spill] sm:$0xff] }
 0x3eb   : > { %3508 = vst.msk [vmem:[#allocation3 + $0x78] sm:$0xff] %vm8882_vm2, %v3428_v7  ;;  %vm8889_vm2 = vmmov %vm8866_vm0 }
 0x3ec   : > { %4265 = vrot.lane.b32.xlu1 %v4199_v55, %s5606_s29  ;;  %v3426_v52 = vpop.permute.xlu0 %3425 }
 0x3ed   : > { %3507 = vst.msk [vmem:[#allocation3 + $0x70] sm:$0xff] %vm8883_vm12, %v3426_v52  ;;  %vm8890_vm12 = vmmov %vm8866_vm0 }
 0x3ee   : > { %v3432_v28 = vpop.permute.xlu1 %3431  ;;  %4043 = vrot.lane.b32.xlu0 %v3976_v9, %s5605_s28 }
 0x3ef   : > { %3510 = vst.msk [vmem:[#allocation3 + $0x88] sm:$0xff] %vm8884_vm13, %v3432_v28  ;;  %vm8891_vm13 = vmmov %vm8866_vm0 }
 0x3f0   : > { %4457 = vrot.lane.b32.xlu1 %v8885_v35, %s5607_s30  ;;  %v3430_v10 = vpop.permute.xlu0 %3429 }
 0x3f1   : > { %3509 = vst.msk [vmem:[#allocation3 + $0x80] sm:$0xff] %vm8886_vm11, %v3430_v10  ;;  %vm8892_vm11 = vmmov %vm8866_vm0 }
 0x3f2   : > { %v3436_v58 = vpop.permute.xlu1 %3435  ;;  %4267 = vrot.lane.b32.xlu0 %v7193_v15, %s5606_s29 }
 0x3f3   : > { %3512 = vst.msk [vmem:[#allocation3 + $0x98] sm:$0xff] %vm8887_vm3, %v3436_v58  ;;  %vm8893_vm3 = vmmov %vm8866_vm0 }
 0x3f4   : > { %4459 = vrot.lane.b32.xlu1 %v8888_v13, %s5607_s30  ;;  %v3434_v27 = vpop.permute.xlu0 %3433 }
 0x3f5   : > { %3511 = vst.msk [vmem:[#allocation3 + $0x90] sm:$0xff] %vm8866_vm0, %v3434_v27  ;;  %v4205_v27 = vsel %vm5872_vm6, %v7241_v17, 0.0  ;;  %v4398_v17 = vld [vmem:[#allocation2 + $0x69] sm:$0xff] }
 0x3f6   : > { %v3440_v21 = vpop.permute.xlu1 %3439  ;;  %3821 = vrot.lane.b32.xlu0 %v8885_v35, %s5604_s27 }
 0x3f7   : > { %3514 = vst.msk [vmem:[#allocation3 + $0xa8] sm:$0xff] %vm8889_vm2, %v3440_v21  ;;  %vm8895_vm2 = vmmov %vm8866_vm0 }
 0x3f8   : > { %3823 = vrot.lane.b32.xlu1 %v3754_v3, %s5604_s27  ;;  %v3438_v11 = vpop.permute.xlu0 %3437  ;;  %v8917_v3 = vld [vmem:[#allocation45_spill] sm:$0xff] }
 0x3f9   : > { %3513 = vst.msk [vmem:[#allocation3 + $0xa0] sm:$0xff] %vm8890_vm12, %v3438_v11  ;;  %vm8896_vm12 = vmmov %vm8866_vm0 }
 0x3fa   : > { %v3444_v15 = vpop.permute.xlu1 %3443  ;;  %4681 = vrot.lane.b32.xlu0 %v7412_v2, %s5608_s16 }
 0x3fb   : > { %3516 = vst.msk [vmem:[#allocation3 + $0xb8] sm:$0xff] %vm8891_vm13, %v3444_v15  ;;  %vm8898_vm13 = vmmov %vm8866_vm0 }
 0x3fc   : > { %4683 = vrot.lane.b32.xlu1 %v4616_v48, %s5608_s16  ;;  %v3442_v40 = vpop.permute.xlu0 %3441 }
 0x3fd   : > { %3515 = vst.msk [vmem:[#allocation3 + $0xb0] sm:$0xff] %vm8892_vm11, %v3442_v40  ;;  %vm8899_vm11 = vmmov %vm8866_vm0 }
 0x3fe   : > { %v3448_v45 = vpop.permute.xlu1 %3447  ;;  %4045 = vrot.lane.b32.xlu0 %v7412_v2, %s5605_s28  ;;  %v4393_v2 = vld [vmem:[#allocation2 + $0x41] sm:$0xff] }
 0x3ff   : > { %3518 = vst.msk [vmem:[#allocation3 + $0xc8] sm:$0xff] %vm8893_vm3, %v3448_v45  ;;  %vm8900_vm3 = vmmov %vm8866_vm0 }
 0x400   : > { %4269 = vrot.lane.b32.xlu1 %v4201_v57, %s5606_s29  ;;  %v3446_v5 = vpop.permute.xlu0 %3445 }
 0x401   : > { %3517 = vst.msk [vmem:[#allocation3 + $0xc0] sm:$0xff] %vm8866_vm0, %v3446_v5  ;;  %vm8901_vm0 = vcmask 130144  }
 0x402   : > { %v3452_v41 = vpop.permute.xlu1 %3451  ;;  %4047 = vrot.lane.b32.xlu0 %v3978_v26, %s5605_s28  ;;  %vm8909_vm5 = vmmov %vm8901_vm0  ;;  %v8926_v26 = vld [vmem:[#allocation71_spill] sm:$0xff] }
 0x403   : > { %3520 = vst.msk [vmem:[#allocation3 + $0xd8] sm:$0xff] %vm8895_vm2, %v3452_v41  ;;  %vm8902_vm2 = vmmov %vm8901_vm0 }
 0x404   : > { %4461 = vrot.lane.b32.xlu1 %v4393_v2, %s5607_s30  ;;  %v3450_v39 = vpop.permute.xlu0 %3449  ;;  %vm8921_vm6 = vmmov %vm8901_vm0 }
 0x405   : > { %3519 = vst.msk [vmem:[#allocation3 + $0xd0] sm:$0xff] %vm8896_vm12, %v3450_v39  ;;  %vm8903_vm12 = vmmov %vm8901_vm0 }
 0x406   : > { %v3456_v33 = vpop.permute.xlu1 %3455  ;;  %4271 = vrot.lane.b32.xlu0 %v7209_v0, %s5606_s29  ;;  %v4618_v0 = vsel %vm8894_vm14, %v7410_v47, 0.0  ;;  %vm8906_vm14 = vnez %v8905_v43 }
 0x407   : > { %3522 = vst.msk [vmem:[#allocation3 + $0xe8] sm:$0xff] %vm8897_vm4, %v3456_v33  ;;  %vm8904_vm4 = vmmov %vm8901_vm0  ;;  %v3980_v7 = vsel %vm8906_vm14, %v7410_v47, 0.0  ;;  %v5588_v33 = vld [vmem:[#allocation2 + $0x70] sm:$0xff] }
 0x408   : > { %4463 = vrot.lane.b32.xlu1 %v4394_v31, %s5607_s30  ;;  %v3454_v8 = vpop.permute.xlu0 %3453 }
 0x409   : > { %3521 = vst.msk [vmem:[#allocation3 + $0xe0] sm:$0xff] %vm8898_vm13, %v3454_v8  ;;  %vm8907_vm13 = vmmov %vm8901_vm0 }
 0x40a   : > { %v3460_v22 = vpop.permute.xlu1 %3459  ;;  %3825 = vrot.lane.b32.xlu0 %v4393_v2, %s5604_s27 }
 0x40b   : > { %3524 = vst.msk [vmem:[#allocation3 + $0xf8] sm:$0xff] %vm8899_vm11, %v3460_v22  ;;  %vm8908_vm11 = vmmov %vm8901_vm0  ;;  %v8930_v22 = vld [vmem:[#allocation46_spill] sm:$0xff] }
 0x40c   : > { %3827 = vrot.lane.b32.xlu1 %v4394_v31, %s5604_s27  ;;  %v3458_v1 = vpop.permute.xlu0 %3457  ;;  %v4207_v31 = vsel %vm5876_vm7, %v5588_v33, 0.0  ;;  %vm8934_vm7 = vcmask 162944  }
 0x40d   : > { %3523 = vst.msk [vmem:[#allocation3 + $0xf0] sm:$0xff] %vm8900_vm3, %v3458_v1  ;;  %vm8910_vm3 = vmmov %vm8901_vm0 }
 0x40e   : > { %v3624_v34 = vpop.permute.xlu1 %3623  ;;  %4685 = vrot.lane.b32.xlu0 %v7422_v14, %s5608_s16 }
 0x40f   : > { %3718 = vst.msk [vmem:[#allocation3 + $0x8] sm:$0xff] %vm8901_vm0, %v3624_v34 }
 0x410   : > { %4687 = vrot.lane.b32.xlu1 %v4618_v0, %s5608_s16  ;;  %v3622_v36 = vpop.permute.xlu0 %3621  ;;  %v4399_v0 = vld [vmem:[#allocation2 + $0x71] sm:$0xff] }
 0x411   : > { %3717 = vst.msk [vmem:[#allocation3] sm:$0xff] %vm8902_vm2, %v3622_v36  ;;  %vm8911_vm2 = vmmov %vm8901_vm0 }
 0x412   : > { %v3628_v20 = vpop.permute.xlu1 %3627  ;;  %4049 = vrot.lane.b32.xlu0 %v7422_v14, %s5605_s28  ;;  %v4395_v14 = vld [vmem:[#allocation2 + $0x51] sm:$0xff] }
 0x413   : > { %3720 = vst.msk [vmem:[#allocation3 + $0x18] sm:$0xff] %vm8903_vm12, %v3628_v20  ;;  %vm8912_vm12 = vmmov %vm8901_vm0  ;;  %v4400_v20 = vld [vmem:[#allocation2 + $0x79] sm:$0xff] }
 0x414   : > { %4273 = vrot.lane.b32.xlu1 %v4203_v23, %s5606_s29  ;;  %v3626_v19 = vpop.permute.xlu0 %3625 }
 0x415   : > { %3719 = vst.msk [vmem:[#allocation3 + $0x10] sm:$0xff] %vm8904_vm4, %v3626_v19  ;;  %vm8914_vm4 = vmmov %vm8901_vm0 }
 0x416   : > { %v3632_v55 = vpop.permute.xlu1 %3631  ;;  %4051 = vrot.lane.b32.xlu0 %v3980_v7, %s5605_s28 }
 0x417   : > { %3722 = vst.msk [vmem:[#allocation3 + $0x28] sm:$0xff] %vm8907_vm13, %v3632_v55  ;;  %vm8915_vm13 = vmmov %vm8901_vm0 }
 0x418   : > { %4465 = vrot.lane.b32.xlu1 %v4395_v14, %s5607_s30  ;;  %v3630_v52 = vpop.permute.xlu0 %3629 }
 0x419   : > { %3721 = vst.msk [vmem:[#allocation3 + $0x20] sm:$0xff] %vm8908_vm11, %v3630_v52  ;;  %vm8916_vm11 = vmmov %vm8901_vm0 }
 0x41a   : > { %v3636_v44 = vpop.permute.xlu1 %3635  ;;  %4275 = vrot.lane.b32.xlu0 %v7225_v4, %s5606_s29  ;;  %v8913_v4 = vld [vmem:[#allocation70_spill] sm:$0xff] }
 0x41b   : > { %3724 = vst.msk [vmem:[#allocation3 + $0x38] sm:$0xff] %vm8909_vm5, %v3636_v44  ;;  %v4620_v10 = vsel %vm8906_vm14, %v8913_v4, 0.0  ;;  %vm8918_vm14 = vnez %v8917_v3  ;;  %vm8919_vm5 = vmmov %vm8901_vm0  ;;  %v3954_v44 = vld [vmem:[#allocation2 + $0x7a] sm:$0xff]  ;;  %v4594_v3 = vld [vmem:[#allocation2 + $0x8a] sm:$0xff] }
 0x41c   : > { %4467 = vrot.lane.b32.xlu1 %v4396_v54, %s5607_s30  ;;  %v3634_v47 = vpop.permute.xlu0 %3633  ;;  %v3982_v11 = vsel %vm8918_vm14, %v8913_v4, 0.0  ;;  %v4622_v41 = vsel %vm8918_vm14, %v8926_v26, 0.0  ;;  %vm8931_vm14 = vnez %v8930_v22  ;;  %v4596_v22 = vld [vmem:[#allocation2 + $0x9a] sm:$0xff] }
 0x41d   : > { %3723 = vst.msk [vmem:[#allocation3 + $0x30] sm:$0xff] %vm8910_vm3, %v3634_v47  ;;  %vm8920_vm3 = vmmov %vm8901_vm0  ;;  %v3984_v1 = vsel %vm8931_vm14, %v8926_v26, 0.0 }
 0x41e   : > { %v3640_v9 = vpop.permute.xlu1 %3639  ;;  %3829 = vrot.lane.b32.xlu0 %v4395_v14, %s5604_s27 }
 0x41f   : > { %3726 = vst.msk [vmem:[#allocation3 + $0x48] sm:$0xff] %vm8901_vm0, %v3640_v9 }
 0x420   : > { %3831 = vrot.lane.b32.xlu1 %v4396_v54, %s5604_s27  ;;  %v3638_v28 = vpop.permute.xlu0 %3637  ;;  %v5589_v54 = vld [vmem:[#allocation2 + $0x80] sm:$0xff] }
 0x421   : > { %3725 = vst.msk [vmem:[#allocation3 + $0x40] sm:$0xff] %vm8911_vm2, %v3638_v28  ;;  %vm8922_vm2 = vmmov %vm8901_vm0  ;;  %v4209_v47 = vsel %vm5894_vm8, %v5589_v54, 0.0  ;;  %v8942_v28 = vld [vmem:[#allocation47_spill] sm:$0xff]  ;;  %v4406_v54 = vld [vmem:[#allocation2 + $0xa9] sm:$0xff] }
 0x422   : > { %v3644_v35 = vpop.permute.xlu1 %3643  ;;  %4689 = vrot.lane.b32.xlu0 %v7432_v16, %s5608_s16 }
 0x423   : > { %3728 = vst.msk [vmem:[#allocation3 + $0x58] sm:$0xff] %vm8912_vm12, %v3644_v35  ;;  %vm8923_vm12 = vmmov %vm8901_vm0 }
 0x424   : > { %4691 = vrot.lane.b32.xlu1 %v4620_v10, %s5608_s16  ;;  %v3642_v58 = vpop.permute.xlu0 %3641 }
 0x425   : > { %3727 = vst.msk [vmem:[#allocation3 + $0x50] sm:$0xff] %vm8914_vm4, %v3642_v58  ;;  %vm8925_vm4 = vmmov %vm8901_vm0  ;;  %v4402_v58 = vld [vmem:[#allocation2 + $0x89] sm:$0xff] }
 0x426   : > { %v3648_v13 = vpop.permute.xlu1 %3647  ;;  %4053 = vrot.lane.b32.xlu0 %v7432_v16, %s5605_s28  ;;  %v4397_v16 = vld [vmem:[#allocation2 + $0x61] sm:$0xff] }
 0x427   : > { %3730 = vst.msk [vmem:[#allocation3 + $0x68] sm:$0xff] %vm8915_vm13, %v3648_v13  ;;  %vm8927_vm13 = vmmov %vm8901_vm0 }
 0x428   : > { %4277 = vrot.lane.b32.xlu1 %v4205_v27, %s5606_s29  ;;  %v3646_v21 = vpop.permute.xlu0 %3645 }
 0x429   : > { %3729 = vst.msk [vmem:[#allocation3 + $0x60] sm:$0xff] %vm8916_vm11, %v3646_v21  ;;  %vm8928_vm11 = vmmov %vm8901_vm0 }
 0x42a   : > { %v3652_v15 = vpop.permute.xlu1 %3651  ;;  %4055 = vrot.lane.b32.xlu0 %v3982_v11, %s5605_s28 }
 0x42b   : > { %3732 = vst.msk [vmem:[#allocation3 + $0x78] sm:$0xff] %vm8919_vm5, %v3652_v15  ;;  %vm8929_vm5 = vmmov %vm8901_vm0 }
 0x42c   : > { %4469 = vrot.lane.b32.xlu1 %v4397_v16, %s5607_s30  ;;  %v3650_v48 = vpop.permute.xlu0 %3649 }
 0x42d   : > { %3731 = vst.msk [vmem:[#allocation3 + $0x70] sm:$0xff] %vm8920_vm3, %v3650_v48  ;;  %vm8932_vm3 = vmmov %vm8901_vm0 }
 0x42e   : > { %v3656_v49 = vpop.permute.xlu1 %3655  ;;  %4279 = vrot.lane.b32.xlu0 %v7239_v29, %s5606_s29  ;;  %v8924_v29 = vld [vmem:[#allocation73_spill] sm:$0xff] }
 0x42f   : > { %3734 = vst.msk [vmem:[#allocation3 + $0x88] sm:$0xff] %vm8921_vm6, %v3656_v49  ;;  %vm8933_vm6 = vmmov %vm8901_vm0 }
 0x430   : > { %4471 = vrot.lane.b32.xlu1 %v4398_v17, %s5607_s30  ;;  %v3654_v40 = vpop.permute.xlu0 %3653 }
 0x431   : > { %3733 = vst.msk [vmem:[#allocation3 + $0x80] sm:$0xff] %vm8901_vm0, %v3654_v40  ;;  %v5590_v40 = vld [vmem:[#allocation2 + $0x90] sm:$0xff] }
 0x432   : > { %v3660_v45 = vpop.permute.xlu1 %3659  ;;  %3833 = vrot.lane.b32.xlu0 %v4397_v16, %s5604_s27 }
 0x433   : > { %3736 = vst.msk [vmem:[#allocation3 + $0x98] sm:$0xff] %vm8922_vm2, %v3660_v45  ;;  %vm8935_vm2 = vcmask 195744   ;;  %v4211_v45 = vsel %vm5898_vm9, %v5590_v40, 0.0 }
 0x434   : > { %3835 = vrot.lane.b32.xlu1 %v4398_v17, %s5604_s27  ;;  %v3658_v57 = vpop.permute.xlu0 %3657 }
 0x435   : > { %3735 = vst.msk [vmem:[#allocation3 + $0x90] sm:$0xff] %vm8923_vm12, %v3658_v57  ;;  %vm8936_vm12 = vmmov %vm8934_vm7 }
 0x436   : > { %v3664_v5 = vpop.permute.xlu1 %3663  ;;  %4693 = vrot.lane.b32.xlu0 %v8924_v29, %s5608_s16 }
 0x437   : > { %3738 = vst.msk [vmem:[#allocation3 + $0xa8] sm:$0xff] %vm8925_vm4, %v3664_v5  ;;  %vm8937_vm4 = vcmask 228544   ;;  %v8955_v5 = vld [vmem:[#allocation48_spill] sm:$0xff] }
 0x438   : > { %4695 = vrot.lane.b32.xlu1 %v4622_v41, %s5608_s16  ;;  %v3662_v2 = vpop.permute.xlu0 %3661  ;;  %v4403_v41 = vld [vmem:[#allocation2 + $0x91] sm:$0xff] }
 0x439   : > { %3737 = vst.msk [vmem:[#allocation3 + $0xa0] sm:$0xff] %vm8927_vm13, %v3662_v2  ;;  %vm8939_vm13 = vmmov %vm8935_vm2 }
 0x43a   : > { %v3668_v39 = vpop.permute.xlu1 %3667  ;;  %4057 = vrot.lane.b32.xlu0 %v8924_v29, %s5605_s28 }
 0x43b   : > { %3740 = vst.msk [vmem:[#allocation3 + $0xb8] sm:$0xff] %vm8928_vm11, %v3668_v39  ;;  %vm8940_vm11 = vcmask 261344   ;;  %v4404_v39 = vld [vmem:[#allocation2 + $0x99] sm:$0xff] }
 0x43c   : > { %4281 = vrot.lane.b32.xlu1 %v4207_v31, %s5606_s29  ;;  %v3666_v8 = vpop.permute.xlu0 %3665 }
 0x43d   : > { %3739 = vst.msk [vmem:[#allocation3 + $0xb0] sm:$0xff] %vm8929_vm5, %v3666_v8  ;;  %vm8941_vm5 = vmmov %vm8937_vm4 }
 0x43e   : > { %v3672_v34 = vpop.permute.xlu1 %3671  ;;  %4059 = vrot.lane.b32.xlu0 %v3984_v1, %s5605_s28 }
 0x43f   : > { %3742 = vst.msk [vmem:[#allocation3 + $0xc8] sm:$0xff] %vm8932_vm3, %v3672_v34  ;;  %vm8944_vm3 = vmmov %vm8940_vm11 }
 0x440   : > { %4473 = vrot.lane.b32.xlu1 %v4399_v0, %s5607_s30  ;;  %v3670_v36 = vpop.permute.xlu0 %3669 }
 0x441   : > { %3741 = vst.msk [vmem:[#allocation3 + $0xc0] sm:$0xff] %vm8933_vm6, %v3670_v36  ;;  %vm8945_vm6 = vmmov %vm8934_vm7 }
 0x442   : > { %v3814_v50 = vpop.permute.xlu1 %3813  ;;  %4283 = vrot.lane.b32.xlu0 %v7253_v32, %s5606_s29  ;;  %v8938_v32 = vld [vmem:[#allocation72_spill] sm:$0xff]  ;;  %vm8946_vm8 = vmmov %vm8945_vm6 }
 0x443   : > { %3909 = vst.msk [vmem:[#allocation3] sm:$0xff] %vm8934_vm7, %v3814_v50  ;;  %v4624_v55 = vsel %vm8931_vm14, %v8938_v32, 0.0  ;;  %vm8943_vm14 = vnez %v8942_v28  ;;  %vm8947_vm7 = vcmask 294144   ;;  %vm8958_vm9 = vmmov %vm8946_vm8 }
 0x444   : > { %4475 = vrot.lane.b32.xlu1 %v4400_v20, %s5607_s30  ;;  %v3674_v23 = vpop.permute.xlu0 %3673  ;;  %v3986_v35 = vsel %vm8943_vm14, %v3954_v44, 0.0  ;;  %v4626_v15 = vsel %vm8943_vm14, %v4594_v3, 0.0 }
 0x445   : > { %3743 = vst.msk [vmem:[#allocation3 + $0xd0] sm:$0xff] %vm8901_vm0, %v3674_v23  ;;  %vm8948_vm0 = vmmov %vm8947_vm7  ;;  %v5591_v23 = vld [vmem:[#allocation2 + $0xa0] sm:$0xff] }
 0x446   : > { %v4038_v19 = vpop.permute.xlu1 %4037  ;;  %3837 = vrot.lane.b32.xlu0 %v4399_v0, %s5604_s27 }
 0x447   : > { %4133 = vst.msk [vmem:[#allocation3] sm:$0xff] %vm8935_vm2, %v4038_v19  ;;  %v4213_v19 = vsel %vm8852_vm15, %v5591_v23, 0.0  ;;  %vm8966_vm15 = vmmov %vm8946_vm8 }
 0x448   : > { %3839 = vrot.lane.b32.xlu1 %v4400_v20, %s5604_s27  ;;  %v3816_v43 = vpop.permute.xlu0 %3815 }
 0x449   : > { %3910 = vst.msk [vmem:[#allocation3 + $0x8] sm:$0xff] %vm8936_vm12, %v3816_v43  ;;  %vm8949_vm12 = vmmov %vm8937_vm4 }
 0x44a   : > { %v4262_v7 = vpop.permute.xlu1 %4261  ;;  %4697 = vrot.lane.b32.xlu0 %v7452_v61, %s5608_s16  ;;  %vm8954_vm14 = vmmov %vm8949_vm12 }
 0x44b   : > { %4357 = vst.msk [vmem:[#allocation3] sm:$0xff] %vm8937_vm4, %v4262_v7  ;;  %vm8950_vm4 = vmmov %vm8935_vm2  ;;  %v8964_v7 = vld [vmem:[#allocation49_spill] sm:$0xff] }
 0x44c   : > { %4699 = vrot.lane.b32.xlu1 %v4624_v55, %s5608_s16  ;;  %v4040_v14 = vpop.permute.xlu0 %4039 }
 0x44d   : > { %4134 = vst.msk [vmem:[#allocation3 + $0x8] sm:$0xff] %vm8939_vm13, %v4040_v14  ;;  %vm8951_vm13 = vcmask 293888   ;;  %v4405_v14 = vld [vmem:[#allocation2 + $0xa1] sm:$0xff] }
 0x44e   : > { %v4454_v52 = vpop.permute.xlu1 %4453  ;;  %4061 = vrot.lane.b32.xlu0 %v7452_v61, %s5605_s28  ;;  %v4401_v61 = vld [vmem:[#allocation2 + $0x81] sm:$0xff] }
 0x44f   : > { %4549 = vst.msk [vmem:[#allocation3] sm:$0xff] %vm8940_vm11, %v4454_v52  ;;  %vm8952_vm11 = vmmov %vm8944_vm3 }
 0x450   : > { %4285 = vrot.lane.b32.xlu1 %v4209_v47, %s5606_s29  ;;  %v4264_v9 = vpop.permute.xlu0 %4263 }
 0x451   : > { %4358 = vst.msk [vmem:[#allocation3 + $0x8] sm:$0xff] %vm8941_vm5, %v4264_v9  ;;  %vm8953_vm5 = vmmov %vm8951_vm13 }
 0x452   : > { %v4456_v4 = vpop.permute.xlu1 %4455  ;;  %4063 = vrot.lane.b32.xlu0 %v3986_v35, %s5605_s28  ;;  %v4598_v35 = vld [vmem:[#allocation2 + $0xaa] sm:$0xff] }
 0x453   : > { %4550 = vst.msk [vmem:[#allocation3 + $0x8] sm:$0xff] %vm8944_vm3, %v4456_v4  ;;  %vm8956_vm3 = vnez %v8955_v5  ;;  %v4597_v4 = vld [vmem:[#allocation2 + $0xa2] sm:$0xff]  ;;  %v4600_v5 = vld [vmem:[#allocation2 + $0xba] sm:$0xff] }
 0x454   : > { %4477 = vrot.lane.b32.xlu1 %v4401_v61, %s5607_s30  ;;  %v3818_v10 = vpop.permute.xlu0 %3817  ;;  %v3988_v29 = vsel %vm8956_vm3, %v4594_v3, 0.0  ;;  %v4628_v34 = vsel %vm8956_vm3, %v4596_v22, 0.0  ;;  %vm8965_vm3 = vnez %v8964_v7 }
 0x455   : > { %3911 = vst.msk [vmem:[#allocation3 + $0x10] sm:$0xff] %vm8945_vm6, %v3818_v10  ;;  %vm8957_vm6 = vmmov %vm8952_vm11  ;;  %v3990_v32 = vsel %vm8965_vm3, %v4596_v22, 0.0  ;;  %v4630_v10 = vsel %vm8965_vm3, %v4598_v35, 0.0  ;;  %vm8977_vm3 = vnez %v8732_v30 }
 0x456   : > { %v3820_v59 = vpop.permute.xlu1 %3819  ;;  %4287 = vrot.lane.b32.xlu0 %v7267_v18, %s5606_s29  ;;  %v4593_v18 = vld [vmem:[#allocation2 + $0x82] sm:$0xff] }
 0x457   : > { %3912 = vst.msk [vmem:[#allocation3 + $0x18] sm:$0xff] %vm8946_vm8, %v3820_v59 }
 0x458   : > { %4479 = vrot.lane.b32.xlu1 %v4402_v58, %s5607_s30  ;;  %v4678_v13 = vpop.permute.xlu0 %4677 }
 0x459   : > { %4773 = vst.msk [vmem:[#allocation3] sm:$0xff] %vm8947_vm7, %v4678_v13  ;;  %vm8959_vm7 = vmmov %vm8948_vm0  ;;  %v4183_v13 = vld [vmem:[#allocation2 + $0xb0] sm:$0xff] }
 0x45a   : > { %v4680_v27 = vpop.permute.xlu1 %4679  ;;  %3841 = vrot.lane.b32.xlu0 %v4401_v61, %s5604_s27 }
 0x45b   : > { %4774 = vst.msk [vmem:[#allocation3 + $0x8] sm:$0xff] %vm8948_vm0, %v4680_v27 }
 0x45c   : > { %3843 = vrot.lane.b32.xlu1 %v4402_v58, %s5604_s27  ;;  %v4042_v21 = vpop.permute.xlu0 %4041 }
 0x45d   : > { %4135 = vst.msk [vmem:[#allocation3 + $0x10] sm:$0xff] %vm8935_vm2, %v4042_v21 }
 0x45e   : > { %v4266_v11 = vpop.permute.xlu1 %4265  ;;  %4701 = vrot.lane.b32.xlu0 %v4593_v18, %s5608_s16 }
 0x45f   : > { %4359 = vst.msk [vmem:[#allocation3 + $0x10] sm:$0xff] %vm8949_vm12, %v4266_v11  ;;  %v3992_v11 = vsel %vm8977_vm3, %v4598_v35, 0.0 }
 0x460   : > { %4703 = vrot.lane.b32.xlu1 %v4626_v15, %s5608_s16  ;;  %v4044_v16 = vpop.permute.xlu0 %4043  ;;  %v4805_v48 = vld [vmem:[#allocation3] sm:$0xff] }
 0x461   : > { %4136 = vst.msk [vmem:[#allocation3 + $0x18] sm:$0xff] %vm8950_vm4, %v4044_v16  ;;  %5514 = vmatprep.mubr.msk.f32.mxu1 %vm8951_vm13, %v4805_v48  ;;  %vm8960_vm4 = vmmov %vm8935_vm2  ;;  %v4407_v16 = vld [vmem:[#allocation2 + $0xb1] sm:$0xff] }
 0x462   : > { %v4458_v49 = vpop.permute.xlu1 %4457  ;;  %4065 = vrot.lane.b32.xlu0 %v4593_v18, %s5605_s28  ;;  %v4806_v17 = vld [vmem:[#allocation3 + $0x8] sm:$0xff]  ;;  %vm8961_vm13 = vmmov %vm8953_vm5 }
 0x463   : > { %4551 = vst.msk [vmem:[#allocation3 + $0x10] sm:$0xff] %vm8952_vm11, %v4458_v49  ;;  %5515 = vmatmul.mubr.msk.f32.vlgmr.msra.gmra.mxu1 %vm8953_vm5, %v4806_v17  ;;  %vm8962_vm11 = vmmov %vm8957_vm6  ;;  %v4408_v17 = vld [vmem:[#allocation2 + $0xb9] sm:$0xff] }
 0x464   : > { %4289 = vrot.lane.b32.xlu1 %v4211_v45, %s5606_s29  ;;  %v4268_v57 = vpop.permute.xlu0 %4267 }
 0x465   : > { %4360 = vst.msk [vmem:[#allocation3 + $0x18] sm:$0xff] %vm8954_vm14, %v4268_v57  ;;  %vm8963_vm14 = vmmov %vm8949_vm12 }
 0x466   : > { %v4460_v26 = vpop.permute.xlu1 %4459  ;;  %4067 = vrot.lane.b32.xlu0 %v3988_v29, %s5605_s28  ;;  %v4599_v29 = vld [vmem:[#allocation2 + $0xb2] sm:$0xff] }
 0x467   : > { %4552 = vst.msk [vmem:[#allocation3 + $0x18] sm:$0xff] %vm8957_vm6, %v4460_v26 }
 0x468   : > { %4481 = vrot.lane.b32.xlu1 %v4403_v41, %s5607_s30  ;;  %v3822_v2 = vpop.permute.xlu0 %3821 }
 0x469   : > { %3913 = vst.msk [vmem:[#allocation3 + $0x20] sm:$0xff] %vm8946_vm8, %v3822_v2 }
 0x46a   : > { %v3824_v60 = vpop.permute.xlu1 %3823  ;;  %4291 = vrot.lane.b32.xlu0 %v7283_v6, %s5606_s29  ;;  %v4595_v6 = vld [vmem:[#allocation2 + $0x92] sm:$0xff] }
 0x46b   : > { %3914 = vst.msk [vmem:[#allocation3 + $0x28] sm:$0xff] %vm8958_vm9, %v3824_v60  ;;  %vm8967_vm9 = vmmov %vm8948_vm0 }
 0x46c   : > { %4483 = vrot.lane.b32.xlu1 %v4404_v39, %s5607_s30  ;;  %v4682_v33 = vpop.permute.xlu0 %4681 }
 0x46d   : > { %4775 = vst.msk [vmem:[#allocation3 + $0x10] sm:$0xff] %vm8959_vm7, %v4682_v33  ;;  %vm8968_vm7 = vmmov %vm8948_vm0 }
 0x46e   : > { %v4684_v31 = vpop.permute.xlu1 %4683  ;;  %3845 = vrot.lane.b32.xlu0 %v4403_v41, %s5604_s27  ;;  %v4632_v41 = vsel %vm8977_vm3, %v4600_v5, 0.0  ;;  %vm8985_vm3 = vnez %v8737_v12 }
 0x46f   : > { %4776 = vst.msk [vmem:[#allocation3 + $0x18] sm:$0xff] %vm8948_vm0, %v4684_v31  ;;  %vm8969_vm0 = vmmov %vm8935_vm2  ;;  %v3994_v22 = vsel %vm8985_vm3, %v4600_v5, 0.0 }
 0x470   : > { %3847 = vrot.lane.b32.xlu1 %v4404_v39, %s5604_s27  ;;  %v4046_v8 = vpop.permute.xlu0 %4045  ;;  %v4185_v39 = vld [vmem:[#allocation2 + $0xc0] sm:$0xff] }
 0x471   : > { %4137 = vst.msk [vmem:[#allocation3 + $0x20] sm:$0xff] %vm8935_vm2, %v4046_v8  ;;  %vm8970_vm2 = vmmov %vm8949_vm12 }
 0x472   : > { %v4270_v1 = vpop.permute.xlu1 %4269  ;;  %4705 = vrot.lane.b32.xlu0 %v4595_v6, %s5608_s16 }
 0x473   : > { %4361 = vst.msk [vmem:[#allocation3 + $0x20] sm:$0xff] %vm8949_vm12, %v4270_v1  ;;  %vm8971_vm12 = vmmov %vm8969_vm0  ;;  %v4409_v1 = vld [vmem:[#allocation2 + $0xc1] sm:$0xff] }
 0x474   : > { %4707 = vrot.lane.b32.xlu1 %v4628_v34, %s5608_s16  ;;  %v4048_v0 = vpop.permute.xlu0 %4047  ;;  %v4807_v36 = vld [vmem:[#allocation3 + $0x10] sm:$0xff] }
 0x475   : > { %4138 = vst.msk [vmem:[#allocation3 + $0x28] sm:$0xff] %vm8960_vm4, %v4048_v0  ;;  %5517 = vmatprep.mubr.msk.f32.mxu1 %vm8961_vm13, %v4807_v36  ;;  %vm8972_vm4 = vmmov %vm8953_vm5  ;;  %v4410_v36 = vld [vmem:[#allocation2 + $0xc9] sm:$0xff] }
 0x476   : > { %v4462_v50 = vpop.permute.xlu1 %4461  ;;  %4069 = vrot.lane.b32.xlu0 %v4595_v6, %s5605_s28  ;;  %v4808_v20 = vld [vmem:[#allocation3 + $0x18] sm:$0xff]  ;;  %vm8973_vm13 = vmmov %vm8957_vm6 }
 0x477   : > { %4553 = vst.msk [vmem:[#allocation3 + $0x20] sm:$0xff] %vm8962_vm11, %v4462_v50  ;;  %5518 = vmatmul.mubr.msk.f32.gmra.mxu1 %vm8953_vm5, %v4808_v20  ;;  %vm8974_vm11 = vmmov %vm8972_vm4  ;;  %vm8975_vm5 = vnez %v8572_v42  ;;  %v4184_v42 = vld [vmem:[#allocation2 + $0xb8] sm:$0xff] }
 0x478   : > { %4293 = vrot.lane.b32.xlu1 %v4213_v19, %s5606_s29  ;;  %v4272_v43 = vpop.permute.xlu0 %4271  ;;  %v4215_v3 = vsel %vm8975_vm5, %v4183_v13, 0.0  ;;  %vm8983_vm5 = vnez %v8855_v63  ;;  %v4186_v63 = vld [vmem:[#allocation2 + $0xc8] sm:$0xff]  ;;  %v4604_v13 = vld [vmem:[#allocation2 + $0xda] sm:$0xff] }
 0x479   : > { %4362 = vst.msk [vmem:[#allocation3 + $0x28] sm:$0xff] %vm8963_vm14, %v4272_v43  ;;  %vm8976_vm14 = vmmov %vm8970_vm2  ;;  %v4217_v30 = vsel %vm8983_vm5, %v4185_v39, 0.0  ;;  %v4602_v19 = vld [vmem:[#allocation2 + $0xca] sm:$0xff]  ;;  %v4601_v43 = vld [vmem:[#allocation2 + $0xc2] sm:$0xff]  ;;  %vm8991_vm5 = vnez %v8858_v51 }
 0x47a   : > { %v4464_v55 = vpop.permute.xlu1 %4463  ;;  %4071 = vrot.lane.b32.xlu0 %v3990_v32, %s5605_s28  ;;  %v4634_v32 = vsel %vm8985_vm3, %v4602_v19, 0.0  ;;  %vm8993_vm3 = vnez %v8741_v56  ;;  %v4188_v51 = vld [vmem:[#allocation2 + $0xd8] sm:$0xff] }
 0x47b   : > { %4554 = vst.msk [vmem:[#allocation3 + $0x28] sm:$0xff] %vm8957_vm6, %v4464_v55 }
 0x47c   : > { %4485 = vrot.lane.b32.xlu1 %v4405_v14, %s5607_s30  ;;  %v3826_v52 = vpop.permute.xlu0 %3825 }
 0x47d   : > { %3915 = vst.msk [vmem:[#allocation3 + $0x30] sm:$0xff] %vm8946_vm8, %v3826_v52  ;;  %v4187_v52 = vld [vmem:[#allocation2 + $0xd0] sm:$0xff] }
 0x47e   : > { %v3828_v44 = vpop.permute.xlu1 %3827  ;;  %4295 = vrot.lane.b32.xlu0 %v4182_v25, %s5606_s29  ;;  %v4219_v12 = vsel %vm8991_vm5, %v4187_v52, 0.0  ;;  %vm8999_vm5 = vmmov %vm8970_vm2 }
 0x47f   : > { %3916 = vst.msk [vmem:[#allocation3 + $0x38] sm:$0xff] %vm8966_vm15, %v3828_v44  ;;  %vm8978_vm15 = vmmov %vm8946_vm8 }
 0x480   : > { %4487 = vrot.lane.b32.xlu1 %v4406_v54, %s5607_s30  ;;  %v4686_v47 = vpop.permute.xlu0 %4685 }
 0x481   : > { %4777 = vst.msk [vmem:[#allocation3 + $0x20] sm:$0xff] %vm8967_vm9, %v4686_v47  ;;  %vm8979_vm9 = vmmov %vm8968_vm7  ;;  %v3996_v47 = vsel %vm8993_vm3, %v4602_v19, 0.0 }
 0x482   : > { %v4688_v9 = vpop.permute.xlu1 %4687  ;;  %3849 = vrot.lane.b32.xlu0 %v4405_v14, %s5604_s27 }
 0x483   : > { %4778 = vst.msk [vmem:[#allocation3 + $0x28] sm:$0xff] %vm8968_vm7, %v4688_v9 }
 0x484   : > { %3851 = vrot.lane.b32.xlu1 %v4406_v54, %s5604_s27  ;;  %v4050_v28 = vpop.permute.xlu0 %4049 }
 0x485   : > { %4139 = vst.msk [vmem:[#allocation3 + $0x30] sm:$0xff] %vm8969_vm0, %v4050_v28  ;;  %v4411_v28 = vld [vmem:[#allocation2 + $0xd1] sm:$0xff] }
 0x486   : > { %v4274_v61 = vpop.permute.xlu1 %4273  ;;  %4709 = vrot.lane.b32.xlu0 %v4597_v4, %s5608_s16 }
 0x487   : > { %4363 = vst.msk [vmem:[#allocation3 + $0x30] sm:$0xff] %vm8970_vm2, %v4274_v61  ;;  %v4412_v61 = vld [vmem:[#allocation2 + $0xd9] sm:$0xff] }
 0x488   : > { %4711 = vrot.lane.b32.xlu1 %v4630_v10, %s5608_s16  ;;  %v4052_v59 = vpop.permute.xlu0 %4051  ;;  %v4809_v58 = vld [vmem:[#allocation3 + $0x20] sm:$0xff] }
 0x489   : > { %4140 = vst.msk [vmem:[#allocation3 + $0x38] sm:$0xff] %vm8971_vm12, %v4052_v59  ;;  %5520 = vmatprep.mubr.msk.f32.mxu1 %vm8972_vm4, %v4809_v58  ;;  %vm8980_vm12 = vmmov %vm8969_vm0 }
 0x48a   : > { %v4466_v27 = vpop.permute.xlu1 %4465  ;;  %4073 = vrot.lane.b32.xlu0 %v4597_v4, %s5605_s28  ;;  %v4810_v21 = vld [vmem:[#allocation3 + $0x28] sm:$0xff] }
 0x48b   : > { %4555 = vst.msk [vmem:[#allocation3 + $0x30] sm:$0xff] %vm8973_vm13, %v4466_v27  ;;  %5521 = vmatmul.mubr.msk.f32.gmra.mxu1 %vm8974_vm11, %v4810_v21  ;;  %vm8981_vm13 = vmmov %vm8957_vm6  ;;  %v4603_v27 = vld [vmem:[#allocation2 + $0xd2] sm:$0xff] }
 0x48c   : > { %4297 = vrot.lane.b32.xlu1 %v4215_v3, %s5606_s29  ;;  %v4276_v18 = vpop.permute.xlu0 %4275  ;;  %vm8982_vm11 = vmmov %vm8972_vm4  ;;  %v4636_v3 = vsel %vm8993_vm3, %v4604_v13, 0.0 }
 0x48d   : > { %4364 = vst.msk [vmem:[#allocation3 + $0x38] sm:$0xff] %vm8976_vm14, %v4276_v18  ;;  %vm8984_vm14 = vmmov %vm8970_vm2 }
 0x48e   : > { %v4468_v15 = vpop.permute.xlu1 %4467  ;;  %4075 = vrot.lane.b32.xlu0 %v3992_v11, %s5605_s28  ;;  %vm9001_vm3 = vmmov %vm8957_vm6 }
 0x48f   : > { %4556 = vst.msk [vmem:[#allocation3 + $0x38] sm:$0xff] %vm8957_vm6, %v4468_v15  ;;  %v4189_v15 = vld [vmem:[#allocation2 + $0xe0] sm:$0xff] }
 0x490   : > { %4489 = vrot.lane.b32.xlu1 %v4407_v16, %s5607_s30  ;;  %v3830_v48 = vpop.permute.xlu0 %3829  ;;  %v4221_v56 = vsel %vm8863_vm10, %v4189_v15, 0.0 }
 0x491   : > { %3917 = vst.msk [vmem:[#allocation3 + $0x40] sm:$0xff] %vm8946_vm8, %v3830_v48 }
 0x492   : > { %v3832_v49 = vpop.permute.xlu1 %3831  ;;  %4299 = vrot.lane.b32.xlu0 %v4184_v42, %s5606_s29 }
 0x493   : > { %3918 = vst.msk [vmem:[#allocation3 + $0x48] sm:$0xff] %vm8978_vm15, %v3832_v49  ;;  %vm8986_vm15 = vmmov %vm8946_vm8 }
 0x494   : > { %4491 = vrot.lane.b32.xlu1 %v4408_v17, %s5607_s30  ;;  %v4690_v40 = vpop.permute.xlu0 %4689 }
 0x495   : > { %4779 = vst.msk [vmem:[#allocation3 + $0x30] sm:$0xff] %vm8979_vm9, %v4690_v40  ;;  %vm8987_vm9 = vmmov %vm8968_vm7  ;;  %v4413_v40 = vld [vmem:[#allocation2 + $0xe1] sm:$0xff] }
 0x496   : > { %v4692_v45 = vpop.permute.xlu1 %4691  ;;  %3853 = vrot.lane.b32.xlu0 %v4407_v16, %s5604_s27 }
 0x497   : > { %4780 = vst.msk [vmem:[#allocation3 + $0x38] sm:$0xff] %vm8968_vm7, %v4692_v45 }
 0x498   : > { %3855 = vrot.lane.b32.xlu1 %v4408_v17, %s5604_s27  ;;  %v4054_v57 = vpop.permute.xlu0 %4053 }
 0x499   : > { %4141 = vst.msk [vmem:[#allocation3 + $0x40] sm:$0xff] %vm8969_vm0, %v4054_v57 }
 0x49a   : > { %v4278_v26 = vpop.permute.xlu1 %4277  ;;  %4713 = vrot.lane.b32.xlu0 %v4599_v29, %s5608_s16 }
 0x49b   : > { %4365 = vst.msk [vmem:[#allocation3 + $0x40] sm:$0xff] %vm8970_vm2, %v4278_v26  ;;  %v4605_v26 = vld [vmem:[#allocation2 + $0xe2] sm:$0xff] }
 0x49c   : > { %4715 = vrot.lane.b32.xlu1 %v4632_v41, %s5608_s16  ;;  %v4056_v2 = vpop.permute.xlu0 %4055  ;;  %v4811_v60 = vld [vmem:[#allocation3 + $0x30] sm:$0xff] }
 0x49d   : > { %4142 = vst.msk [vmem:[#allocation3 + $0x48] sm:$0xff] %vm8980_vm12, %v4056_v2  ;;  %5523 = vmatprep.mubr.msk.f32.mxu1 %vm8972_vm4, %v4811_v60  ;;  %vm8988_vm12 = vmmov %vm8969_vm0  ;;  %v4414_v2 = vld [vmem:[#allocation2 + $0xe9] sm:$0xff] }
 0x49e   : > { %v4470_v33 = vpop.permute.xlu1 %4469  ;;  %4077 = vrot.lane.b32.xlu0 %v4599_v29, %s5605_s28  ;;  %v4812_v31 = vld [vmem:[#allocation3 + $0x38] sm:$0xff] }
 0x49f   : > { %4557 = vst.msk [vmem:[#allocation3 + $0x40] sm:$0xff] %vm8981_vm13, %v4470_v33  ;;  %5524 = vmatmul.mubr.msk.f32.gmra.mxu1 %vm8982_vm11, %v4812_v31  ;;  %vm8989_vm13 = vmmov %vm8957_vm6  ;;  %v3968_v31 = vld [vmem:[#allocation2 + $0xea] sm:$0xff] }
 0x4a0   : > { %4301 = vrot.lane.b32.xlu1 %v4217_v30, %s5606_s29  ;;  %v4280_v8 = vpop.permute.xlu0 %4279  ;;  %vm8990_vm11 = vmmov %vm8972_vm4 }
 0x4a1   : > { %4366 = vst.msk [vmem:[#allocation3 + $0x48] sm:$0xff] %vm8984_vm14, %v4280_v8  ;;  %vm8992_vm14 = vmmov %vm8970_vm2 }
 0x4a2   : > { %v4472_v6 = vpop.permute.xlu1 %4471  ;;  %4079 = vrot.lane.b32.xlu0 %v3994_v22, %s5605_s28 }
 0x4a3   : > { %4558 = vst.msk [vmem:[#allocation3 + $0x48] sm:$0xff] %vm8957_vm6, %v4472_v6 }
 0x4a4   : > { %4493 = vrot.lane.b32.xlu1 %v4409_v1, %s5607_s30  ;;  %v3834_v34 = vpop.permute.xlu0 %3833 }
 0x4a5   : > { %3919 = vst.msk [vmem:[#allocation3 + $0x50] sm:$0xff] %vm8946_vm8, %v3834_v34 }
 0x4a6   : > { %v3836_v0 = vpop.permute.xlu1 %3835  ;;  %4303 = vrot.lane.b32.xlu0 %v4186_v63, %s5606_s29 }
 0x4a7   : > { %3920 = vst.msk [vmem:[#allocation3 + $0x58] sm:$0xff] %vm8986_vm15, %v3836_v0  ;;  %vm8994_vm15 = vmmov %vm8946_vm8  ;;  %v9014_v0 = vld [vmem:[#allocation40_spill] sm:$0xff] }
 0x4a8   : > { %4495 = vrot.lane.b32.xlu1 %v4410_v36, %s5607_s30  ;;  %v4694_v50 = vpop.permute.xlu0 %4693 }
 0x4a9   : > { %4781 = vst.msk [vmem:[#allocation3 + $0x40] sm:$0xff] %vm8987_vm9, %v4694_v50  ;;  %vm8995_vm9 = vmmov %vm8968_vm7 }
 0x4aa   : > { %v4696_v20 = vpop.permute.xlu1 %4695  ;;  %3857 = vrot.lane.b32.xlu0 %v4409_v1, %s5604_s27  ;;  %v3553_v1 = vld [vmem:[#allocation2 + $0xf0] sm:$0xff] }
 0x4ab   : > { %4782 = vst.msk [vmem:[#allocation3 + $0x48] sm:$0xff] %vm8968_vm7, %v4696_v20  ;;  %v4223_v20 = vsel %vm8868_vm1, %v3553_v1, 0.0  ;;  %vm9018_vm1 = vmmov %vm8969_vm0 }
 0x4ac   : > { %3859 = vrot.lane.b32.xlu1 %v4410_v36, %s5604_s27  ;;  %v4058_v23 = vpop.permute.xlu0 %4057 }
 0x4ad   : > { %4143 = vst.msk [vmem:[#allocation3 + $0x50] sm:$0xff] %vm8969_vm0, %v4058_v23 }
 0x4ae   : > { %v4282_v7 = vpop.permute.xlu1 %4281  ;;  %4717 = vrot.lane.b32.xlu0 %v4601_v43, %s5608_s16 }
 0x4af   : > { %4367 = vst.msk [vmem:[#allocation3 + $0x50] sm:$0xff] %vm8970_vm2, %v4282_v7 }
 0x4b0   : > { %4719 = vrot.lane.b32.xlu1 %v4634_v32, %s5608_s16  ;;  %v4060_v55 = vpop.permute.xlu0 %4059  ;;  %v4813_v14 = vld [vmem:[#allocation3 + $0x40] sm:$0xff] }
 0x4b1   : > { %4144 = vst.msk [vmem:[#allocation3 + $0x58] sm:$0xff] %vm8988_vm12, %v4060_v55  ;;  %5526 = vmatprep.mubr.msk.f32.mxu1 %vm8972_vm4, %v4813_v14  ;;  %vm8996_vm12 = vmmov %vm8969_vm0  ;;  %v4607_v55 = vld [vmem:[#allocation2 + $0xf2] sm:$0xff] }
 0x4b2   : > { %v4474_v25 = vpop.permute.xlu1 %4473  ;;  %4081 = vrot.lane.b32.xlu0 %v4601_v43, %s5605_s28  ;;  %v4814_v44 = vld [vmem:[#allocation3 + $0x48] sm:$0xff]  ;;  %v4192_v43 = vld [vmem:[#allocation2 + $0xf8] sm:$0xff] }
 0x4b3   : > { %4559 = vst.msk [vmem:[#allocation3 + $0x50] sm:$0xff] %vm8989_vm13, %v4474_v25  ;;  %5527 = vmatmul.mubr.msk.f32.gmra.mxu1 %vm8990_vm11, %v4814_v44  ;;  %vm8997_vm13 = vmmov %vm8957_vm6  ;;  %v4416_v25 = vld [vmem:[#allocation2 + $0xf9] sm:$0xff] }
 0x4b4   : > { %4305 = vrot.lane.b32.xlu1 %v4219_v12, %s5606_s29  ;;  %v4284_v54 = vpop.permute.xlu0 %4283  ;;  %vm8998_vm11 = vmmov %vm8972_vm4 }
 0x4b5   : > { %4368 = vst.msk [vmem:[#allocation3 + $0x58] sm:$0xff] %vm8992_vm14, %v4284_v54  ;;  %vm9000_vm14 = vnez %v8745_v24  ;;  %v4415_v24 = vld [vmem:[#allocation2 + $0xf1] sm:$0xff] }
 0x4b6   : > { %v4476_v9 = vpop.permute.xlu1 %4475  ;;  %4083 = vrot.lane.b32.xlu0 %v3996_v47, %s5605_s28  ;;  %v3998_v49 = vsel %vm9000_vm14, %v4604_v13, 0.0  ;;  %v4638_v34 = vsel %vm9000_vm14, %v3968_v31, 0.0  ;;  %v3970_v47 = vld [vmem:[#allocation2 + $0xfa] sm:$0xff] }
 0x4b7   : > { %4560 = vst.msk [vmem:[#allocation3 + $0x58] sm:$0xff] %vm8957_vm6, %v4476_v9  ;;  %vm9002_vm6 = vmmov %vm8946_vm8 }
 0x4b8   : > { %4497 = vrot.lane.b32.xlu1 %v4411_v28, %s5607_s30  ;;  %v3838_v35 = vpop.permute.xlu0 %3837  ;;  %vm9003_vm10 = vmmov %vm9002_vm6 }
 0x4b9   : > { %3921 = vst.msk [vmem:[#allocation3 + $0x60] sm:$0xff] %vm8946_vm8, %v3838_v35  ;;  %vm9004_vm8 = vmmov %vm8968_vm7 }
 0x4ba   : > { %v3840_v4 = vpop.permute.xlu1 %3839  ;;  %4307 = vrot.lane.b32.xlu0 %v4188_v51, %s5606_s29  ;;  %vm9016_vm14 = vmmov %vm9002_vm6  ;;  %v3555_v51 = vld [vmem:[#allocation2 + $0x100] sm:$0xff] }
 0x4bb   : > { %3922 = vst.msk [vmem:[#allocation3 + $0x68] sm:$0xff] %vm8994_vm15, %v3840_v4  ;;  %vm9005_vm15 = vmmov %vm8968_vm7 }
 0x4bc   : > { %4499 = vrot.lane.b32.xlu1 %v4412_v61, %s5607_s30  ;;  %v4698_v10 = vpop.permute.xlu0 %4697 }
 0x4bd   : > { %4783 = vst.msk [vmem:[#allocation3 + $0x50] sm:$0xff] %vm8995_vm9, %v4698_v10  ;;  %vm9006_vm9 = vmmov %vm8969_vm0  ;;  %v9028_v10 = vld [vmem:[#allocation41_spill] sm:$0xff] }
 0x4be   : > { %v4700_v59 = vpop.permute.xlu1 %4699  ;;  %3861 = vrot.lane.b32.xlu0 %v4411_v28, %s5604_s27 }
 0x4bf   : > { %4784 = vst.msk [vmem:[#allocation3 + $0x58] sm:$0xff] %vm8968_vm7, %v4700_v59  ;;  %vm9007_vm7 = vmmov %vm8970_vm2 }
 0x4c0   : > { %3863 = vrot.lane.b32.xlu1 %v4412_v61, %s5604_s27  ;;  %v4062_v58 = vpop.permute.xlu0 %4061 }
 0x4c1   : > { %4145 = vst.msk [vmem:[#allocation3 + $0x60] sm:$0xff] %vm8969_vm0, %v4062_v58 }
 0x4c2   : > { %v4286_v21 = vpop.permute.xlu1 %4285  ;;  %4721 = vrot.lane.b32.xlu0 %v4603_v27, %s5608_s16 }
 0x4c3   : > { %4369 = vst.msk [vmem:[#allocation3 + $0x60] sm:$0xff] %vm8970_vm2, %v4286_v21  ;;  %vm9008_vm2 = vmmov %vm8972_vm4 }
 0x4c4   : > { %4723 = vrot.lane.b32.xlu1 %v4636_v3, %s5608_s16  ;;  %v4064_v18 = vpop.permute.xlu0 %4063  ;;  %v4815_v11 = vld [vmem:[#allocation3 + $0x50] sm:$0xff]  ;;  %v4194_v3 = vld [vmem:[#allocation2 + $0x108] sm:$0xff] }
 0x4c5   : > { %4146 = vst.msk [vmem:[#allocation3 + $0x68] sm:$0xff] %vm8996_vm12, %v4064_v18  ;;  %5529 = vmatprep.mubr.msk.f32.mxu1 %vm8972_vm4, %v4815_v11  ;;  %vm9009_vm12 = vmmov %vm9001_vm3 }
 0x4c6   : > { %v4478_v16 = vpop.permute.xlu1 %4477  ;;  %4085 = vrot.lane.b32.xlu0 %v4603_v27, %s5605_s28  ;;  %v4816_v48 = vld [vmem:[#allocation3 + $0x58] sm:$0xff]  ;;  %vm9010_vm4 = vmmov %vm9008_vm2 }
 0x4c7   : > { %4561 = vst.msk [vmem:[#allocation3 + $0x60] sm:$0xff] %vm8997_vm13, %v4478_v16  ;;  %5530 = vmatmul.mubr.msk.f32.gmra.mxu1 %vm8998_vm11, %v4816_v48  ;;  %vm9011_vm13 = vnez %v8747_v62  ;;  %vm9012_vm11 = vmmov %vm8999_vm5  ;;  %v4417_v62 = vld [vmem:[#allocation2 + $0x101] sm:$0xff] }
 0x4c8   : > { %4309 = vrot.lane.b32.xlu1 %v4221_v56, %s5606_s29  ;;  %v4288_v42 = vpop.permute.xlu0 %4287  ;;  %v4000_v22 = vsel %vm9011_vm13, %v3968_v31, 0.0  ;;  %v4640_v4 = vsel %vm9011_vm13, %v3970_v47, 0.0  ;;  %vm9031_vm13 = vmmov %vm9004_vm8  ;;  %v4609_v56 = vld [vmem:[#allocation2 + $0x102] sm:$0xff] }
 0x4c9   : > { %4370 = vst.msk [vmem:[#allocation3 + $0x68] sm:$0xff] %vm8999_vm5, %v4288_v42  ;;  %vm9013_vm5 = vmmov %vm9001_vm3 }
 0x4ca   : > { %v4480_v17 = vpop.permute.xlu1 %4479  ;;  %4087 = vrot.lane.b32.xlu0 %v3998_v49, %s5605_s28  ;;  %v4418_v49 = vld [vmem:[#allocation2 + $0x109] sm:$0xff] }
 0x4cb   : > { %4562 = vst.msk [vmem:[#allocation3 + $0x68] sm:$0xff] %vm9001_vm3, %v4480_v17  ;;  %vm9015_vm3 = vnez %v9014_v0 }
 0x4cc   : > { %4501 = vrot.lane.b32.xlu1 %v4413_v40, %s5607_s30  ;;  %v3842_v45 = vpop.permute.xlu0 %3841  ;;  %v3585_v36 = vsel %vm9015_vm3, %v3553_v1, 0.0  ;;  %v4225_v13 = vsel %vm9015_vm3, %v3555_v51, 0.0 }
 0x4cd   : > { %3923 = vst.msk [vmem:[#allocation3 + $0x70] sm:$0xff] %vm9002_vm6, %v3842_v45  ;;  %v3972_v45 = vld [vmem:[#allocation2 + $0x10a] sm:$0xff] }
 0x4ce   : > { %v3844_v57 = vpop.permute.xlu1 %3843  ;;  %4311 = vrot.lane.b32.xlu0 %v4190_v46, %s5606_s29 }
 0x4cf   : > { %3924 = vst.msk [vmem:[#allocation3 + $0x78] sm:$0xff] %vm9003_vm10, %v3844_v57  ;;  %vm9017_vm10 = vmmov %vm9004_vm8 }
 0x4d0   : > { %3865 = vrot.lane.b32.xlu1 %v4413_v40, %s5604_s27  ;;  %v4702_v5 = vpop.permute.xlu0 %4701 }
 0x4d1   : > { %4785 = vst.msk [vmem:[#allocation3 + $0x60] sm:$0xff] %vm9004_vm8, %v4702_v5 }
 0x4d2   : > { %v4704_v29 = vpop.permute.xlu1 %4703  ;;  %3675 = vrot.lane.b32.xlu0 %v4190_v46, %s5603_s26 }
 0x4d3   : > { %4786 = vst.msk [vmem:[#allocation3 + $0x68] sm:$0xff] %vm9005_vm15, %v4704_v29  ;;  %vm9019_vm15 = vmmov %vm9007_vm7 }
 0x4d4   : > { %4725 = vrot.lane.b32.xlu1 %v4605_v26, %s5608_s16  ;;  %v4066_v41 = vpop.permute.xlu0 %4065 }
 0x4d5   : > { %4147 = vst.msk [vmem:[#allocation3 + $0x70] sm:$0xff] %vm9006_vm9, %v4066_v41  ;;  %vm9020_vm9 = vmmov %vm8969_vm0 }
 0x4d6   : > { %v4290_v60 = vpop.permute.xlu1 %4289  ;;  %4503 = vrot.lane.b32.xlu0 %v4414_v2, %s5607_s30 }
 0x4d7   : > { %4371 = vst.msk [vmem:[#allocation3 + $0x70] sm:$0xff] %vm9007_vm7, %v4290_v60  ;;  %vm9021_vm7 = vmmov %vm9008_vm2 }
 0x4d8   : > { %4089 = vrot.lane.b32.xlu1 %v4605_v26, %s5605_s28  ;;  %v4068_v39 = vpop.permute.xlu0 %4067  ;;  %v4817_v33 = vld [vmem:[#allocation3 + $0x60] sm:$0xff]  ;;  %v4196_v26 = vld [vmem:[#allocation2 + $0x118] sm:$0xff] }
 0x4d9   : > { %4148 = vst.msk [vmem:[#allocation3 + $0x78] sm:$0xff] %vm8969_vm0, %v4068_v39  ;;  %5532 = vmatprep.mubr.msk.f32.mxu1 %vm9008_vm2, %v4817_v33  ;;  %vm9022_vm0 = vmmov %vm9013_vm5  ;;  %v4420_v33 = vld [vmem:[#allocation2 + $0x119] sm:$0xff] }
 0x4da   : > { %v4482_v30 = vpop.permute.xlu1 %4481  ;;  %3867 = vrot.lane.b32.xlu0 %v4414_v2, %s5604_s27  ;;  %v4818_v8 = vld [vmem:[#allocation3 + $0x68] sm:$0xff] }
 0x4db   : > { %4563 = vst.msk [vmem:[#allocation3 + $0x70] sm:$0xff] %vm9009_vm12, %v4482_v30  ;;  %5533 = vmatmul.mubr.msk.f32.gmra.mxu1 %vm9010_vm4, %v4818_v8  ;;  %vm9023_vm12 = vmmov %vm9012_vm11  ;;  %v4195_v2 = vld [vmem:[#allocation2 + $0x110] sm:$0xff] }
 0x4dc   : > { %4091 = vrot.lane.b32.xlu1 %v4000_v22, %s5605_s28  ;;  %v4292_v6 = vpop.permute.xlu0 %4291  ;;  %vm9024_vm4 = vmmov %vm9022_vm0  ;;  %v4419_v30 = vld [vmem:[#allocation2 + $0x111] sm:$0xff] }
 0x4dd   : > { %4372 = vst.msk [vmem:[#allocation3 + $0x78] sm:$0xff] %vm9012_vm11, %v4292_v6  ;;  %vm9025_vm11 = vnez %v8748_v53  ;;  %v4612_v53 = vld [vmem:[#allocation2 + $0x11a] sm:$0xff] }
 0x4de   : > { %v4484_v63 = vpop.permute.xlu1 %4483  ;;  %4727 = vrot.lane.b32.xlu0 %v4638_v34, %s5608_s16  ;;  %v4002_v28 = vsel %vm9025_vm11, %v3970_v47, 0.0  ;;  %v4642_v29 = vsel %vm9025_vm11, %v3972_v45, 0.0 }
 0x4df   : > { %4564 = vst.msk [vmem:[#allocation3 + $0x78] sm:$0xff] %vm9013_vm5, %v4484_v63  ;;  %vm9026_vm5 = vmmov %vm9002_vm6  ;;  %v4611_v63 = vld [vmem:[#allocation2 + $0x112] sm:$0xff] }
 0x4e0   : > { %3677 = vrot.lane.b32.xlu1 %v3585_v36, %s5603_s26  ;;  %v3846_v50 = vpop.permute.xlu0 %3845 }
 0x4e1   : > { %3925 = vst.msk [vmem:[#allocation3 + $0x80] sm:$0xff] %vm9002_vm6, %v3846_v50  ;;  %vm9027_vm6 = vmmov %vm9026_vm5 }
 0x4e2   : > { %v3848_v23 = vpop.permute.xlu1 %3847  ;;  %4313 = vrot.lane.b32.xlu0 %v4223_v20, %s5606_s29 }
 0x4e3   : > { %3926 = vst.msk [vmem:[#allocation3 + $0x88] sm:$0xff] %vm9016_vm14, %v3848_v23  ;;  %vm9029_vm14 = vnez %v9028_v10  ;;  %v8120_v23 = vld [vmem:[%s8330_s4] ss:$0 sm:$0xff] }
 0x4e4   : > { %4505 = vrot.lane.b32.xlu1 %v4415_v24, %s5607_s30  ;;  %v4706_v19 = vpop.permute.xlu0 %4705  ;;  %v3587_v59 = vsel %vm9029_vm14, %v3555_v51, 0.0  ;;  %v4227_v39 = vsel %vm9029_vm14, %v4195_v2, 0.0  ;;  %v9089_v2 = vld [vmem:[#allocation9_spill] sm:$0xff] }
 0x4e5   : > { %4787 = vst.msk [vmem:[#allocation3 + $0x70] sm:$0xff] %vm9017_vm10, %v4706_v19  ;;  %vm9030_vm10 = vmmov %vm9004_vm8 }
 0x4e6   : > { %v4708_v7 = vpop.permute.xlu1 %4707  ;;  %4315 = vrot.lane.b32.xlu0 %v4192_v43, %s5606_s29 }
 0x4e7   : > { %4788 = vst.msk [vmem:[#allocation3 + $0x78] sm:$0xff] %vm9004_vm8, %v4708_v7  ;;  %vm9032_vm8 = vmmov %vm9018_vm1 }
 0x4e8   : > { %3869 = vrot.lane.b32.xlu1 %v4415_v24, %s5604_s27  ;;  %v4070_v38 = vpop.permute.xlu0 %4069  ;;  %vm9034_vm3 = vmmov %vm9032_vm8 }
 0x4e9   : > { %4149 = vst.msk [vmem:[#allocation3 + $0x80] sm:$0xff] %vm9018_vm1, %v4070_v38  ;;  %vm9033_vm1 = vmmov %vm9023_vm12 }
 0x4ea   : > { %v4294_v32 = vpop.permute.xlu1 %4293  ;;  %3679 = vrot.lane.b32.xlu0 %v4192_v43, %s5603_s26 }
 0x4eb   : > { %4373 = vst.msk [vmem:[#allocation3 + $0x80] sm:$0xff] %vm9019_vm15, %v4294_v32  ;;  %vm9035_vm15 = vmmov %vm9008_vm2  ;;  %v9058_v32 = vld [vmem:[#allocation5_spill] sm:$0xff] }
 0x4ec   : > { %4729 = vrot.lane.b32.xlu1 %v4607_v55, %s5608_s16  ;;  %v4072_v14 = vpop.permute.xlu0 %4071  ;;  %v4819_v52 = vld [vmem:[#allocation3 + $0x70] sm:$0xff] }
 0x4ed   : > { %4150 = vst.msk [vmem:[#allocation3 + $0x88] sm:$0xff] %vm9020_vm9, %v4072_v14  ;;  %5535 = vmatprep.mubr.msk.f32.mxu1 %vm9021_vm7, %v4819_v52  ;;  %vm9036_vm9 = vmmov %vm9022_vm0 }
 0x4ee   : > { %v4486_v44 = vpop.permute.xlu1 %4485  ;;  %4507 = vrot.lane.b32.xlu0 %v4416_v25, %s5607_s30  ;;  %v4820_v12 = vld [vmem:[#allocation3 + $0x78] sm:$0xff]  ;;  %vm9037_vm7 = vmmov %vm9008_vm2 }
 0x4ef   : > { %4565 = vst.msk [vmem:[#allocation3 + $0x80] sm:$0xff] %vm9022_vm0, %v4486_v44  ;;  %5536 = vmatmul.mubr.msk.f32.gmra.mxu1 %vm9008_vm2, %v4820_v12  ;;  %vm9038_vm0 = vmmov %vm9033_vm1 }
 0x4f0   : > { %4093 = vrot.lane.b32.xlu1 %v4607_v55, %s5605_s28  ;;  %v4296_v54 = vpop.permute.xlu0 %4295  ;;  %vm9039_vm2 = vmmov %vm9024_vm4 }
 0x4f1   : > { %4374 = vst.msk [vmem:[#allocation3 + $0x88] sm:$0xff] %vm9023_vm12, %v4296_v54  ;;  %vm9040_vm12 = vmmov %vm9026_vm5 }
 0x4f2   : > { %v4488_v9 = vpop.permute.xlu1 %4487  ;;  %3871 = vrot.lane.b32.xlu0 %v4416_v25, %s5604_s27  ;;  %vm9046_vm11 = vmmov %vm9038_vm0  ;;  %v9061_v25 = vld [vmem:[#allocation4_spill] sm:$0xff] }
 0x4f3   : > { %4566 = vst.msk [vmem:[#allocation3 + $0x88] sm:$0xff] %vm9024_vm4, %v4488_v9  ;;  %vm9041_vm4 = vmmov %vm9026_vm5 }
 0x4f4   : > { %4095 = vrot.lane.b32.xlu1 %v4002_v28, %s5605_s28  ;;  %v3850_v35 = vpop.permute.xlu0 %3849  ;;  %vm9049_vm14 = vmmov %vm9039_vm2 }
 0x4f5   : > { %3927 = vst.msk [vmem:[#allocation3 + $0x90] sm:$0xff] %vm9026_vm5, %v3850_v35  ;;  %vm9042_vm5 = vnez %v8749_v37 }
 0x4f6   : > { %v3852_v61 = vpop.permute.xlu1 %3851  ;;  %4731 = vrot.lane.b32.xlu0 %v4640_v4, %s5608_s16  ;;  %v4004_v57 = vsel %vm9042_vm5, %v3972_v45, 0.0  ;;  %v4644_v6 = vsel %vm9042_vm5, %v4612_v53, 0.0  ;;  %vm9059_vm5 = vmmov %vm9046_vm11  ;;  %v9093_v53 = vld [vmem:[#allocation8_spill] sm:$0xff] }
 0x4f7   : > { %3928 = vst.msk [vmem:[#allocation3 + $0x98] sm:$0xff] %vm9027_vm6, %v3852_v61  ;;  %vm9043_vm6 = vmmov %vm9030_vm10 }
 0x4f8   : > { %3681 = vrot.lane.b32.xlu1 %v3587_v59, %s5603_s26  ;;  %v4710_v58 = vpop.permute.xlu0 %4709 }
 0x4f9   : > { %4789 = vst.msk [vmem:[#allocation3 + $0x80] sm:$0xff] %vm9030_vm10, %v4710_v58  ;;  %vm9044_vm10 = vmmov %vm9043_vm6 }
 0x4fa   : > { %v4712_v27 = vpop.permute.xlu1 %4711  ;;  %4317 = vrot.lane.b32.xlu0 %v4225_v13, %s5606_s29 }
 0x4fb   : > { %4790 = vst.msk [vmem:[#allocation3 + $0x88] sm:$0xff] %vm9031_vm13, %v4712_v27  ;;  %vm9045_vm13 = vmmov %vm9034_vm3 }
 0x4fc   : > { %4509 = vrot.lane.b32.xlu1 %v4417_v62, %s5607_s30  ;;  %v4074_v21 = vpop.permute.xlu0 %4073 }
 0x4fd   : > { %4151 = vst.msk [vmem:[#allocation3 + $0x90] sm:$0xff] %vm9032_vm8, %v4074_v21  ;;  %vm9047_vm8 = vmmov %vm9034_vm3 }
 0x4fe   : > { %v4298_v18 = vpop.permute.xlu1 %4297  ;;  %4319 = vrot.lane.b32.xlu0 %v4194_v3, %s5606_s29 }
 0x4ff   : > { %4375 = vst.msk [vmem:[#allocation3 + $0x90] sm:$0xff] %vm9033_vm1, %v4298_v18  ;;  %vm9048_vm1 = vmmov %vm9037_vm7 }
 0x500   : > { %3873 = vrot.lane.b32.xlu1 %v4417_v62, %s5604_s27  ;;  %v4076_v11 = vpop.permute.xlu0 %4075  ;;  %v4821_v15 = vld [vmem:[#allocation3 + $0x80] sm:$0xff]  ;;  %v9073_v62 = vld [vmem:[#allocation7_spill] sm:$0xff] }
 0x501   : > { %4152 = vst.msk [vmem:[#allocation3 + $0x98] sm:$0xff] %vm9034_vm3, %v4076_v11  ;;  %5538 = vmatprep.mubr.msk.f32.mxu1 %vm9035_vm15, %v4821_v15  ;;  %vm9050_vm3 = vmmov %vm9048_vm1  ;;  %v9076_v11 = vld [vmem:[#allocation6_spill] sm:$0xff] }
 0x502   : > { %v4490_v16 = vpop.permute.xlu1 %4489  ;;  %3683 = vrot.lane.b32.xlu0 %v4194_v3, %s5603_s26  ;;  %v4822_v48 = vld [vmem:[#allocation3 + $0x88] sm:$0xff]  ;;  %vm9051_vm15 = vmmov %vm9038_vm0 }
 0x503   : > { %4567 = vst.msk [vmem:[#allocation3 + $0x90] sm:$0xff] %vm9036_vm9, %v4490_v16  ;;  %5539 = vmatmul.mubr.msk.f32.gmra.mxu1 %vm9037_vm7, %v4822_v48  ;;  %vm9052_vm9 = vmmov %vm9039_vm2 }
 0x504   : > { %4733 = vrot.lane.b32.xlu1 %v4609_v56, %s5608_s16  ;;  %v4300_v42 = vpop.permute.xlu0 %4299  ;;  %vm9053_vm7 = vmmov %vm9041_vm4 }
 0x505   : > { %4376 = vst.msk [vmem:[#allocation3 + $0x98] sm:$0xff] %vm9038_vm0, %v4300_v42  ;;  %vm9054_vm0 = vmmov %vm9041_vm4 }
 0x506   : > { %v4492_v17 = vpop.permute.xlu1 %4491  ;;  %4511 = vrot.lane.b32.xlu0 %v4418_v49, %s5607_s30 }
 0x507   : > { %4568 = vst.msk [vmem:[#allocation3 + $0x98] sm:$0xff] %vm9039_vm2, %v4492_v17  ;;  %vm9055_vm2 = vmmov %vm9043_vm6 }
 0x508   : > { %4097 = vrot.lane.b32.xlu1 %v4609_v56, %s5605_s28  ;;  %v3854_v40 = vpop.permute.xlu0 %3853 }
 0x509   : > { %3929 = vst.msk [vmem:[#allocation3 + $0xa0] sm:$0xff] %vm9040_vm12, %v3854_v40  ;;  %vm9056_vm12 = vmmov %vm9055_vm2 }
 0x50a   : > { %v3856_v46 = vpop.permute.xlu1 %3855  ;;  %3875 = vrot.lane.b32.xlu0 %v4418_v49, %s5604_s27 }
 0x50b   : > { %3930 = vst.msk [vmem:[#allocation3 + $0xa8] sm:$0xff] %vm9041_vm4, %v3856_v46  ;;  %vm9057_vm4 = vmmov %vm9047_vm8 }
 0x50c   : > { %4099 = vrot.lane.b32.xlu1 %v4004_v57, %s5605_s28  ;;  %v4714_v5 = vpop.permute.xlu0 %4713 }
 0x50d   : > { %4791 = vst.msk [vmem:[#allocation3 + $0x90] sm:$0xff] %vm9043_vm6, %v4714_v5  ;;  %vm9060_vm6 = vcmask 31744  }
 0x50e   : > { %v4716_v41 = vpop.permute.xlu1 %4715  ;;  %4735 = vrot.lane.b32.xlu0 %v4642_v29, %s5608_s16 }
 0x50f   : > { %4792 = vst.msk [vmem:[#allocation3 + $0x98] sm:$0xff] %vm9044_vm10, %v4716_v41  ;;  %vm9062_vm10 = vmmov %vm9057_vm4 }
 0x510   : > { %v4078_v60 = vpop.permute.xlu0 %4077  ;;  %4323 = vrot.lane.b32.xlu1 %v4196_v26, %s5606_s29 }
 0x511   : > { %4153 = vst.msk [vmem:[#allocation3 + $0xa0] sm:$0xff] %vm9045_vm13, %v4078_v60  ;;  %vm9063_vm13 = vmmov %vm9048_vm1 }
 0x512   : > { %v4302_v31 = vpop.permute.xlu1 %4301  ;;  %4321 = vrot.lane.b32.xlu0 %v4227_v39, %s5606_s29 }
 0x513   : > { %4377 = vst.msk [vmem:[#allocation3 + $0xa0] sm:$0xff] %vm9046_vm11, %v4302_v31  ;;  %vm9064_vm11 = vmmov %vm9060_vm6 }
 0x514   : > { %v4080_v8 = vpop.permute.xlu0 %4079  ;;  %v4823_v22 = vld [vmem:[#allocation3 + $0x90] sm:$0xff]  ;;  %4515 = vrot.lane.b32.xlu1 %v4420_v33, %s5607_s30 }
 0x515   : > { %4154 = vst.msk [vmem:[#allocation3 + $0xa8] sm:$0xff] %vm9047_vm8, %v4080_v8  ;;  %5541 = vmatprep.mubr.msk.f32.mxu1 %vm9048_vm1, %v4823_v22  ;;  %vm9065_vm8 = vmmov %vm9052_vm9 }
 0x516   : > { %v4494_v1 = vpop.permute.xlu1 %4493  ;;  %4513 = vrot.lane.b32.xlu0 %v4419_v30, %s5607_s30  ;;  %v4824_v34 = vld [vmem:[#allocation3 + $0x98] sm:$0xff]  ;;  %s8129_s30 = scalar_lea.vmem %s8331_s5, %s5370_s20 }
 0x517   : > { %4569 = vst.msk [vmem:[#allocation3 + $0xa0] sm:$0xff] %vm9049_vm14, %v4494_v1  ;;  %5542 = vmatmul.mubr.msk.f32.gmra.mxu1 %vm9050_vm3, %v4824_v34  ;;  %vm9066_vm14 = vmmov %vm9059_vm5 }
 0x518   : > { %v4304_v0 = vpop.permute.xlu0 %4303  ;;  %4739 = vrot.lane.b32.xlu1 %v4644_v6, %s5608_s16  ;;  %vm9067_vm3 = vmmov %vm9065_vm8 }
 0x519   : > { %4378 = vst.msk [vmem:[#allocation3 + $0xa8] sm:$0xff] %vm9051_vm15, %v4304_v0  ;;  %vm9068_vm15 = vmmov %vm9054_vm0 }
 0x51a   : > { %v4496_v36 = vpop.permute.xlu1 %4495  ;;  %4737 = vrot.lane.b32.xlu0 %v4611_v63, %s5608_s16 }
 0x51b   : > { %4570 = vst.msk [vmem:[#allocation3 + $0xa8] sm:$0xff] %vm9052_vm9, %v4496_v36  ;;  %vm9069_vm9 = vmmov %vm9054_vm0 }
 0x51c   : > { %v3858_v37 = vpop.permute.xlu0 %3857 }
 0x51d   : > { %3931 = vst.msk [vmem:[#allocation3 + $0xb0] sm:$0xff] %vm9053_vm7, %v3858_v37  ;;  %vm9070_vm7 = vmmov %vm9055_vm2 }
 0x51e   : > { %v3860_v50 = vpop.permute.xlu1 %3859 }
 0x51f   : > { %3932 = vst.msk [vmem:[#allocation3 + $0xb8] sm:$0xff] %vm9054_vm0, %v3860_v50  ;;  %vm9071_vm0 = vmmov %vm9055_vm2 }
 0x520   : > { %v4718_v20 = vpop.permute.xlu0 %4717 }
 0x521   : > { %4793 = vst.msk [vmem:[#allocation3 + $0xa0] sm:$0xff] %vm9055_vm2, %v4718_v20  ;;  %vm9072_vm2 = vmmov %vm9057_vm4 }
 0x522   : > { %v4720_v24 = vpop.permute.xlu1 %4719 }
 0x523   : > { %4794 = vst.msk [vmem:[#allocation3 + $0xa8] sm:$0xff] %vm9056_vm12, %v4720_v24  ;;  %v5516_v19 = vpop.f32.mrf.mxu1  ;;  %vm9074_vm12 = vmmov %vm9059_vm5 }
 0x524   : > { %v5019_v43 = vadd.f32 %v5516_v19, %v8120_v23  ;;  %v4082_v7 = vpop.permute.xlu0 %4081 }
 0x525   : > { %4155 = vst.msk [vmem:[#allocation3 + $0xb0] sm:$0xff] %vm9057_vm4, %v4082_v7  ;;  %v5013_v38 = vpop.f32.mrf.mxu1  ;;  %vm9075_vm4 = vmmov %vm9060_vm6 }
 0x526   : > { %v5173_v55 = vadd.f32 %v5019_v43, %v9058_v32  ;;  %v5014_v14 = vadd.f32 %v8120_v23, %v5013_v38  ;;  %v4306_v52 = vpop.permute.xlu1 %4305  ;;  %v9102_v43 = vld [vmem:[#allocation11_spill] sm:$0xff] }
 0x527   : > { %4379 = vst.msk [vmem:[#allocation3 + $0xb0] sm:$0xff] %vm9059_vm5, %v4306_v52  ;;  %vm9077_vm5 = vmmov %vm9072_vm2 }
 0x528   : > { %5205 = vst.msk [vmem:[%s8129_s30 + $0x8] sm:$0xff] %vm9060_vm6, %v5173_v55  ;;  %v5172_v44 = vadd.f32 %v5014_v14, %v9061_v25  ;;  %v4084_v12 = vpop.permute.xlu0 %4083  ;;  %v4825_v54 = vld [vmem:[#allocation3 + $0xa0] sm:$0xff]  ;;  %vm9078_vm6 = vmmov %vm9048_vm1  ;;  %v9105_v55 = vld [vmem:[#allocation10_spill] sm:$0xff] }
 0x529   : > { %4156 = vst.msk [vmem:[#allocation3 + $0xb8] sm:$0xff] %vm9062_vm10, %v4084_v12  ;;  %5544 = vmatprep.mubr.msk.f32.mxu1 %vm9063_vm13, %v4825_v54  ;;  %vm9079_vm10 = vmmov %vm9075_vm4 }
 0x52a   : > { %5204 = vst.msk [vmem:[%s8129_s30] sm:$0xff] %vm9064_vm11, %v5172_v44  ;;  %v4498_v47 = vpop.permute.xlu1 %4497  ;;  %v4826_v9 = vld [vmem:[#allocation3 + $0xa8] sm:$0xff]  ;;  %vm9080_vm13 = vmmov %vm9067_vm3 }
 0x52b   : > { %4571 = vst.msk [vmem:[#allocation3 + $0xb0] sm:$0xff] %vm9065_vm8, %v4498_v47  ;;  %5545 = vmatmul.mubr.msk.f32.gmra.mxu1 %vm9048_vm1, %v4826_v9  ;;  %vm9081_vm11 = vmmov %vm9048_vm1 }
 0x52c   : > { %v4308_v28 = vpop.permute.xlu0 %4307  ;;  %vm9082_vm8 = vmmov %vm9074_vm12 }
 0x52d   : > { %4380 = vst.msk [vmem:[#allocation3 + $0xb8] sm:$0xff] %vm9066_vm14, %v4308_v28  ;;  %vm9083_vm1 = vmmov %vm9069_vm9  ;;  %vm9084_vm14 = vcmask 130144  }
 0x52e   : > { %v4500_v35 = vpop.permute.xlu1 %4499 }
 0x52f   : > { %4572 = vst.msk [vmem:[#allocation3 + $0xb8] sm:$0xff] %vm9067_vm3, %v4500_v35  ;;  %vm9085_vm3 = vmmov %vm9071_vm0 }
 0x530   : > { %v3862_v51 = vpop.permute.xlu0 %3861 }
 0x531   : > { %3933 = vst.msk [vmem:[#allocation3 + $0xc0] sm:$0xff] %vm9068_vm15, %v3862_v51  ;;  %vm9086_vm15 = vmmov %vm9080_vm13 }
 0x532   : > { %v3864_v4 = vpop.permute.xlu1 %3863 }
 0x533   : > { %3934 = vst.msk [vmem:[#allocation3 + $0xc8] sm:$0xff] %vm9069_vm9, %v3864_v4  ;;  %vm9087_vm9 = vmmov %vm9072_vm2 }
 0x534   : > { %v4722_v61 = vpop.permute.xlu0 %4721 }
 0x535   : > { %4795 = vst.msk [vmem:[#allocation3 + $0xb0] sm:$0xff] %vm9070_vm7, %v4722_v61  ;;  %vm9088_vm7 = vmmov %vm9083_vm1 }
 0x536   : > { %v4724_v10 = vpop.permute.xlu1 %4723 }
 0x537   : > { %4796 = vst.msk [vmem:[#allocation3 + $0xb8] sm:$0xff] %vm9071_vm0, %v4724_v10  ;;  %v5519_v59 = vpop.f32.mrf.mxu1  ;;  %vm9090_vm0 = vmmov %vm9072_vm2 }
 0x538   : > { %v5029_v58 = vadd.f32 %v5519_v59, %v8120_v23  ;;  %v4086_v13 = vpop.permute.xlu0 %4085 }
 0x539   : > { %4157 = vst.msk [vmem:[#allocation3 + $0xc0] sm:$0xff] %vm9072_vm2, %v4086_v13  ;;  %v5023_v27 = vpop.f32.mrf.mxu1  ;;  %vm9091_vm2 = vmmov %vm9078_vm6 }
 0x53a   : > { %v5175_v21 = vadd.f32 %v5029_v58, %v9073_v62  ;;  %v5024_v3 = vadd.f32 %v8120_v23, %v5023_v27  ;;  %v4310_v18 = vpop.permute.xlu1 %4309  ;;  %v9115_v58 = vld [vmem:[#allocation13_spill] sm:$0xff] }
 0x53b   : > { %4381 = vst.msk [vmem:[#allocation3 + $0xc0] sm:$0xff] %vm9074_vm12, %v4310_v18  ;;  %vm9092_vm12 = vmmov %vm9075_vm4 }
 0x53c   : > { %5207 = vst.msk [vmem:[%s8129_s30 + $0x18] sm:$0xff] %vm9075_vm4, %v5175_v21  ;;  %v5174_v15 = vadd.f32 %v5024_v3, %v9076_v11  ;;  %v4088_v16 = vpop.permute.xlu0 %4087  ;;  %v4827_v48 = vld [vmem:[#allocation3 + $0xb0] sm:$0xff]  ;;  %vm9094_vm4 = vmmov %vm9085_vm3  ;;  %v9117_v21 = vld [vmem:[#allocation12_spill] sm:$0xff] }
 0x53d   : > { %4158 = vst.msk [vmem:[#allocation3 + $0xc8] sm:$0xff] %vm9077_vm5, %v4088_v16  ;;  %5547 = vmatprep.mubr.msk.f32.mxu1 %vm9078_vm6, %v4827_v48  ;;  %vm9095_vm5 = vmmov %vm9079_vm10 }
 0x53e   : > { %5206 = vst.msk [vmem:[%s8129_s30 + $0x10] sm:$0xff] %vm9079_vm10, %v5174_v15  ;;  %v4502_v56 = vpop.permute.xlu1 %4501  ;;  %v4828_v42 = vld [vmem:[#allocation3 + $0xb8] sm:$0xff]  ;;  %vm9096_vm6 = vmmov %vm9084_vm14 }
 0x53f   : > { %4573 = vst.msk [vmem:[#allocation3 + $0xc0] sm:$0xff] %vm9080_vm13, %v4502_v56  ;;  %5548 = vmatmul.mubr.msk.f32.gmra.mxu1 %vm9081_vm11, %v4828_v42  ;;  %vm9097_vm10 = vmmov %vm9082_vm8 }
 0x540   : > { %v4312_v49 = vpop.permute.xlu0 %4311  ;;  %vm9098_vm11 = vmmov %vm9082_vm8 }
 0x541   : > { %4382 = vst.msk [vmem:[#allocation3 + $0xc8] sm:$0xff] %vm9082_vm8, %v4312_v49  ;;  %vm9099_vm8 = vmmov %vm9091_vm2 }
 0x542   : > { %v3866_v17 = vpop.permute.xlu1 %3865 }
 0x543   : > { %3935 = vst.msk [vmem:[#allocation3 + $0xd0] sm:$0xff] %vm9083_vm1, %v3866_v17 }
 0x544   : > { %v3676_v40 = vpop.permute.xlu0 %3675 }
 0x545   : > { %3744 = vst.msk [vmem:[#allocation3 + $0xd8] sm:$0xff] %vm9084_vm14, %v3676_v40  ;;  %vm9100_vm14 = vmmov %vm9096_vm6 }
 0x546   : > { %v4726_v45 = vpop.permute.xlu1 %4725 }
 0x547   : > { %4797 = vst.msk [vmem:[#allocation3 + $0xc0] sm:$0xff] %vm9085_vm3, %v4726_v45 }
 0x548   : > { %v4504_v46 = vpop.permute.xlu0 %4503 }
 0x549   : > { %4574 = vst.msk [vmem:[#allocation3 + $0xc8] sm:$0xff] %vm9086_vm15, %v4504_v46  ;;  %vm9101_vm15 = vmmov %vm9080_vm13 }
 0x54a   : > { %v4090_v57 = vpop.permute.xlu1 %4089 }
 0x54b   : > { %4159 = vst.msk [vmem:[#allocation3 + $0xd0] sm:$0xff] %vm9087_vm9, %v4090_v57  ;;  %v5522_v5 = vpop.f32.mrf.mxu1  ;;  %vm9103_vm9 = vmmov %vm9090_vm0 }
 0x54c   : > { %v5039_v29 = vadd.f32 %v5522_v5, %v8120_v23  ;;  %v3868_v26 = vpop.permute.xlu0 %3867 }
 0x54d   : > { %3936 = vst.msk [vmem:[#allocation3 + $0xd8] sm:$0xff] %vm9088_vm7, %v3868_v26  ;;  %v5033_v41 = vpop.f32.mrf.mxu1  ;;  %vm9104_vm7 = vmmov %vm9095_vm5 }
 0x54e   : > { %v5177_v60 = vadd.f32 %v5039_v29, %v9089_v2  ;;  %v5034_v39 = vadd.f32 %v8120_v23, %v5033_v41  ;;  %v4092_v33 = vpop.permute.xlu1 %4091  ;;  %v4829_v31 = vld [vmem:[#allocation3 + $0xc0] sm:$0xff]  ;;  %v9129_v29 = vld [vmem:[#allocation15_spill] sm:$0xff] }
 0x54f   : > { %4160 = vst.msk [vmem:[#allocation3 + $0xd8] sm:$0xff] %vm9090_vm0, %v4092_v33  ;;  %5550 = vmatprep.mubr.msk.f32.mxu1 %vm9091_vm2, %v4829_v31  ;;  %vm9106_vm0 = vmmov %vm9083_vm1 }
 0x550   : > { %5209 = vst.msk [vmem:[%s8129_s30 + $0x28] sm:$0xff] %vm9092_vm12, %v5177_v60  ;;  %v5176_v30 = vadd.f32 %v5034_v39, %v9093_v53  ;;  %v4728_v8 = vpop.permute.xlu0 %4727  ;;  %vm9107_vm2 = vmmov %vm9095_vm5  ;;  %v9132_v60 = vld [vmem:[#allocation14_spill] sm:$0xff] }
 0x551   : > { %4798 = vst.msk [vmem:[#allocation3 + $0xc8] sm:$0xff] %vm9094_vm4, %v4728_v8  ;;  %vm9108_vm12 = vmmov %vm9103_vm9 }
 0x552   : > { %5208 = vst.msk [vmem:[%s8129_s30 + $0x20] sm:$0xff] %vm9095_vm5, %v5176_v30  ;;  %v3678_v22 = vpop.permute.xlu1 %3677  ;;  %vm9109_vm4 = vmmov %vm9099_vm8 }
 0x553   : > { %3745 = vst.msk [vmem:[#allocation3 + $0xe0] sm:$0xff] %vm9096_vm6, %v3678_v22  ;;  %vm9110_vm5 = vmmov %vm9085_vm3 }
 0x554   : > { %v4314_v6 = vpop.permute.xlu0 %4313 }
 0x555   : > { %4383 = vst.msk [vmem:[#allocation3 + $0xd0] sm:$0xff] %vm9097_vm10, %v4314_v6  ;;  %v9137_v6 = vld [vmem:[#allocation17_spill] sm:$0xff] }
 0x556   : > { %v4506_v1 = vpop.permute.xlu1 %4505 }
 0x557   : > { %4575 = vst.msk [vmem:[#allocation3 + $0xd0] sm:$0xff] %vm9080_vm13, %v4506_v1 }
 0x558   : > { %v4316_v34 = vpop.permute.xlu0 %4315  ;;  %v4830_v63 = vld [vmem:[#allocation3 + $0xc8] sm:$0xff] }
 0x559   : > { %4384 = vst.msk [vmem:[#allocation3 + $0xd8] sm:$0xff] %vm9098_vm11, %v4316_v34  ;;  %5551 = vmatmul.mubr.msk.f32.gmra.mxu1 %vm9099_vm8, %v4830_v63  ;;  %vm9111_vm11 = vmmov %vm9097_vm10  ;;  %v9139_v63 = vld [vmem:[#allocation16_spill] sm:$0xff] }
 0x55a   : > { %v3870_v0 = vpop.permute.xlu1 %3869  ;;  %vm9112_vm8 = vmmov %vm9109_vm4 }
 0x55b   : > { %3937 = vst.msk [vmem:[#allocation3 + $0xe0] sm:$0xff] %vm9083_vm1, %v3870_v0  ;;  %vm9113_vm1 = vmmov %vm9106_vm0 }
 0x55c   : > { %v3680_v36 = vpop.permute.xlu0 %3679 }
 0x55d   : > { %3746 = vst.msk [vmem:[#allocation3 + $0xe8] sm:$0xff] %vm9100_vm14, %v3680_v36  ;;  %vm9114_vm14 = vmmov %vm9096_vm6 }
 0x55e   : > { %v4730_v37 = vpop.permute.xlu1 %4729 }
 0x55f   : > { %4799 = vst.msk [vmem:[#allocation3 + $0xd0] sm:$0xff] %vm9085_vm3, %v4730_v37  ;;  %v5525_v50 = vpop.f32.mrf.mxu1 }
 0x560   : > { %v5049_v20 = vadd.f32 %v5525_v50, %v8120_v23  ;;  %v4508_v24 = vpop.permute.xlu0 %4507 }
 0x561   : > { %4576 = vst.msk [vmem:[#allocation3 + $0xd8] sm:$0xff] %vm9101_vm15, %v4508_v24  ;;  %v5043_v19 = vpop.f32.mrf.mxu1  ;;  %vm9116_vm15 = vmmov %vm9107_vm2 }
 0x562   : > { %v5179_v7 = vadd.f32 %v5049_v20, %v9102_v43  ;;  %v5044_v38 = vadd.f32 %v8120_v23, %v5043_v19  ;;  %v4094_v32 = vpop.permute.xlu1 %4093  ;;  %v9141_v20 = vld [vmem:[#allocation19_spill] sm:$0xff]  ;;  %v9143_v43 = vld [vmem:[#allocation18_spill] sm:$0xff] }
 0x563   : > { %4161 = vst.msk [vmem:[#allocation3 + $0xe0] sm:$0xff] %vm9103_vm9, %v4094_v32  ;;  %vm9118_vm9 = vmmov %vm9080_vm13 }
 0x564   : > { %5211 = vst.msk [vmem:[%s8129_s30 + $0x38] sm:$0xff] %vm9104_vm7, %v5179_v7  ;;  %v5178_v14 = vadd.f32 %v5044_v38, %v9105_v55  ;;  %v3872_v52 = vpop.permute.xlu0 %3871  ;;  %vm9119_vm7 = vmmov %vm9107_vm2 }
 0x565   : > { %3938 = vst.msk [vmem:[#allocation3 + $0xe8] sm:$0xff] %vm9106_vm0, %v3872_v52  ;;  %vm9120_vm0 = vmmov %vm9108_vm12 }
 0x566   : > { %5210 = vst.msk [vmem:[%s8129_s30 + $0x30] sm:$0xff] %vm9107_vm2, %v5178_v14  ;;  %v4096_v25 = vpop.permute.xlu1 %4095  ;;  %v4831_v44 = vld [vmem:[#allocation3 + $0xd0] sm:$0xff]  ;;  %vm9121_vm2 = vmmov %vm9113_vm1  ;;  %v9145_v14 = vld [vmem:[#allocation21_spill] sm:$0xff] }
 0x567   : > { %4162 = vst.msk [vmem:[#allocation3 + $0xe8] sm:$0xff] %vm9108_vm12, %v4096_v25  ;;  %5553 = vmatprep.mubr.msk.f32.mxu1 %vm9109_vm4, %v4831_v44  ;;  %vm9122_vm12 = vmmov %vm9120_vm0  ;;  %v9147_v44 = vld [vmem:[#allocation20_spill] sm:$0xff] }
 0x568   : > { %v4732_v12 = vpop.permute.xlu0 %4731 }
 0x569   : > { %4800 = vst.msk [vmem:[#allocation3 + $0xd8] sm:$0xff] %vm9110_vm5, %v4732_v12  ;;  %vm9123_vm5 = vmmov %vm9085_vm3 }
 0x56a   : > { %v3682_v54 = vpop.permute.xlu1 %3681 }
 0x56b   : > { %3747 = vst.msk [vmem:[#allocation3 + $0xf0] sm:$0xff] %vm9096_vm6, %v3682_v54  ;;  %vm9124_vm6 = vmmov %vm9097_vm10 }
 0x56c   : > { %v4318_v47 = vpop.permute.xlu0 %4317 }
 0x56d   : > { %4385 = vst.msk [vmem:[#allocation3 + $0xe0] sm:$0xff] %vm9097_vm10, %v4318_v47  ;;  %vm9125_vm10 = vmmov %vm9124_vm6 }
 0x56e   : > { %v4510_v9 = vpop.permute.xlu1 %4509 }
 0x56f   : > { %4577 = vst.msk [vmem:[#allocation3 + $0xe0] sm:$0xff] %vm9080_vm13, %v4510_v9  ;;  %vm9126_vm13 = vmmov %vm9118_vm9 }
 0x570   : > { %v4320_v28 = vpop.permute.xlu0 %4319  ;;  %v4832_v35 = vld [vmem:[#allocation3 + $0xd8] sm:$0xff] }
 0x571   : > { %4386 = vst.msk [vmem:[#allocation3 + $0xe8] sm:$0xff] %vm9111_vm11, %v4320_v28  ;;  %5554 = vmatmul.mubr.msk.f32.gmra.mxu1 %vm9112_vm8, %v4832_v35  ;;  %vm9127_vm11 = vmmov %vm9118_vm9  ;;  %v9149_v28 = vld [vmem:[#allocation23_spill] sm:$0xff] }
 0x572   : > { %v3874_v51 = vpop.permute.xlu1 %3873  ;;  %vm9128_vm8 = vmmov %vm9109_vm4 }
 0x573   : > { %3939 = vst.msk [vmem:[#allocation3 + $0xf0] sm:$0xff] %vm9113_vm1, %v3874_v51  ;;  %v5528_v4 = vpop.f32.mrf.mxu1  ;;  %vm9130_vm1 = vmmov %vm9085_vm3 }
 0x574   : > { %v5059_v61 = vadd.f32 %v5528_v4, %v8120_v23  ;;  %v3684_v10 = vpop.permute.xlu0 %3683  ;;  %v9151_v4 = vld [vmem:[#allocation22_spill] sm:$0xff] }
 0x575   : > { %3748 = vst.msk [vmem:[#allocation3 + $0xf8] sm:$0xff] %vm9114_vm14, %v3684_v10  ;;  %v5053_v59 = vpop.f32.mrf.mxu1  ;;  %vm9131_vm14 = vmmov %vm9119_vm7 }
 0x576   : > { %v5181_v13 = vadd.f32 %v5059_v61, %v9115_v58  ;;  %v5054_v27 = vadd.f32 %v8120_v23, %v5053_v59  ;;  %v4734_v62 = vpop.permute.xlu1 %4733 }
 0x577   : > { %4801 = vst.msk [vmem:[#allocation3 + $0xe0] sm:$0xff] %vm9085_vm3, %v4734_v62  ;;  %vm9133_vm3 = vmmov %vm9130_vm1 }
 0x578   : > { %5213 = vst.msk [vmem:[%s8129_s30 + $0x48] sm:$0xff] %vm9116_vm15, %v5181_v13  ;;  %v5180_v3 = vadd.f32 %v5054_v27, %v9117_v21  ;;  %v4512_v18 = vpop.permute.xlu0 %4511  ;;  %vm9134_vm15 = vmmov %vm9119_vm7  ;;  %v9153_v13 = vld [vmem:[#allocation25_spill] sm:$0xff]  ;;  %v9155_v21 = vld [vmem:[#allocation24_spill] sm:$0xff] }
 0x579   : > { %4578 = vst.msk [vmem:[#allocation3 + $0xe8] sm:$0xff] %vm9118_vm9, %v4512_v18  ;;  %vm9135_vm9 = vmmov %vm9109_vm4 }
 0x57a   : > { %5212 = vst.msk [vmem:[%s8129_s30 + $0x40] sm:$0xff] %vm9119_vm7, %v5180_v3  ;;  %v4098_v11 = vpop.permute.xlu1 %4097  ;;  %vm9136_vm7 = vmmov %vm9109_vm4 }
 0x57b   : > { %4163 = vst.msk [vmem:[#allocation3 + $0xf0] sm:$0xff] %vm9120_vm0, %v4098_v11  ;;  %vm9138_vm0 = vmmov %vm9131_vm14 }
 0x57c   : > { %v3876_v15 = vpop.permute.xlu0 %3875 }
 0x57d   : > { %3940 = vst.msk [vmem:[#allocation3 + $0xf8] sm:$0xff] %vm9121_vm2, %v3876_v15  ;;  %vm9140_vm2 = vmmov %vm9138_vm0 }
 0x57e   : > { %v4100_v16 = vpop.permute.xlu1 %4099  ;;  %v4833_v48 = vld [vmem:[#allocation3 + $0xe0] sm:$0xff] }
 0x57f   : > { %4164 = vst.msk [vmem:[#allocation3 + $0xf8] sm:$0xff] %vm9122_vm12, %v4100_v16  ;;  %5556 = vmatprep.mubr.msk.f32.mxu1 %vm9109_vm4, %v4833_v48  ;;  %vm9142_vm12 = vmmov %vm9138_vm0  ;;  %v9157_v16 = vld [vmem:[#allocation27_spill] sm:$0xff] }
 0x580   : > { %v4736_v56 = vpop.permute.xlu0 %4735  ;;  %vm9144_vm4 = vmmov %vm9138_vm0 }
 0x581   : > { %4802 = vst.msk [vmem:[#allocation3 + $0xe8] sm:$0xff] %vm9123_vm5, %v4736_v56  ;;  %vm9146_vm5 = vmmov %vm9138_vm0 }
 0x582   : > { %v4324_v42 = vpop.permute.xlu1 %4323 }
 0x583   : > { %4388 = vst.msk [vmem:[#allocation3 + $0xf8] sm:$0xff] %vm9124_vm6, %v4324_v42  ;;  %vm9148_vm6 = vmmov %vm9138_vm0  ;;  %v9159_v42 = vld [vmem:[#allocation26_spill] sm:$0xff] }
 0x584   : > { %v4322_v49 = vpop.permute.xlu0 %4321 }
 0x585   : > { %4387 = vst.msk [vmem:[#allocation3 + $0xf0] sm:$0xff] %vm9125_vm10, %v4322_v49  ;;  %vm9150_vm10 = vmmov %vm9138_vm0 }
 0x586   : > { %v4516_v17 = vpop.permute.xlu1 %4515 }
 0x587   : > { %v5531_v40 = vpop.f32.mrf.mxu1  ;;  %4580 = vst.msk [vmem:[#allocation3 + $0xf8] sm:$0xff] %vm9126_vm13, %v4516_v17  ;;  %vm9152_vm13 = vmmov %vm9138_vm0 }
 0x588   : > { %v5069_v45 = vadd.f32 %v5531_v40, %v8120_v23  ;;  %v4514_v46 = vpop.permute.xlu0 %4513  ;;  %v4834_v57 = vld [vmem:[#allocation3 + $0xe8] sm:$0xff] }
 0x589   : > { %4579 = vst.msk [vmem:[#allocation3 + $0xf0] sm:$0xff] %vm9127_vm11, %v4514_v46  ;;  %v5063_v5 = vpop.f32.mrf.mxu1  ;;  %5557 = vmatmul.mubr.msk.f32.gmra.mxu1 %vm9128_vm8, %v4834_v57  ;;  %vm9154_vm11 = vmmov %vm9138_vm0  ;;  %v9161_v46 = vld [vmem:[#allocation29_spill] sm:$0xff] }
 0x58a   : > { %v5183_v26 = vadd.f32 %v5069_v45, %v9129_v29  ;;  %v5064_v41 = vadd.f32 %v8120_v23, %v5063_v5  ;;  %v4740_v2 = vpop.permute.xlu1 %4739  ;;  %vm9156_vm8 = vmmov %vm9138_vm0  ;;  %v9163_v29 = vld [vmem:[#allocation28_spill] sm:$0xff] }
 0x58b   : > { %4804 = vst.msk [vmem:[#allocation3 + $0xf8] sm:$0xff] %vm9130_vm1, %v4740_v2  ;;  %vm9158_vm1 = vmmov %vm9138_vm0 }
 0x58c   : > { %5215 = vst.msk [vmem:[%s8129_s30 + $0x58] sm:$0xff] %vm9131_vm14, %v5183_v26  ;;  %v5182_v39 = vadd.f32 %v5064_v41, %v9132_v60  ;;  %v4738_v33 = vpop.permute.xlu0 %4737  ;;  %vm9160_vm14 = vmmov %vm9138_vm0 }
 0x58d   : > { %4803 = vst.msk [vmem:[#allocation3 + $0xf0] sm:$0xff] %vm9133_vm3, %v4738_v33  ;;  %vm9162_vm3 = vmmov %vm9138_vm0 }
 0x58e   : > { %5214 = vst.msk [vmem:[%s8129_s30 + $0x50] sm:$0xff] %vm9134_vm15, %v5182_v39  ;;  %vm9164_vm15 = vmmov %vm9138_vm0  ;;  %v9165_v39 = vld [vmem:[#allocation31_spill] sm:$0xff] }
 0x592   : > { %v4836_v31 = vld [vmem:[#allocation3 + $0xf8] sm:$0xff] }
 0x594   : > { %v4835_v53 = vld [vmem:[#allocation3 + $0xf0] sm:$0xff] }
 0x595   : > { %5559 = vmatprep.mubr.msk.f32.mxu1 %vm9135_vm9, %v4835_v53  ;;  %vm9166_vm9 = vmmov %vm9138_vm0  ;;  %v9167_v53 = vld [vmem:[#allocation30_spill] sm:$0xff] }
 0x596   : > { %5560 = vmatmul.mubr.msk.f32.gmra.mxu1 %vm9136_vm7, %v4836_v31  ;;  %vm9168_vm7 = vmmov %vm9138_vm0 }
 0x59b   : > { %v5534_v30 = vpop.f32.mrf.mxu1 }
 0x59c   : > { %v5079_v8 = vadd.f32 %v5534_v30, %v8120_v23 }
 0x59d   : > { %v5073_v22 = vpop.f32.mrf.mxu1 }
 0x59e   : > { %v5185_v1 = vadd.f32 %v5079_v8, %v9137_v6  ;;  %v5074_v34 = vadd.f32 %v8120_v23, %v5073_v22 }
 0x5a0   : > { %5217 = vst.msk [vmem:[%s8129_s30 + $0x68] sm:$0xff] %vm9138_vm0, %v5185_v1  ;;  %v5184_v0 = vadd.f32 %v5074_v34, %v9139_v63  ;;  %v9169_v1 = vld [vmem:[#allocation33_spill] sm:$0xff] }
 0x5a2   : > { %5216 = vst.msk [vmem:[%s8129_s30 + $0x60] sm:$0xff] %vm9140_vm2, %v5184_v0  ;;  %v9170_v0 = vld [vmem:[#allocation32_spill] sm:$0xff]  ;;  %vm9171_vm2 = vmmov %vm9138_vm0 }
 0x5af   : > { %v5537_v36 = vpop.f32.mrf.mxu1 }
 0x5b0   : > { %v5089_v37 = vadd.f32 %v5537_v36, %v8120_v23 }
 0x5b1   : > { %v5083_v50 = vpop.f32.mrf.mxu1 }
 0x5b2   : > { %v5187_v24 = vadd.f32 %v5089_v37, %v9141_v20  ;;  %v5084_v19 = vadd.f32 %v8120_v23, %v5083_v50 }
 0x5b4   : > { %5219 = vst.msk [vmem:[%s8129_s30 + $0x78] sm:$0xff] %vm9142_vm12, %v5187_v24  ;;  %v5186_v7 = vadd.f32 %v5084_v19, %v9143_v43  ;;  %v9172_v24 = vld [vmem:[#allocation42_spill] sm:$0xff]  ;;  %vm9173_vm12 = vmmov %vm9138_vm0 }
 0x5b6   : > { %5218 = vst.msk [vmem:[%s8129_s30 + $0x70] sm:$0xff] %vm9144_vm4, %v5186_v7  ;;  %v9174_v7 = vld [vmem:[#allocation35_spill] sm:$0xff]  ;;  %vm9175_vm4 = vmmov %vm9138_vm0 }
 0x5c3   : > { %v5540_v38 = vpop.f32.mrf.mxu1 }
 0x5c4   : > { %v5099_v32 = vadd.f32 %v5540_v38, %v8120_v23 }
 0x5c5   : > { %v5093_v55 = vpop.f32.mrf.mxu1 }
 0x5c6   : > { %v5189_v52 = vadd.f32 %v5099_v32, %v9145_v14  ;;  %v5094_v25 = vadd.f32 %v8120_v23, %v5093_v55 }
 0x5c8   : > { %5221 = vst.msk [vmem:[%s8129_s30 + $0x88] sm:$0xff] %vm9146_vm5, %v5189_v52  ;;  %v5188_v12 = vadd.f32 %v5094_v25, %v9147_v44 }
 0x5ca   : > { %5220 = vst.msk [vmem:[%s8129_s30 + $0x80] sm:$0xff] %vm9148_vm6, %v5188_v12 }
 0x5d7   : > { %v5543_v54 = vpop.f32.mrf.mxu1 }
 0x5d8   : > { %v5109_v47 = vadd.f32 %v5543_v54, %v8120_v23 }
 0x5d9   : > { %v5103_v9 = vpop.f32.mrf.mxu1 }
 0x5da   : > { %v5191_v35 = vadd.f32 %v5109_v47, %v9149_v28  ;;  %v5104_v51 = vadd.f32 %v8120_v23, %v5103_v9 }
 0x5dc   : > { %5223 = vst.msk [vmem:[%s8129_s30 + $0x98] sm:$0xff] %vm9150_vm10, %v5191_v35  ;;  %v5190_v61 = vadd.f32 %v5104_v51, %v9151_v4 }
 0x5de   : > { %5222 = vst.msk [vmem:[%s8129_s30 + $0x90] sm:$0xff] %vm9152_vm13, %v5190_v61 }
 0x5eb   : > { %v5546_v10 = vpop.f32.mrf.mxu1 }
 0x5ec   : > { %v5119_v59 = vadd.f32 %v5546_v10, %v8120_v23 }
 0x5ed   : > { %v5113_v58 = vpop.f32.mrf.mxu1 }
 0x5ee   : > { %v5193_v27 = vadd.f32 %v5119_v59, %v9153_v13  ;;  %v5114_v62 = vadd.f32 %v8120_v23, %v5113_v58 }
 0x5f0   : > { %5225 = vst.msk [vmem:[%s8129_s30 + $0xa8] sm:$0xff] %vm9154_vm11, %v5193_v27  ;;  %v5192_v3 = vadd.f32 %v5114_v62, %v9155_v21 }
 0x5f2   : > { %5224 = vst.msk [vmem:[%s8129_s30 + $0xa0] sm:$0xff] %vm9156_vm8, %v5192_v3 }
 0x5ff   : > { %v5549_v18 = vpop.f32.mrf.mxu1 }
 0x600   : > { %v5129_v11 = vadd.f32 %v5549_v18, %v8120_v23 }
 0x601   : > { %v5123_v15 = vpop.f32.mrf.mxu1 }
 0x602   : > { %v5195_v48 = vadd.f32 %v5129_v11, %v9157_v16  ;;  %v5124_v56 = vadd.f32 %v8120_v23, %v5123_v15 }
 0x604   : > { %5227 = vst.msk [vmem:[%s8129_s30 + $0xb8] sm:$0xff] %vm9158_vm1, %v5195_v48  ;;  %v5194_v49 = vadd.f32 %v5124_v56, %v9159_v42 }
 0x606   : > { %5226 = vst.msk [vmem:[%s8129_s30 + $0xb0] sm:$0xff] %vm9160_vm14, %v5194_v49 }
 0x619   : > { %v5552_v17 = vpop.f32.mrf.mxu1 }
 0x61a   : > { %v5139_v40 = vadd.f32 %v5552_v17, %v8120_v23 }
 0x61b   : > { %v5133_v45 = vpop.f32.mrf.mxu1 }
 0x61c   : > { %v5197_v57 = vadd.f32 %v5139_v40, %v9161_v46  ;;  %v5134_v5 = vadd.f32 %v8120_v23, %v5133_v45 }
 0x61e   : > { %5229 = vst.msk [vmem:[%s8129_s30 + $0xc8] sm:$0xff] %vm9162_vm3, %v5197_v57  ;;  %v5196_v26 = vadd.f32 %v5134_v5, %v9163_v29 }
 0x620   : > { %5228 = vst.msk [vmem:[%s8129_s30 + $0xc0] sm:$0xff] %vm9164_vm15, %v5196_v26 }
 0x631   : > { %v5555_v41 = vpop.f32.mrf.mxu1 }
 0x632   : > { %v5149_v2 = vadd.f32 %v5555_v41, %v8120_v23 }
 0x633   : > { %v5143_v60 = vpop.f32.mrf.mxu1 }
 0x634   : > { %v5199_v33 = vadd.f32 %v5149_v2, %v9165_v39  ;;  %v5144_v31 = vadd.f32 %v8120_v23, %v5143_v60 }
 0x636   : > { %5231 = vst.msk [vmem:[%s8129_s30 + $0xd8] sm:$0xff] %vm9166_vm9, %v5199_v33  ;;  %v5198_v30 = vadd.f32 %v5144_v31, %v9167_v53 }
 0x638   : > { %5230 = vst.msk [vmem:[%s8129_s30 + $0xd0] sm:$0xff] %vm9168_vm7, %v5198_v30 }
 0x649   : > { %v5558_v8 = vpop.f32.mrf.mxu1 }
 0x64a   : > { %v5159_v22 = vadd.f32 %v5558_v8, %v8120_v23 }
 0x64b   : > { %v5153_v6 = vpop.f32.mrf.mxu1 }
 0x64c   : > { %v5201_v34 = vadd.f32 %v5159_v22, %v9169_v1  ;;  %v5154_v63 = vadd.f32 %v8120_v23, %v5153_v6 }
 0x64e   : > { %5233 = vst.msk [vmem:[%s8129_s30 + $0xe8] sm:$0xff] %vm9138_vm0, %v5201_v34  ;;  %v5200_v36 = vadd.f32 %v5154_v63, %v9170_v0 }
 0x650   : > { %5232 = vst.msk [vmem:[%s8129_s30 + $0xe0] sm:$0xff] %vm9171_vm2, %v5200_v36 }
 0x656   : > { %v5561_v37 = vpop.f32.mrf.mxu1 }
 0x657   : > { %v5169_v50 = vadd.f32 %v5561_v37, %v8120_v23 }
 0x658   : > { %v5163_v20 = vpop.f32.mrf.mxu1 }
 0x659   : > { %v5203_v19 = vadd.f32 %v5169_v50, %v9172_v24  ;;  %v5164_v43 = vadd.f32 %v8120_v23, %v5163_v20 }
 0x65b   : > { %5235 = vst.msk [vmem:[%s8129_s30 + $0xf8] sm:$0xff] %vm9173_vm12, %v5203_v19  ;;  %v5202_v38 = vadd.f32 %v5164_v43, %v9174_v7 }
 0x65d   : > { %5234 = vst.msk [vmem:[%s8129_s30 + $0xf0] sm:$0xff] %vm9175_vm4, %v5202_v38 }
 0x65e PF: > { %s15_s18 = sadd.s32 1, %s5598_s18  }
 0x65f   : > { %p12_p4 = scmp.ge.s32.totalorder %s15_s18, 4  }
 0x661   :  { %14 = sbr.rel (!%p12_p4) target bundleno = 1 (0x1), region = 70 }

</bundles_post_ra>
